<compile_context>
chip_gen: v7x
topology: tpu7x:2x2x1
jax: 0.10.0
libtpu: 0.0.40
codegen_flags: <defaults>
</compile_context>

<pallas_src>
import functools

import jax
import jax.numpy as jnp
from jax import lax
from jax.experimental import pallas as pl
from jax.experimental.pallas import tpu as pltpu

EPS = 1e-3  # BatchNorm eps used by the PyTorch module


def _round_up(v, m):
    return -(-v // m) * m


# --------------------------------------------------------------------------
# The fused non_bottleneck_1d kernel (one grid step = one (batch, H-tile))
# --------------------------------------------------------------------------
def _nb1d_kernel(x_ref,                                   # (1,1,Hin,W,C) f32
                 w1_ref, w2_ref, w3_ref, w4_ref,          # (3C, C) bf16, resident
                 b1_ref, s2_ref, h2_ref, b3_ref, s4_ref, h4_ref,  # (1, C) f32
                 o_ref,                                   # (1, TH, W, C) f32
                 *, TH, d, H, W, C, activation, leakage, pack_taps):
    halo = d + 1
    R1 = TH + 2 * d                      # rows of t1/t2 needed per tile

    def act(v):
        if activation == 'relu':
            return jnp.maximum(v, 0.0)
        if activation == 'leaky_relu':
            return jnp.where(v > 0, v, leakage * v)
        return v

    def conv(taps, w_ref):
        """taps: list of 3 (rows, W, C) f32 arrays -> (rows*W, C) f32 accum."""
        if pack_taps:
            # K-packed: one (rows, 3C) @ (3C, C) MXU matmul, single bf16 cast.
            lhs = jnp.concatenate([t.reshape(-1, C) for t in taps],
                                  axis=-1).astype(jnp.bfloat16)
            return jnp.dot(lhs, w_ref[...], preferred_element_type=jnp.float32)
        acc = None
        for k, t in enumerate(taps):     # v5e path: 3 full-depth K=C matmuls
            p = jnp.dot(t.reshape(-1, C).astype(jnp.bfloat16),
                        w_ref[k * C:(k + 1) * C, :],
                        preferred_element_type=jnp.float32)
            acc = p if acc is None else acc + p
        return acc

    def w_taps(t, dd):
        # Taps at W offsets -dd, 0, +dd via XLU sublane rotation + edge mask
        # (emulates the conv's zero padding in W without unaligned slices).
        col = lax.broadcasted_iota(jnp.int32, (1, W, 1), 1)
        left = jnp.where(col >= dd, pltpu.roll(t, dd, 1), 0.0)          # in[w-dd]
        right = jnp.where(col < W - dd, pltpu.roll(t, W - dd, 1), 0.0)  # in[w+dd]
        return [left, t, right]

    xb = x_ref[0, 0]                     # (Hin, W, C) f32, halo'd input tile

    # ---- conv3x1_1 (+bias, act): H taps -1, 0, +1 --------------------------
    t1 = act(conv([xb[0:R1], xb[1:R1 + 1], xb[2:R1 + 2]], w1_ref)
             + b1_ref[...]).reshape(R1, W, C)

    # ---- conv1x3_1 + folded BN1 + act: W taps -1, 0, +1 --------------------
    t2 = act(conv(w_taps(t1, 1), w2_ref) * s2_ref[...] + h2_ref[...]
             ).reshape(R1, W, C)

    # Rows outside the image must behave like the zero padding of the dilated
    # 3x1 conv below.  Cheap (R1,1,1) iota mask (interior tiles: all-true).
    g = (pl.program_id(1) * TH - d
         + lax.broadcasted_iota(jnp.int32, (R1, 1, 1), 0))
    t2 = jnp.where((g >= 0) & (g < H), t2, 0.0)

    # ---- conv3x1_2 (dilated, +bias, act): H taps -d, 0, +d -----------------
    t3 = act(conv([t2[0:TH], t2[d:d + TH], t2[2 * d:2 * d + TH]], w3_ref)
             + b3_ref[...]).reshape(TH, W, C)

    # ---- conv1x3_2 (dilated) + folded BN2 + residual + act -----------------
    acc = conv(w_taps(t3, d), w4_ref)                      # (TH*W, C) f32
    resid = xb[halo:halo + TH].reshape(TH * W, C)          # residual (f32)
    out = act(acc * s4_ref[...] + h4_ref[...] + resid)
    o_ref[...] = out.reshape(1, TH, W, C)


# --------------------------------------------------------------------------
# VMEM sizing helpers
# --------------------------------------------------------------------------
def _vmem_estimate(TH, Hin, W, C):
    f32, bf16 = 4, 2
    x_blk = Hin * W * C * f32            # input block (double-buffered)
    o_blk = TH * W * C * f32             # output block (double-buffered)
    weights = 4 * 3 * C * C * bf16
    R1 = Hin - 2
    work = R1 * W * C * (4 * f32 + 6 * bf16)   # xb/t1/t2/t3 + taps/packed LHS
    return 2 * (x_blk + o_blk) + 2 * weights + work


def _auto_tile_h(H, W, C, d, budget=32 * 2 ** 20, cap=128):
    # Largest TH (multiple of 8) whose working-set estimate fits the budget.
    # Budget is conservative enough for v7x's 64 MiB per-TC VMEM.
    TH = min(cap, _round_up(max(H, 1), 8))
    while TH > 8 and _vmem_estimate(TH, TH + 2 * (d + 1), W, C) > budget:
        TH -= 8
    return TH


# --------------------------------------------------------------------------
# Parameter construction + one-time weight re-layout (K-packed bf16 matrices)
# --------------------------------------------------------------------------
def _pack_3x1(w):
    # (Cout, Cin, 3, 1) -> (3*Cin, Cout) bf16, tap blocks stacked along K
    return jnp.concatenate([w[:, :, k, 0].T for k in range(3)],
                           axis=0).astype(jnp.bfloat16)


def _pack_1x3(w):
    # (Cout, Cin, 1, 3) -> (3*Cin, Cout) bf16
    return jnp.concatenate([w[:, :, 0, k].T for k in range(3)],
                           axis=0).astype(jnp.bfloat16)


def _bn_fold(bn, conv_bias):
    scale = bn['gamma'] / jnp.sqrt(bn['var'] + EPS)
    shift = bn['beta'] - bn['mean'] * scale + conv_bias * scale
    return scale, shift


def make_nb1d_params(key, chann, dilated, dropprob=0.0,
                     activation='relu', leakage=0.2):
    C = chann
    ks = jax.random.split(key, 16)
    bound = 1.0 / (3.0 * C) ** 0.5   # PyTorch-style fan_in bound for 3x1/1x3

    def u(k, shape):
        return jax.random.uniform(k, shape, jnp.float32, -bound, bound)

    def bn(k0, k1, k2, k3):
        # synthetic (non-trivial) inference-mode BatchNorm statistics
        return {'gamma': 1.0 + 0.1 * jax.random.normal(k0, (C,), jnp.float32),
                'beta': 0.1 * jax.random.normal(k1, (C,), jnp.float32),
                'mean': 0.1 * jax.random.normal(k2, (C,), jnp.float32),
                'var': jax.random.uniform(k3, (C,), jnp.float32, 0.5, 1.5)}

    raw = {
        'w31_1': u(ks[0], (C, C, 3, 1)), 'b31_1': u(ks[1], (C,)),
        'w13_1': u(ks[2], (C, C, 1, 3)), 'b13_1': u(ks[3], (C,)),
        'w31_2': u(ks[4], (C, C, 3, 1)), 'b31_2': u(ks[5], (C,)),
        'w13_2': u(ks[6], (C, C, 1, 3)), 'b13_2': u(ks[7], (C,)),
        'bn1': bn(ks[8], ks[9], ks[10], ks[11]),
        'bn2': bn(ks[12], ks[13], ks[14], ks[15]),
    }

    s2, h2 = _bn_fold(raw['bn1'], raw['b13_1'])
    s4, h4 = _bn_fold(raw['bn2'], raw['b13_2'])
    prep = {
        'w1': _pack_3x1(raw['w31_1']), 'w2': _pack_1x3(raw['w13_1']),
        'w3': _pack_3x1(raw['w31_2']), 'w4': _pack_1x3(raw['w13_2']),
        'b1': raw['b31_1'].reshape(1, C).astype(jnp.float32),
        's2': s2.reshape(1, C).astype(jnp.float32),
        'h2': h2.reshape(1, C).astype(jnp.float32),
        'b3': raw['b31_2'].reshape(1, C).astype(jnp.float32),
        's4': s4.reshape(1, C).astype(jnp.float32),
        'h4': h4.reshape(1, C).astype(jnp.float32),
    }
    return {'chann': int(C), 'dilated': int(dilated),
            'dropprob': float(dropprob), 'activation': activation,
            'leakage': float(leakage), 'raw': raw, 'prep': prep}


# --------------------------------------------------------------------------
# Forward wrapper (NCHW in / NCHW out)
# --------------------------------------------------------------------------
def nb1d_forward(params, x_nchw, tile_h=None, pack_taps=True):
    """Fused Pallas forward of one non_bottleneck_1d block.

    pack_taps=True  -> one (rows, 3C)@(3C, C) matmul per conv (v6e / v7x).
    pack_taps=False -> three (rows, C)@(C, C) matmuls per conv (v5e).
    """
    prep = params['prep']
    C = params['chann']
    d = params['dilated']

    N, Cx, H, W = x_nchw.shape
    assert Cx == C
    assert 1 <= d < W, "kernel requires dilation < W"

    halo = d + 1
    TH = _auto_tile_h(H, W, C, d) if tile_h is None else tile_h
    assert TH % 8 == 0
    nH = -(-H // TH)
    H_ceil = nH * TH
    Hin = TH + 2 * halo

    # NCHW -> NHWC (C in the lane dim), zero-pad H by halo + up to tile size,
    # then expose pre-halo'd row tiles so the kernel input is a plain
    # auto-pipelined BlockSpec (duplicates 2*halo rows per tile in HBM).
    x = jnp.transpose(x_nchw, (0, 2, 3, 1)).astype(jnp.float32)
    x_pad = jnp.pad(x, ((0, 0), (halo, halo + H_ceil - H), (0, 0), (0, 0)))
    row_idx = jnp.arange(nH)[:, None] * TH + jnp.arange(Hin)[None, :]
    x_tiles = x_pad[:, row_idx]                         # (N, nH, Hin, W, C)

    kernel = functools.partial(
        _nb1d_kernel, TH=TH, d=d, H=H, W=W, C=C,
        activation=params['activation'], leakage=params['leakage'],
        pack_taps=pack_taps)

    w_spec = pl.BlockSpec((3 * C, C), lambda n, i: (0, 0))   # resident
    vec_spec = pl.BlockSpec((1, C), lambda n, i: (0, 0))     # resident

    grid_spec = pltpu.PrefetchScalarGridSpec(
        num_scalar_prefetch=0,
        grid=(N, nH),
        in_specs=[
            pl.BlockSpec((1, 1, Hin, W, C), lambda n, i: (n, i, 0, 0, 0)),
            w_spec, w_spec, w_spec, w_spec,
            vec_spec, vec_spec, vec_spec, vec_spec, vec_spec, vec_spec,
        ],
        out_specs=pl.BlockSpec((1, TH, W, C), lambda n, i: (n, i, 0, 0)),
    )

    est = _vmem_estimate(TH, Hin, W, C)
    vmem_limit = int(min(56 * 2 ** 20, max(32 * 2 ** 20, 2 * est)))

    flops = int(2 * 4 * 3 * N * H_ceil * W * C * C)
    bytes_accessed = int(x_tiles.size * 4 + N * H_ceil * W * C * 4
                         + 4 * 3 * C * C * 2)
    cost = pl.CostEstimate(flops=flops, transcendentals=0,
                           bytes_accessed=bytes_accessed)

    out = pl.pallas_call(
        kernel,
        out_shape=jax.ShapeDtypeStruct((N, H_ceil, W, C), jnp.float32),
        grid_spec=grid_spec,
        compiler_params=pltpu.CompilerParams(
            dimension_semantics=("parallel", "parallel"),
            vmem_limit_bytes=vmem_limit),
        cost_estimate=cost,
    )(x_tiles, prep['w1'], prep['w2'], prep['w3'], prep['w4'],
      prep['b1'], prep['s2'], prep['h2'], prep['b3'], prep['s4'], prep['h4'])

    out = out[:, :H]                       # drop rows from H-tile padding
    return jnp.transpose(out, (0, 3, 1, 2))


# --------------------------------------------------------------------------
# Pure-JAX reference (mirrors the PyTorch forward) for correctness checking
# --------------------------------------------------------------------------
def _act_ref(v, activation, leakage):
    if activation == 'relu':
        return jnp.maximum(v, 0.0)
    if activation == 'leaky_relu':
        return jnp.where(v > 0, v, leakage * v)
    return v


def _conv_ref(x, w, b, dil_hw, pad_hw):
    y = lax.conv_general_dilated(
        x, w, window_strides=(1, 1),
        padding=[(pad_hw[0], pad_hw[0]), (pad_hw[1], pad_hw[1])],
        rhs_dilation=dil_hw,
        dimension_numbers=('NCHW', 'OIHW', 'NCHW'))
    return y + b.reshape(1, -1, 1, 1)


def _bn_ref(x, bn):
    s = bn['gamma'] / jnp.sqrt(bn['var'] + EPS)
    return ((x - bn['mean'].reshape(1, -1, 1, 1)) * s.reshape(1, -1, 1, 1)
            + bn['beta'].reshape(1, -1, 1, 1))


def nb1d_reference(params, x_nchw):
    raw = params['raw']
    d = params['dilated']
    act = lambda v: _act_ref(v, params['activation'], params['leakage'])
    y = act(_conv_ref(x_nchw, raw['w31_1'], raw['b31_1'], (1, 1), (1, 0)))
    y = act(_bn_ref(_conv_ref(y, raw['w13_1'], raw['b13_1'], (1, 1), (0, 1)),
                    raw['bn1']))
    y = act(_conv_ref(y, raw['w31_2'], raw['b31_2'], (d, 1), (d, 0)))
    y = _bn_ref(_conv_ref(y, raw['w13_2'], raw['b13_2'], (1, d), (0, d)),
                raw['bn2'])
    # Dropout2d: identity (eval mode / p = 0)
    return act(y + x_nchw)


# --------------------------------------------------------------------------
if __name__ == "__main__":
    key = jax.random.PRNGKey(0)

    # (N, C, H, W, dilation, activation, tile_h) -- small shapes; exercises
    # dilation > 1, non-divisible H (tile padding) and a forced multi-tile
    # (nH > 1) grid with edge masking.
    configs = [
        (2, 64, 16, 16, 1, 'relu', None),
        (2, 128, 12, 16, 4, 'leaky_relu', None),
        (1, 64, 24, 16, 2, 'relu', 8),
    ]

    for cfg_idx, (N, C, H, W, dil, act, th) in enumerate(configs):
        kp, kx = jax.random.split(jax.random.fold_in(key, cfg_idx))
        params = make_nb1d_params(kp, C, dil, dropprob=0.0, activation=act)
        x = jax.random.normal(kx, (N, C, H, W), jnp.float32)

        fwd = jax.jit(functools.partial(nb1d_forward, params, tile_h=th))
        out = fwd(x)
        jax.block_until_ready(out)

        assert out.shape == (N, C, H, W)
        assert bool(jnp.all(jnp.isfinite(out)))

        ref = nb1d_reference(params, x)
        err = float(jnp.max(jnp.abs(out - ref)))
        assert err < 7.5e-2, f"config {cfg_idx}: max abs err {err}"

    print("KERNEL_OK")
</pallas_src>

<mosaic_0001>
module attributes {stable_mosaic.version = 11 : i64} {
  func.func @_nb1d_kernel(%arg0: i32, %arg1: i32, %arg2: memref<1x1x20x16x64xf32, #tpu.memory_space<vmem>>, %arg3: memref<192x64xbf16, #tpu.memory_space<vmem>>, %arg4: memref<192x64xbf16, #tpu.memory_space<vmem>>, %arg5: memref<192x64xbf16, #tpu.memory_space<vmem>>, %arg6: memref<192x64xbf16, #tpu.memory_space<vmem>>, %arg7: memref<1x64xf32, #tpu.memory_space<vmem>>, %arg8: memref<1x64xf32, #tpu.memory_space<vmem>>, %arg9: memref<1x64xf32, #tpu.memory_space<vmem>>, %arg10: memref<1x64xf32, #tpu.memory_space<vmem>>, %arg11: memref<1x64xf32, #tpu.memory_space<vmem>>, %arg12: memref<1x64xf32, #tpu.memory_space<vmem>>, %arg13: memref<1x16x16x64xf32, #tpu.memory_space<vmem>>) attributes {dimension_semantics = [#tpu.dimension_semantics<parallel>, #tpu.dimension_semantics<parallel>], iteration_bounds = array<i64: 2, 1>, scalar_prefetch = 0 : i64, scratch_operands = 0 : i64, tpu.core_type = #tpu.core_type<tc>, window_params = [{transform_indices = @transform_0, window_bounds = array<i64: 1, 1, 20, 16, 64>}, {pipeline_mode = #tpu.pipeline_mode<synchronous>, transform_indices = @transform_1, window_bounds = array<i64: 192, 64>}, {pipeline_mode = #tpu.pipeline_mode<synchronous>, transform_indices = @transform_2, window_bounds = array<i64: 192, 64>}, {pipeline_mode = #tpu.pipeline_mode<synchronous>, transform_indices = @transform_3, window_bounds = array<i64: 192, 64>}, {pipeline_mode = #tpu.pipeline_mode<synchronous>, transform_indices = @transform_4, window_bounds = array<i64: 192, 64>}, {pipeline_mode = #tpu.pipeline_mode<synchronous>, transform_indices = @transform_5, window_bounds = array<i64: 1, 64>}, {pipeline_mode = #tpu.pipeline_mode<synchronous>, transform_indices = @transform_6, window_bounds = array<i64: 1, 64>}, {pipeline_mode = #tpu.pipeline_mode<synchronous>, transform_indices = @transform_7, window_bounds = array<i64: 1, 64>}, {pipeline_mode = #tpu.pipeline_mode<synchronous>, transform_indices = @transform_8, window_bounds = array<i64: 1, 64>}, {pipeline_mode = #tpu.pipeline_mode<synchronous>, transform_indices = @transform_9, window_bounds = array<i64: 1, 64>}, {pipeline_mode = #tpu.pipeline_mode<synchronous>, transform_indices = @transform_10, window_bounds = array<i64: 1, 64>}, {transform_indices = @transform_11, window_bounds = array<i64: 1, 16, 16, 64>}]} {
    %c0 = arith.constant 0 : index
    %c0_0 = arith.constant 0 : index
    %c0_1 = arith.constant 0 : index
    %c0_2 = arith.constant 0 : index
    %c0_3 = arith.constant 0 : index
    %0 = vector.load %arg2[%c0, %c0_0, %c0_1, %c0_2, %c0_3] : memref<1x1x20x16x64xf32, #tpu.memory_space<vmem>>, vector<1x1x20x16x64xf32>
    %1 = vector.shape_cast %0 : vector<1x1x20x16x64xf32> to vector<20x16x64xf32>
    %2 = vector.extract_strided_slice %1 {offsets = [0, 0, 0], sizes = [18, 16, 64], strides = [1, 1, 1]} : vector<20x16x64xf32> to vector<18x16x64xf32>
    %3 = vector.extract_strided_slice %1 {offsets = [1, 0, 0], sizes = [18, 16, 64], strides = [1, 1, 1]} : vector<20x16x64xf32> to vector<18x16x64xf32>
    %4 = vector.extract_strided_slice %1 {offsets = [2, 0, 0], sizes = [18, 16, 64], strides = [1, 1, 1]} : vector<20x16x64xf32> to vector<18x16x64xf32>
    %5 = vector.shape_cast %2 : vector<18x16x64xf32> to vector<288x64xf32>
    %6 = vector.shape_cast %3 : vector<18x16x64xf32> to vector<288x64xf32>
    %7 = vector.shape_cast %4 : vector<18x16x64xf32> to vector<288x64xf32>
    %8 = tpu.concatenate %5, %6, %7 in 1 : vector<288x64xf32>, vector<288x64xf32>, vector<288x64xf32> -> vector<288x192xf32>
    %9 = arith.truncf %8 : vector<288x192xf32> to vector<288x192xbf16>
    %c0_4 = arith.constant 0 : index
    %c0_5 = arith.constant 0 : index
    %10 = vector.load %arg3[%c0_4, %c0_5] : memref<192x64xbf16, #tpu.memory_space<vmem>>, vector<192x64xbf16>
    %cst = arith.constant dense<0.000000e+00> : vector<288x64xf32>
    %11 = tpu.matmul %9, %10, %cst {dimension_numbers = #tpu.dot_dimension_numbers<[1], [0], [0], [1], [0, 0, 1, 1], [], []>} : vector<288x192xbf16>, vector<192x64xbf16>, vector<288x64xf32> -> vector<288x64xf32>
    %c0_6 = arith.constant 0 : index
    %c0_7 = arith.constant 0 : index
    %12 = vector.load %arg7[%c0_6, %c0_7] : memref<1x64xf32, #tpu.memory_space<vmem>>, vector<1x64xf32>
    %13 = vector.broadcast %12 : vector<1x64xf32> to vector<288x64xf32>
    %14 = arith.addf %11, %13 : vector<288x64xf32>
    %cst_8 = arith.constant 0.000000e+00 : f32
    %15 = vector.broadcast %cst_8 : f32 to vector<288x64xf32>
    %16 = arith.maximumf %14, %15 : vector<288x64xf32>
    %17 = vector.shape_cast %16 : vector<288x64xf32> to vector<18x16x64xf32>
    %18 = tpu.iota {dimensions = array<i32: 1>} : vector<1x16x1xi32>
    %c1_i32 = arith.constant 1 : i32
    %19 = vector.broadcast %c1_i32 : i32 to vector<1x16x1xi32>
    %20 = arith.cmpi sge, %18, %19 : vector<1x16x1xi32>
    %c1_i32_9 = arith.constant 1 : i32
    %21 = tpu.dynamic_rotate %17 by %c1_i32_9 dim 1 : vector<18x16x64xf32>, i32 -> vector<18x16x64xf32>
    %cst_10 = arith.constant 0.000000e+00 : f32
    %22 = vector.shape_cast %20 : vector<1x16x1xi1> to vector<1x16x1xi1>
    %23 = vector.broadcast %22 : vector<1x16x1xi1> to vector<18x16x64xi1>
    %24 = vector.broadcast %cst_10 : f32 to vector<18x16x64xf32>
    %25 = arith.select %23, %21, %24 : vector<18x16x64xi1>, vector<18x16x64xf32>
    %c15_i32 = arith.constant 15 : i32
    %26 = vector.broadcast %c15_i32 : i32 to vector<1x16x1xi32>
    %27 = arith.cmpi slt, %18, %26 : vector<1x16x1xi32>
    %c15_i32_11 = arith.constant 15 : i32
    %28 = tpu.dynamic_rotate %17 by %c15_i32_11 dim 1 : vector<18x16x64xf32>, i32 -> vector<18x16x64xf32>
    %cst_12 = arith.constant 0.000000e+00 : f32
    %29 = vector.shape_cast %27 : vector<1x16x1xi1> to vector<1x16x1xi1>
    %30 = vector.broadcast %29 : vector<1x16x1xi1> to vector<18x16x64xi1>
    %31 = vector.broadcast %cst_12 : f32 to vector<18x16x64xf32>
    %32 = arith.select %30, %28, %31 : vector<18x16x64xi1>, vector<18x16x64xf32>
    %33 = vector.shape_cast %25 : vector<18x16x64xf32> to vector<288x64xf32>
    %34 = vector.shape_cast %17 : vector<18x16x64xf32> to vector<288x64xf32>
    %35 = vector.shape_cast %32 : vector<18x16x64xf32> to vector<288x64xf32>
    %36 = tpu.concatenate %33, %34, %35 in 1 : vector<288x64xf32>, vector<288x64xf32>, vector<288x64xf32> -> vector<288x192xf32>
    %37 = arith.truncf %36 : vector<288x192xf32> to vector<288x192xbf16>
    %c0_13 = arith.constant 0 : index
    %c0_14 = arith.constant 0 : index
    %38 = vector.load %arg4[%c0_13, %c0_14] : memref<192x64xbf16, #tpu.memory_space<vmem>>, vector<192x64xbf16>
    %cst_15 = arith.constant dense<0.000000e+00> : vector<288x64xf32>
    %39 = tpu.matmul %37, %38, %cst_15 {dimension_numbers = #tpu.dot_dimension_numbers<[1], [0], [0], [1], [0, 0, 1, 1], [], []>} : vector<288x192xbf16>, vector<192x64xbf16>, vector<288x64xf32> -> vector<288x64xf32>
    %c0_16 = arith.constant 0 : index
    %c0_17 = arith.constant 0 : index
    %40 = vector.load %arg8[%c0_16, %c0_17] : memref<1x64xf32, #tpu.memory_space<vmem>>, vector<1x64xf32>
    %41 = vector.broadcast %40 : vector<1x64xf32> to vector<288x64xf32>
    %42 = arith.mulf %39, %41 : vector<288x64xf32>
    %c0_18 = arith.constant 0 : index
    %c0_19 = arith.constant 0 : index
    %43 = vector.load %arg9[%c0_18, %c0_19] : memref<1x64xf32, #tpu.memory_space<vmem>>, vector<1x64xf32>
    %44 = vector.broadcast %43 : vector<1x64xf32> to vector<288x64xf32>
    %45 = arith.addf %42, %44 : vector<288x64xf32>
    %cst_20 = arith.constant 0.000000e+00 : f32
    %46 = vector.broadcast %cst_20 : f32 to vector<288x64xf32>
    %47 = arith.maximumf %45, %46 : vector<288x64xf32>
    %48 = vector.shape_cast %47 : vector<288x64xf32> to vector<18x16x64xf32>
    %c16_i32 = arith.constant 16 : i32
    %49 = arith.muli %arg1, %c16_i32 : i32
    %c1_i32_21 = arith.constant 1 : i32
    %50 = arith.subi %49, %c1_i32_21 : i32
    %51 = tpu.iota {dimensions = array<i32: 0>} : vector<18x1x1xi32>
    %52 = vector.broadcast %50 : i32 to vector<18x1x1xi32>
    %53 = arith.addi %52, %51 : vector<18x1x1xi32>
    %c0_i32 = arith.constant 0 : i32
    %54 = vector.broadcast %c0_i32 : i32 to vector<18x1x1xi32>
    %55 = arith.cmpi sge, %53, %54 : vector<18x1x1xi32>
    %c16_i32_22 = arith.constant 16 : i32
    %56 = vector.broadcast %c16_i32_22 : i32 to vector<18x1x1xi32>
    %57 = arith.cmpi slt, %53, %56 : vector<18x1x1xi32>
    %58 = arith.andi %55, %57 : vector<18x1x1xi1>
    %cst_23 = arith.constant 0.000000e+00 : f32
    %59 = vector.shape_cast %58 : vector<18x1x1xi1> to vector<18x1x1xi1>
    %60 = vector.broadcast %59 : vector<18x1x1xi1> to vector<18x16x64xi1>
    %61 = vector.broadcast %cst_23 : f32 to vector<18x16x64xf32>
    %62 = arith.select %60, %48, %61 : vector<18x16x64xi1>, vector<18x16x64xf32>
    %63 = vector.extract_strided_slice %62 {offsets = [0, 0, 0], sizes = [16, 16, 64], strides = [1, 1, 1]} : vector<18x16x64xf32> to vector<16x16x64xf32>
    %64 = vector.extract_strided_slice %62 {offsets = [1, 0, 0], sizes = [16, 16, 64], strides = [1, 1, 1]} : vector<18x16x64xf32> to vector<16x16x64xf32>
    %65 = vector.extract_strided_slice %62 {offsets = [2, 0, 0], sizes = [16, 16, 64], strides = [1, 1, 1]} : vector<18x16x64xf32> to vector<16x16x64xf32>
    %66 = vector.shape_cast %63 : vector<16x16x64xf32> to vector<256x64xf32>
    %67 = vector.shape_cast %64 : vector<16x16x64xf32> to vector<256x64xf32>
    %68 = vector.shape_cast %65 : vector<16x16x64xf32> to vector<256x64xf32>
    %69 = tpu.concatenate %66, %67, %68 in 1 : vector<256x64xf32>, vector<256x64xf32>, vector<256x64xf32> -> vector<256x192xf32>
    %70 = arith.truncf %69 : vector<256x192xf32> to vector<256x192xbf16>
    %c0_24 = arith.constant 0 : index
    %c0_25 = arith.constant 0 : index
    %71 = vector.load %arg5[%c0_24, %c0_25] : memref<192x64xbf16, #tpu.memory_space<vmem>>, vector<192x64xbf16>
    %cst_26 = arith.constant dense<0.000000e+00> : vector<256x64xf32>
    %72 = tpu.matmul %70, %71, %cst_26 {dimension_numbers = #tpu.dot_dimension_numbers<[1], [0], [0], [1], [0, 0, 1, 1], [], []>} : vector<256x192xbf16>, vector<192x64xbf16>, vector<256x64xf32> -> vector<256x64xf32>
    %c0_27 = arith.constant 0 : index
    %c0_28 = arith.constant 0 : index
    %73 = vector.load %arg10[%c0_27, %c0_28] : memref<1x64xf32, #tpu.memory_space<vmem>>, vector<1x64xf32>
    %74 = vector.broadcast %73 : vector<1x64xf32> to vector<256x64xf32>
    %75 = arith.addf %72, %74 : vector<256x64xf32>
    %cst_29 = arith.constant 0.000000e+00 : f32
    %76 = vector.broadcast %cst_29 : f32 to vector<256x64xf32>
    %77 = arith.maximumf %75, %76 : vector<256x64xf32>
    %78 = vector.shape_cast %77 : vector<256x64xf32> to vector<16x16x64xf32>
    %79 = tpu.iota {dimensions = array<i32: 1>} : vector<1x16x1xi32>
    %c1_i32_30 = arith.constant 1 : i32
    %80 = vector.broadcast %c1_i32_30 : i32 to vector<1x16x1xi32>
    %81 = arith.cmpi sge, %79, %80 : vector<1x16x1xi32>
    %c1_i32_31 = arith.constant 1 : i32
    %82 = tpu.dynamic_rotate %78 by %c1_i32_31 dim 1 : vector<16x16x64xf32>, i32 -> vector<16x16x64xf32>
    %cst_32 = arith.constant 0.000000e+00 : f32
    %83 = vector.shape_cast %81 : vector<1x16x1xi1> to vector<1x16x1xi1>
    %84 = vector.broadcast %83 : vector<1x16x1xi1> to vector<16x16x64xi1>
    %85 = vector.broadcast %cst_32 : f32 to vector<16x16x64xf32>
    %86 = arith.select %84, %82, %85 : vector<16x16x64xi1>, vector<16x16x64xf32>
    %c15_i32_33 = arith.constant 15 : i32
    %87 = vector.broadcast %c15_i32_33 : i32 to vector<1x16x1xi32>
    %88 = arith.cmpi slt, %79, %87 : vector<1x16x1xi32>
    %c15_i32_34 = arith.constant 15 : i32
    %89 = tpu.dynamic_rotate %78 by %c15_i32_34 dim 1 : vector<16x16x64xf32>, i32 -> vector<16x16x64xf32>
    %cst_35 = arith.constant 0.000000e+00 : f32
    %90 = vector.shape_cast %88 : vector<1x16x1xi1> to vector<1x16x1xi1>
    %91 = vector.broadcast %90 : vector<1x16x1xi1> to vector<16x16x64xi1>
    %92 = vector.broadcast %cst_35 : f32 to vector<16x16x64xf32>
    %93 = arith.select %91, %89, %92 : vector<16x16x64xi1>, vector<16x16x64xf32>
    %94 = vector.shape_cast %86 : vector<16x16x64xf32> to vector<256x64xf32>
    %95 = vector.shape_cast %78 : vector<16x16x64xf32> to vector<256x64xf32>
    %96 = vector.shape_cast %93 : vector<16x16x64xf32> to vector<256x64xf32>
    %97 = tpu.concatenate %94, %95, %96 in 1 : vector<256x64xf32>, vector<256x64xf32>, vector<256x64xf32> -> vector<256x192xf32>
    %98 = arith.truncf %97 : vector<256x192xf32> to vector<256x192xbf16>
    %c0_36 = arith.constant 0 : index
    %c0_37 = arith.constant 0 : index
    %99 = vector.load %arg6[%c0_36, %c0_37] : memref<192x64xbf16, #tpu.memory_space<vmem>>, vector<192x64xbf16>
    %cst_38 = arith.constant dense<0.000000e+00> : vector<256x64xf32>
    %100 = tpu.matmul %98, %99, %cst_38 {dimension_numbers = #tpu.dot_dimension_numbers<[1], [0], [0], [1], [0, 0, 1, 1], [], []>} : vector<256x192xbf16>, vector<192x64xbf16>, vector<256x64xf32> -> vector<256x64xf32>
    %101 = vector.extract_strided_slice %1 {offsets = [2, 0, 0], sizes = [16, 16, 64], strides = [1, 1, 1]} : vector<20x16x64xf32> to vector<16x16x64xf32>
    %102 = vector.shape_cast %101 : vector<16x16x64xf32> to vector<256x64xf32>
    %c0_39 = arith.constant 0 : index
    %c0_40 = arith.constant 0 : index
    %103 = vector.load %arg11[%c0_39, %c0_40] : memref<1x64xf32, #tpu.memory_space<vmem>>, vector<1x64xf32>
    %104 = vector.broadcast %103 : vector<1x64xf32> to vector<256x64xf32>
    %105 = arith.mulf %100, %104 : vector<256x64xf32>
    %c0_41 = arith.constant 0 : index
    %c0_42 = arith.constant 0 : index
    %106 = vector.load %arg12[%c0_41, %c0_42] : memref<1x64xf32, #tpu.memory_space<vmem>>, vector<1x64xf32>
    %107 = vector.broadcast %106 : vector<1x64xf32> to vector<256x64xf32>
    %108 = arith.addf %105, %107 : vector<256x64xf32>
    %109 = arith.addf %108, %102 : vector<256x64xf32>
    %cst_43 = arith.constant 0.000000e+00 : f32
    %110 = vector.broadcast %cst_43 : f32 to vector<256x64xf32>
    %111 = arith.maximumf %109, %110 : vector<256x64xf32>
    %112 = vector.shape_cast %111 : vector<256x64xf32> to vector<1x16x16x64xf32>
    %c0_44 = arith.constant 0 : index
    %c0_45 = arith.constant 0 : index
    %c0_46 = arith.constant 0 : index
    %c0_47 = arith.constant 0 : index
    %113 = vector.load %arg13[%c0_44, %c0_45, %c0_46, %c0_47] : memref<1x16x16x64xf32, #tpu.memory_space<vmem>>, vector<1x16x16x64xf32>
    tpu.vector_store %arg13[%c0_44, %c0_45, %c0_46, %c0_47], %112 {strides = array<i32>} : memref<1x16x16x64xf32, #tpu.memory_space<vmem>>, vector<1x16x16x64xf32>,
    return
  }
  func.func @transform_0(%arg0: i32, %arg1: i32) -> (i32, i32, i32, i32, i32) {
    %c0_i32 = arith.constant 0 : i32
    %c0_i32_0 = arith.constant 0 : i32
    %c0_i32_1 = arith.constant 0 : i32
    %c0_i32_2 = arith.constant 0 : i32
    return %arg0, %arg1, %c0_i32, %c0_i32_0, %c0_i32_1 : i32, i32, i32, i32, i32
  }
  func.func @transform_1(%arg0: i32, %arg1: i32) -> (i32, i32) {
    %c0_i32 = arith.constant 0 : i32
    %c0_i32_0 = arith.constant 0 : i32
    %c0_i32_1 = arith.constant 0 : i32
    return %c0_i32, %c0_i32_0 : i32, i32
  }
  func.func @transform_2(%arg0: i32, %arg1: i32) -> (i32, i32) {
    %c0_i32 = arith.constant 0 : i32
    %c0_i32_0 = arith.constant 0 : i32
    %c0_i32_1 = arith.constant 0 : i32
    return %c0_i32, %c0_i32_0 : i32, i32
  }
  func.func @transform_3(%arg0: i32, %arg1: i32) -> (i32, i32) {
    %c0_i32 = arith.constant 0 : i32
    %c0_i32_0 = arith.constant 0 : i32
    %c0_i32_1 = arith.constant 0 : i32
    return %c0_i32, %c0_i32_0 : i32, i32
  }
  func.func @transform_4(%arg0: i32, %arg1: i32) -> (i32, i32) {
    %c0_i32 = arith.constant 0 : i32
    %c0_i32_0 = arith.constant 0 : i32
    %c0_i32_1 = arith.constant 0 : i32
    return %c0_i32, %c0_i32_0 : i32, i32
  }
  func.func @transform_5(%arg0: i32, %arg1: i32) -> (i32, i32) {
    %c0_i32 = arith.constant 0 : i32
    %c0_i32_0 = arith.constant 0 : i32
    %c0_i32_1 = arith.constant 0 : i32
    return %c0_i32, %c0_i32_0 : i32, i32
  }
  func.func @transform_6(%arg0: i32, %arg1: i32) -> (i32, i32) {
    %c0_i32 = arith.constant 0 : i32
    %c0_i32_0 = arith.constant 0 : i32
    %c0_i32_1 = arith.constant 0 : i32
    return %c0_i32, %c0_i32_0 : i32, i32
  }
  func.func @transform_7(%arg0: i32, %arg1: i32) -> (i32, i32) {
    %c0_i32 = arith.constant 0 : i32
    %c0_i32_0 = arith.constant 0 : i32
    %c0_i32_1 = arith.constant 0 : i32
    return %c0_i32, %c0_i32_0 : i32, i32
  }
  func.func @transform_8(%arg0: i32, %arg1: i32) -> (i32, i32) {
    %c0_i32 = arith.constant 0 : i32
    %c0_i32_0 = arith.constant 0 : i32
    %c0_i32_1 = arith.constant 0 : i32
    return %c0_i32, %c0_i32_0 : i32, i32
  }
  func.func @transform_9(%arg0: i32, %arg1: i32) -> (i32, i32) {
    %c0_i32 = arith.constant 0 : i32
    %c0_i32_0 = arith.constant 0 : i32
    %c0_i32_1 = arith.constant 0 : i32
    return %c0_i32, %c0_i32_0 : i32, i32
  }
  func.func @transform_10(%arg0: i32, %arg1: i32) -> (i32, i32) {
    %c0_i32 = arith.constant 0 : i32
    %c0_i32_0 = arith.constant 0 : i32
    %c0_i32_1 = arith.constant 0 : i32
    return %c0_i32, %c0_i32_0 : i32, i32
  }
  func.func @transform_11(%arg0: i32, %arg1: i32) -> (i32, i32, i32, i32) {
    %c0_i32 = arith.constant 0 : i32
    %c0_i32_0 = arith.constant 0 : i32
    %c0_i32_1 = arith.constant 0 : i32
    return %arg0, %arg1, %c0_i32, %c0_i32_0 : i32, i32, i32, i32
  }
}

</mosaic_0001>

<bundles_post_ra>
// kernel: nb1d_forward.1
= control target key start
LH: loop header
LB: loop body
LE: loop exit
PB: predicated region body
PF: predicated region fallthrough
CT: control target
= control target key end

     0   :  { %s6546_s0 = inlined_call_operand.vmem [shape: f32[2,1,20,16,64], index: 0, kind: input, shape index: {}]   ;;  %s6547_s1 = inlined_call_operand.vmem [shape: bf16[192,64], index: 1, kind: input, shape index: {}]   ;;  %s6548_s2 = inlined_call_operand.vmem [shape: bf16[192,64], index: 2, kind: input, shape index: {}]   ;;  %s6549_s3 = inlined_call_operand.vmem [shape: bf16[192,64], index: 3, kind: input, shape index: {}]   ;;  %s6550_s4 = inlined_call_operand.vmem [shape: bf16[192,64], index: 4, kind: input, shape index: {}]   ;;  %s6551_s5 = inlined_call_operand.vmem [shape: f32[1,64], index: 5, kind: input, shape index: {}]   ;;  %s6552_s6 = inlined_call_operand.vmem [shape: f32[1,64], index: 6, kind: input, shape index: {}]   ;;  %s6553_s7 = inlined_call_operand.vmem [shape: f32[1,64], index: 7, kind: input, shape index: {}]   ;;  %s6554_s8 = inlined_call_operand.vmem [shape: f32[1,64], index: 8, kind: input, shape index: {}]   ;;  %s6555_s9 = inlined_call_operand.vmem [shape: f32[1,64], index: 9, kind: input, shape index: {}]   ;;  %s6556_s10 = inlined_call_operand.vmem [shape: f32[1,64], index: 10, kind: input, shape index: {}]   ;;  %s6557_s11 = inlined_call_operand.hbm [shape: f32[2,16,16,64], index: 11, kind: output, shape index: {}]  }
   0x1   :  { %6573 = sst [smem:[#allocation21_spill]] %s6546_s0 }
   0x2   :  { %16 = vsyncpa [#allocation3], 0 }
   0x3   :  { %18 = vsyncpa [#allocation3 + $0x1], 0  ;;  %s4353_s17 = smov 0   ;;  %s4355_s18 = smov 0  }
   0x4   :  { %s4357_s19 = smov 0   ;;  %s4359_s20 = smov 0  }
   0x5   :  { %s4361_s21 = smov 0   ;;  %s4363_s22 = smov 0  }
   0x6 LB: > { %s3584_s23 = sadd.s32 4294967295, %s4285_s22   ;;  %s3585_s24 = sadd.s32 4294967294, %s4285_s22   ;;  %s4285_s22 = sphi %s4363_s22, %s24_s22   ;;  %s4281_s21 = sphi %s4361_s21, %s6670_s21   ;;  %s4277_s20 = sphi %s4359_s20, %s6669_s20   ;;  %s4273_s19 = sphi %s4357_s19, %s6668_s19   ;;  %s4269_s18 = sphi %s4355_s18, %s6667_s18   ;;  %s4265_s17 = sphi %s4353_s17, %s6666_s17  }
   0x7   : > { %s36_s25 = sadd.s32 1, %s4281_s21  ;;  %s283_s26 = sadd.s32 1, %s4273_s19 }
   0x8   : > { %p38_p0 = scmp.ge.s32.totalorder %s36_s25, 2  ;;  %p293_p1 = scmp.ne.s32.totalorder %s4273_s19, %s4269_s18 }
   0x9   : > { %p294_p2 = scmp.eq.s32.totalorder %s3584_s23, 1  ;;  %p299_p3 = scmp.ne.s32.totalorder %s4269_s18, %s4265_s17 }
   0xa   : > { %s6672_s25 = smov (%p38_p0, %s36_s25), 0  ;;  %p300_p5 = scmp.eq.s32.totalorder %s3585_s24, 1 }
   0xb   : > { %p4393_p4 = por %p294_p2, %p293_p1  ;;  %s278_s28 = ssub.s32 %s4281_s21, %s6672_s25 }
   0xc   : > { %p3588_p6 = scmp.ge.s32.totalorder %s4285_s22, 1  ;;  %p281_p7 = scmp.eq.s32.totalorder %s278_s28, 0 }
   0xd   : > { %p4400_p8 = por %p300_p5, %p299_p3  ;;  %p360_p9 = scmp.lt.s32.totalorder %s4285_s22, 3 }
   0xe   : > { %s4406_s30 = scalar_select %p281_p7, %s4273_s19, %s283_s26  }
   0xf   : > { %p361_p10 = pnand %p3588_p6, %p360_p9 }
  0x11   : > { %364 = sbr.rel (%p361_p10) target bundleno = 1541 (0x605), region = 64 }
  0x18   : > { %p404_p11 = scmp.lt.s32.totalorder %s4277_s20, 1  ;;  %v4124_v0 = vld [vmem:[%s6547_s1] sm:$0xff]   ;;  %v6560_v1 = vmov 0   ;;  %v4125_v2 = vld [vmem:[%s6547_s1 + $0x8] sm:$0xff]   ;;  %s6576_s0 = sld [smem:[#allocation21_spill]]  ;;  %v4126_v3 = vld [vmem:[%s6547_s1 + $0x10] sm:$0xff]  }
  0x19   : > { %829 = vmatprep.subr.bf16.mxu0 %v6560_v1  ;;  %1641 = vmatprep.subr.bf16.mxu1 %v6560_v1  ;;  %v4127_v16 = vld [vmem:[%s6547_s1 + $0x18] sm:$0xff]   ;;  %vm599_vm0 = vcmask 523264   ;;  %v4128_v23 = vld [vmem:[%s6547_s1 + $0x20] sm:$0xff]   ;;  %v4129_v29 = vld [vmem:[%s6547_s1 + $0x28] sm:$0xff]   ;;  %s401_s15 = sand.u32 1, %s4269_s18   ;;  %s3722_s12 = sshll.u32 %s4277_s20, 12 }
  0x1a   : > { %s405_s14 = scalar_select %p404_p11, %s4277_s20, 1  ;;  %830 = vmatpush1.bf16.msra.mxu0 %v4124_v0  ;;  %v4130_v38 = vld [vmem:[%s6547_s1 + $0x30] sm:$0xff]   ;;  %v4131_v43 = vld [vmem:[%s6547_s1 + $0x38] sm:$0xff]   ;;  %v4132_v50 = vld [vmem:[%s6547_s1 + $0x40] sm:$0xff]  }
  0x1b   : > { %831 = vmatprep.subr.bf16.mxu0 %v6560_v1  ;;  %v4133_v57 = vld [vmem:[%s6547_s1 + $0x48] sm:$0xff]   ;;  %v4134_v62 = vld [vmem:[%s6547_s1 + $0x50] sm:$0xff]   ;;  %v4135_v0 = vld [vmem:[%s6547_s1 + $0x58] sm:$0xff]   ;;  %s3589_s24 = sshll.u32 %s401_s15, 8  ;;  %s6490_s16 = scalar_lea.hbm %s6557_s11, %s3722_s12 }
  0x1c   : > { %s3723_s23 = smul.u32 320, %s405_s14  ;;  %s6558_s14 = smov 64   ;;  %vm5611_vm5 = vmneg %vm599_vm0 }
  0x1d   : > { %vm3670_vm6 = vmpackc.low %vm5611_vm5, %vm5611_vm5  ;;  %s6333_s26 = scalar_lea.vmem [#allocation2], %s3589_s24  ;;  %s6500_s20 = scalar_lea.sflag [#allocation3], %s401_s15 }
  0x1e   : > { %s4422_s28 = scalar_lea.vmem %s6576_s0, %s3723_s23  ;;  %832 = vmatpush1.bf16.msra.mxu0 %v4125_v2  ;;  %s3502_s13 = sshll.u32 %s6333_s26, 4  ;;  %s6492_s13 = int_to_ptr.vmem [resolvable:$true] %s3502_s13 }
  0x1f   : > { %v4428_v4 = vld [vmem:[%s4422_s28 + $0x10] sm:$0xff]  ;;  %v4431_v5 = vld [vmem:[%s4422_s28 + $0x18] sm:$0xff]  ;;  %v4434_v6 = vld [vmem:[%s4422_s28 + $0x20] sm:$0xff]  ;;  %833 = vmatprep.subr.bf16.mxu0 %v6560_v1  ;;  %s4290_s23 = smov [#allocation2]  }
  0x20   : > { %v3784_v7 = vpack.i.bf16 %v4431_v5, %v4428_v4  ;;  %v4440_v8 = vld [vmem:[%s4422_s28 + $0x28] sm:$0xff]  ;;  %v4443_v9 = vld [vmem:[%s4422_s28 + $0x30] sm:$0xff]  ;;  %v4446_v10 = vld [vmem:[%s4422_s28 + $0x38] sm:$0xff]  ;;  %s4211_s24 = sshll.u32 %s4290_s23, 4  ;;  %s4212_s24 = int_to_ptr.vmem [resolvable:$false] %s4211_s24 }
  0x21   : > { %v3794_v11 = vpack.i.bf16 %v4446_v10, %v4443_v9  ;;  %v4451_v12 = vld [vmem:[%s4422_s28 + $0x40] sm:$0xff]  ;;  %v4454_v13 = vld [vmem:[%s4422_s28 + $0x48] sm:$0xff]  ;;  %v637_v14 = vpack.c.bf16 %v4440_v8, %v4434_v6  ;;  %v3789_v15 = vpack.i.bf16 %v4440_v8, %v4434_v6  ;;  %v4468_v18 = vld [vmem:[%s4422_s28 + $0x50] sm:$0xff]  ;;  %s4213_s12 = scalar_lea.vmem %s4212_s24, 8192  ;;  %p4214_p1 = scmp.lt.s32.totalorder %s6492_s13, %s4212_s24 }
  0x22   : > { %3785 = vrot.lane.b32.xlu0 %v3784_v7, %s6558_s14  ;;  %834 = vmatpush1.bf16.msra.mxu0 %v4126_v3  ;;  %v3799_v17 = vpack.i.bf16 %v4454_v13, %v4451_v12  ;;  %v4471_v19 = vld [vmem:[%s4422_s28 + $0x58] sm:$0xff]  ;;  %v4475_v20 = vld [vmem:[%s4422_s28 + $0x60] sm:$0xff]  ;;  %v4478_v21 = vld [vmem:[%s4422_s28 + $0x68] sm:$0xff] }
  0x23   : > { %3795 = vrot.lane.b32.xlu1 %v3794_v11, %s6558_s14  ;;  %835 = vmatprep.subr.bf16.mxu0 %v6560_v1  ;;  %v3804_v22 = vpack.i.bf16 %v4471_v19, %v4468_v18  ;;  %v3809_v24 = vpack.i.bf16 %v4478_v21, %v4475_v20  ;;  %v4491_v25 = vld [vmem:[%s4422_s28 + $0x70] sm:$0xff]  ;;  %v4494_v26 = vld [vmem:[%s4422_s28 + $0x78] sm:$0xff]  ;;  %v4497_v27 = vld [vmem:[%s4422_s28 + $0x80] sm:$0xff] }
  0x24   : > { %3604 = vmatprep.mubr.msk.bf16.mxu0 %vm599_vm0, %v637_v14  ;;  %v4501_v28 = vld [vmem:[%s4422_s28 + $0x88] sm:$0xff]  ;;  %v3814_v30 = vpack.i.bf16 %v4494_v26, %v4491_v25  ;;  %v4510_v31 = vld [vmem:[%s4422_s28 + $0x90] sm:$0xff]  ;;  %v4516_v33 = vld [vmem:[%s4422_s28 + $0x98] sm:$0xff] }
  0x25   : > { %v3819_v32 = vpack.i.bf16 %v4501_v28, %v4497_v27  ;;  %v4519_v34 = vld [vmem:[%s4422_s28 + $0xa0] sm:$0xff]  ;;  %v4523_v35 = vld [vmem:[%s4422_s28 + $0xa8] sm:$0xff]  ;;  %v3824_v36 = vpack.i.bf16 %v4516_v33, %v4510_v31  ;;  %v4529_v37 = vld [vmem:[%s4422_s28 + $0xb0] sm:$0xff] }
  0x26   : > { %3790 = vrot.lane.b32.xlu0 %v3789_v15, %s6558_s14  ;;  %836 = vmatpush1.bf16.msra.mxu0 %v4127_v16  ;;  %v3829_v39 = vpack.i.bf16 %v4523_v35, %v4519_v34  ;;  %v4538_v40 = vld [vmem:[%s4422_s28 + $0xb8] sm:$0xff]  ;;  %v4541_v41 = vld [vmem:[%s4422_s28 + $0xc0] sm:$0xff]  ;;  %v4544_v42 = vld [vmem:[%s4422_s28 + $0xc8] sm:$0xff] }
  0x27   : > { %3800 = vrot.lane.b32.xlu1 %v3799_v17, %s6558_s14  ;;  %837 = vmatprep.subr.bf16.mxu0 %v6560_v1  ;;  %v4551_v44 = vld [vmem:[%s4422_s28 + $0xd0] sm:$0xff]  ;;  %v4554_v45 = vld [vmem:[%s4422_s28 + $0xd8] sm:$0xff]  ;;  %v3834_v46 = vpack.i.bf16 %v4538_v40, %v4529_v37  ;;  %v4560_v47 = vld [vmem:[%s4422_s28 + $0xe0] sm:$0xff]  ;;  %v3839_v49 = vpack.i.bf16 %v4544_v42, %v4541_v41  ;;  %v639_v17 = vpack.c.bf16 %v4446_v10, %v4443_v9 }
  0x28   : > { %v4563_v48 = vld [vmem:[%s4422_s28 + $0xe8] sm:$0xff]  ;;  %v4573_v51 = vld [vmem:[%s4422_s28 + $0xf0] sm:$0xff]  ;;  %v4576_v52 = vld [vmem:[%s4422_s28 + $0xf8] sm:$0xff]  ;;  %v3844_v53 = vpack.i.bf16 %v4554_v45, %v4551_v44 }
  0x29   : > { %v4582_v54 = vld [vmem:[%s4422_s28 + $0x100] sm:$0xff]  ;;  %v4585_v55 = vld [vmem:[%s4422_s28 + $0x108] sm:$0xff]  ;;  %v3849_v56 = vpack.i.bf16 %v4563_v48, %v4560_v47  ;;  %v4595_v58 = vld [vmem:[%s4422_s28 + $0x110] sm:$0xff]  ;;  %v3854_v60 = vpack.i.bf16 %v4576_v52, %v4573_v51 }
  0x2a   : > { %3805 = vrot.lane.b32.xlu0 %v3804_v22, %s6558_s14  ;;  %838 = vmatpush1.bf16.msra.mxu0 %v4128_v23  ;;  %v4598_v59 = vld [vmem:[%s4422_s28 + $0x118] sm:$0xff]  ;;  %v3859_v61 = vpack.i.bf16 %v4585_v55, %v4582_v54  ;;  %v415_v3 = vld [vmem:[%s4422_s28] sm:$0xff]  ;;  %v416_v7 = vld [vmem:[%s4422_s28 + $0x8] sm:$0xff] }
  0x2b   : > { %3810 = vrot.lane.b32.xlu1 %v3809_v24, %s6558_s14  ;;  %839 = vmatprep.subr.bf16.mxu0 %v6560_v1  ;;  %v3864_v63 = vpack.i.bf16 %v4598_v59, %v4595_v58 }
  0x2e   : > { %3815 = vrot.lane.b32.xlu0 %v3814_v30, %s6558_s14  ;;  %840 = vmatpush1.bf16.msra.mxu0 %v4129_v29 }
  0x2f   : > { %3820 = vrot.lane.b32.xlu1 %v3819_v32, %s6558_s14  ;;  %841 = vmatprep.subr.bf16.mxu0 %v6560_v1 }
  0x32   : > { %3825 = vrot.lane.b32.xlu0 %v3824_v36, %s6558_s14  ;;  %842 = vmatpush1.bf16.msra.mxu0 %v4130_v38 }
  0x33   : > { %3830 = vrot.lane.b32.xlu1 %v3829_v39, %s6558_s14  ;;  %843 = vmatprep.subr.bf16.mxu0 %v6560_v1 }
  0x36   : > { %3835 = vrot.lane.b32.xlu0 %v3834_v46, %s6558_s14  ;;  %844 = vmatpush1.bf16.msra.mxu0 %v4131_v43  ;;  %v641_v46 = vpack.c.bf16 %v4454_v13, %v4451_v12 }
  0x37   : > { %3840 = vrot.lane.b32.xlu1 %v3839_v49, %s6558_s14  ;;  %845 = vmatprep.subr.bf16.mxu0 %v6560_v1 }
  0x3a   : > { %3845 = vrot.lane.b32.xlu0 %v3844_v53, %s6558_s14  ;;  %846 = vmatpush1.bf16.msra.mxu0 %v4132_v50 }
  0x3b   : > { %3850 = vrot.lane.b32.xlu1 %v3849_v56, %s6558_s14  ;;  %847 = vmatprep.subr.bf16.mxu0 %v6560_v1 }
  0x3e   : > { %848 = vmatpush1.bf16.msra.mxu0 %v4133_v57  ;;  %3855 = vrot.lane.b32.xlu0 %v3854_v60, %s6558_s14  ;;  %v643_v57 = vpack.c.bf16 %v4471_v19, %v4468_v18 }
  0x3f   : > { %849 = vmatprep.subr.bf16.mxu0 %v6560_v1  ;;  %3860 = vrot.lane.b32.xlu1 %v3859_v61, %s6558_s14 }
  0x42   : > { %850 = vmatpush1.bf16.msra.mxu0 %v4134_v62  ;;  %3865 = vrot.lane.b32.xlu0 %v3864_v63, %s6558_s14  ;;  %s6577_s14 = smov 64  }
  0x43   : > { %851 = vmatprep.subr.bf16.mxu0 %v6560_v1 }
  0x46   : > { %852 = vmatpush1.bf16.msra.mxu0 %v4135_v0  ;;  %v645_v0 = vpack.c.bf16 %v4478_v21, %v4475_v20 }
  0x47   : > { %2429 = vmatprep.subr.bf16.mxu0 %v6560_v1 }
  0x94   : > { %v3786_v2 = vpop.permute.xlu0 %3785 }
  0x95   : > { %v3788_v11 = vunpack.i.h.bf16 %v3786_v2  ;;  %v3787_v14 = vunpack.i.l.bf16 %v3786_v2  ;;  %v3796_v36 = vpop.permute.xlu1 %3795 }
  0x96   : > { %v3798_v39 = vunpack.i.h.bf16 %v3796_v36  ;;  %v3797_v43 = vunpack.i.l.bf16 %v3796_v36  ;;  %v651_v36 = vpack.c.bf16 %v4516_v33, %v4510_v31 }
  0x97   : > { %v600_v15 = vsel %vm599_vm0, %v415_v3, %v3787_v14  ;;  %v601_v16 = vsel %vm599_vm0, %v416_v7, %v3788_v11  ;;  %v647_v14 = vpack.c.bf16 %v4494_v26, %v4491_v25 }
  0x98   : > { %v636_v22 = vpack.c.bf16 %v601_v16, %v600_v15  ;;  %v3791_v23 = vpop.permute.xlu0 %3790  ;;  %v604_v49 = vsel %vm599_vm0, %v4434_v6, %v3797_v43  ;;  %v605_v50 = vsel %vm599_vm0, %v4440_v8, %v3798_v39 }
  0x99   : > { %v3793_v24 = vunpack.i.h.bf16 %v3791_v23  ;;  %v3792_v29 = vunpack.i.l.bf16 %v3791_v23  ;;  %v640_v53 = vpack.c.bf16 %v605_v50, %v604_v49  ;;  %v649_v23 = vpack.c.bf16 %v4501_v28, %v4497_v27 }
  0x9a   : > { %862 = vmatmul.mubr.bf16.vlgmr.msra.gmra.mrb[0].mxu0 %v636_v22  ;;  %v653_v49 = vpack.c.bf16 %v4523_v35, %v4519_v34 }
  0x9b   : > { %3605 = vmatprep.mubr.msk.bf16.mxu0 %vm599_vm0, %v639_v17  ;;  %v602_v30 = vsel %vm599_vm0, %v4428_v4, %v3792_v29  ;;  %v603_v32 = vsel %vm599_vm0, %v4431_v5, %v3793_v24  ;;  %v3801_v4 = vpop.permute.xlu1 %3800 }
  0x9c   : > { %v638_v38 = vpack.c.bf16 %v603_v32, %v602_v30  ;;  %v3803_v56 = vunpack.i.h.bf16 %v3801_v4  ;;  %v3802_v5 = vunpack.i.l.bf16 %v3801_v4  ;;  %v3806_v6 = vpop.permute.xlu0 %3805 }
  0x9d   : > { %v3808_v63 = vunpack.i.h.bf16 %v3806_v6  ;;  %v3807_v8 = vunpack.i.l.bf16 %v3806_v6 }
  0x9e   : > { %v606_v60 = vsel %vm599_vm0, %v4443_v9, %v3802_v5  ;;  %v607_v61 = vsel %vm599_vm0, %v4446_v10, %v3803_v56  ;;  %v655_v5 = vpack.c.bf16 %v4538_v40, %v4529_v37 }
  0x9f   : > { %v642_v62 = vpack.c.bf16 %v607_v61, %v606_v60  ;;  %v608_v2 = vsel %vm599_vm0, %v4451_v12, %v3807_v8  ;;  %v609_v3 = vsel %vm599_vm0, %v4454_v13, %v3808_v63  ;;  %v3811_v9 = vpop.permute.xlu1 %3810 }
  0xa0   : > { %v644_v7 = vpack.c.bf16 %v609_v3, %v608_v2  ;;  %v3813_v11 = vunpack.i.h.bf16 %v3811_v9  ;;  %v3812_v10 = vunpack.i.l.bf16 %v3811_v9  ;;  %v3816_v12 = vpop.permute.xlu0 %3815  ;;  %v659_v3 = vpack.c.bf16 %v4554_v45, %v4551_v44 }
  0xa1   : > { %v3818_v22 = vunpack.i.h.bf16 %v3816_v12  ;;  %v3817_v13 = vunpack.i.l.bf16 %v3816_v12 }
  0xa2   : > { %870 = vmatmul.mubr.bf16.gmra.mrb[4].mxu0 %v638_v38  ;;  %v610_v15 = vsel %vm599_vm0, %v4468_v18, %v3812_v10  ;;  %v611_v16 = vsel %vm599_vm0, %v4471_v19, %v3813_v11 }
  0xa3   : > { %3606 = vmatprep.mubr.msk.bf16.mxu0 %vm599_vm0, %v641_v46  ;;  %v646_v17 = vpack.c.bf16 %v611_v16, %v610_v15  ;;  %v612_v24 = vsel %vm599_vm0, %v4475_v20, %v3817_v13  ;;  %v613_v29 = vsel %vm599_vm0, %v4478_v21, %v3818_v22  ;;  %v3821_v18 = vpop.permute.xlu1 %3820  ;;  %v663_v22 = vpack.c.bf16 %v4576_v52, %v4573_v51 }
  0xa4   : > { %v648_v30 = vpack.c.bf16 %v613_v29, %v612_v24  ;;  %v3823_v32 = vunpack.i.h.bf16 %v3821_v18  ;;  %v3822_v19 = vunpack.i.l.bf16 %v3821_v18  ;;  %v3826_v20 = vpop.permute.xlu0 %3825  ;;  %v665_v18 = vpack.c.bf16 %v4585_v55, %v4582_v54 }
  0xa5   : > { %v3828_v46 = vunpack.i.h.bf16 %v3826_v20  ;;  %v3827_v21 = vunpack.i.l.bf16 %v3826_v20 }
  0xa6   : > { %v614_v38 = vsel %vm599_vm0, %v4491_v25, %v3822_v19  ;;  %v615_v39 = vsel %vm599_vm0, %v4494_v26, %v3823_v32 }
  0xa7   : > { %v650_v43 = vpack.c.bf16 %v615_v39, %v614_v38  ;;  %v616_v50 = vsel %vm599_vm0, %v4497_v27, %v3827_v21  ;;  %v617_v4 = vsel %vm599_vm0, %v4501_v28, %v3828_v46  ;;  %v3831_v25 = vpop.permute.xlu1 %3830  ;;  %v667_v38 = vpack.c.bf16 %v4598_v59, %v4595_v58 }
  0xa8   : > { %v3833_v56 = vunpack.i.h.bf16 %v3831_v25  ;;  %v3832_v26 = vunpack.i.l.bf16 %v3831_v25  ;;  %v3836_v27 = vpop.permute.xlu0 %3835  ;;  %v4140_v25 = vld [vmem:[%s6548_s2 + $0x20] sm:$0xff]  }
  0xa9   : > { %v3838_v6 = vunpack.i.h.bf16 %v3836_v27  ;;  %v3837_v28 = vunpack.i.l.bf16 %v3836_v27  ;;  %v1042_v27 = vlaneseq }
  0xaa   : > { %878 = vmatmul.mubr.bf16.gmra.mrb[8].mxu0 %v640_v53  ;;  %v652_v53 = vpack.c.bf16 %v617_v4, %v616_v50  ;;  %v619_v60 = vsel %vm599_vm0, %v4516_v33, %v3833_v56  ;;  %v4136_v50 = vld [vmem:[%s6548_s2] sm:$0xff]   ;;  %v4137_v4 = vld [vmem:[%s6548_s2 + $0x8] sm:$0xff]   ;;  %v4142_v56 = vld [vmem:[%s6548_s2 + $0x30] sm:$0xff]  }
  0xab   : > { %3607 = vmatprep.mubr.msk.bf16.mxu0 %vm599_vm0, %v643_v57  ;;  %v618_v57 = vsel %vm599_vm0, %v4510_v31, %v3832_v26  ;;  %v620_v63 = vsel %vm599_vm0, %v4519_v34, %v3837_v28  ;;  %v621_v8 = vsel %vm599_vm0, %v4523_v35, %v3838_v6  ;;  %v3841_v31 = vpop.permute.xlu1 %3840  ;;  %1642 = vmatpush1.bf16.msra.mxu1 %v4136_v50  ;;  %v4143_v26 = vld [vmem:[%s6548_s2 + $0x38] sm:$0xff]   ;;  %v4793_v6 = vld [vmem:[%s6551_s5] ss:$0 sm:$0xff]  ;;  %v4795_v28 = vshrl.u32 %v1042_v27, 7 }
  0xac   : > { %v654_v61 = vpack.c.bf16 %v619_v60, %v618_v57  ;;  %v3843_v2 = vunpack.i.h.bf16 %v3841_v31  ;;  %v3842_v33 = vunpack.i.l.bf16 %v3841_v31  ;;  %v3846_v34 = vpop.permute.xlu0 %3845  ;;  %1643 = vmatprep.subr.bf16.mxu1 %v6560_v1  ;;  %v4145_v57 = vld [vmem:[%s6548_s2 + $0x48] sm:$0xff]   ;;  %v4146_v60 = vld [vmem:[%s6548_s2 + $0x50] sm:$0xff]  }
  0xad   : > { %v3848_v10 = vunpack.i.h.bf16 %v3846_v34  ;;  %v3847_v35 = vunpack.i.l.bf16 %v3846_v34  ;;  %vm1083_vm1 = vcmp.lt.s32.totalorder %v4795_v28, 1  ;;  %vm1198_vm3 = vcmp.lt.s32.totalorder %v4795_v28, 7 }
  0xae   : > { %v622_v9 = vsel %vm599_vm0, %v4529_v37, %v3842_v33  ;;  %vm1045_vm4 = vcmp.ge.s32.totalorder %v4795_v28, 1 }
  0xaf   : > { %v624_v15 = vsel %vm599_vm0, %v4541_v41, %v3847_v35  ;;  %v625_v16 = vsel %vm599_vm0, %v4544_v42, %v3848_v10  ;;  %v3851_v37 = vpop.permute.xlu1 %3850  ;;  %1644 = vmatpush1.bf16.msra.mxu1 %v4137_v4 }
  0xb0   : > { %v660_v12 = vpack.c.bf16 %v625_v16, %v624_v15  ;;  %1645 = vmatprep.subr.bf16.mxu1 %v6560_v1 }
  0xb2   : > { %886 = vmatmul.mubr.bf16.gmra.mrb[12].mxu0 %v642_v62  ;;  %v657_v62 = vpack.c.bf16 %v4544_v42, %v4541_v41  ;;  %v3856_v41 = vpop.permute.xlu0 %3855 }
  0xb3   : > { %3608 = vmatprep.mubr.msk.bf16.mxu0 %vm599_vm0, %v645_v0  ;;  %v656_v0 = vpack.c.bf16 %v621_v8, %v620_v63  ;;  %v3858_v29 = vunpack.i.h.bf16 %v3856_v41  ;;  %v3857_v42 = vunpack.i.l.bf16 %v3856_v41  ;;  %v3861_v32 = vpop.permute.xlu1 %3860 }
  0xb4   : > { %v3863_v19 = vunpack.i.h.bf16 %v3861_v32 }
  0xb6   : > { %v631_v20 = vsel %vm599_vm0, %v4576_v52, %v3863_v19 }
  0xba   : > { %894 = vmatmul.mubr.bf16.gmra.mrb[16].mxu0 %v644_v7  ;;  %v623_v7 = vsel %vm599_vm0, %v4538_v40, %v3843_v2  ;;  %v3852_v40 = vunpack.i.l.bf16 %v3851_v37 }
  0xbb   : > { %3609 = vmatprep.mubr.msk.bf16.mxu0 %vm599_vm0, %v647_v14  ;;  %v658_v11 = vpack.c.bf16 %v623_v7, %v622_v9  ;;  %v661_v14 = vpack.c.bf16 %v4563_v48, %v4560_v47 }
  0xbc   : > { %v626_v13 = vsel %vm599_vm0, %v4551_v44, %v3852_v40  ;;  %v629_v44 = vsel %vm599_vm0, %v4563_v48, %v3858_v29  ;;  %v4734_v48 = vld [vmem:[%s4422_s28 + $0x128] sm:$0xff] }
  0xc2   : > { %902 = vmatmul.mubr.bf16.gmra.mrb[20].mxu0 %v646_v17  ;;  %v3853_v17 = vunpack.i.h.bf16 %v3851_v37 }
  0xc3   : > { %3610 = vmatprep.mubr.msk.bf16.mxu0 %vm599_vm0, %v649_v23 }
  0xc4   : > { %v627_v23 = vsel %vm599_vm0, %v4554_v45, %v3853_v17 }
  0xc5   : > { %v662_v24 = vpack.c.bf16 %v627_v23, %v626_v13 }
  0xca   : > { %910 = vmatmul.mubr.bf16.gmra.mrb[24].mxu0 %v648_v30  ;;  %v628_v30 = vsel %vm599_vm0, %v4560_v47, %v3857_v42  ;;  %v3866_v47 = vpop.permute.xlu0 %3865 }
  0xcb   : > { %3611 = vmatprep.mubr.msk.bf16.mxu0 %vm599_vm0, %v651_v36  ;;  %v664_v45 = vpack.c.bf16 %v629_v44, %v628_v30  ;;  %v3862_v36 = vunpack.i.l.bf16 %v3861_v32  ;;  %v3868_v21 = vunpack.i.h.bf16 %v3866_v47 }
  0xcd   : > { %v630_v39 = vsel %vm599_vm0, %v4573_v51, %v3862_v36  ;;  %v633_v52 = vsel %vm599_vm0, %v4585_v55, %v3868_v21  ;;  %v4139_v55 = vld [vmem:[%s6548_s2 + $0x18] sm:$0xff]  }
  0xce   : > { %v666_v46 = vpack.c.bf16 %v631_v20, %v630_v39 }
  0xd2   : > { %918 = vmatmul.mubr.bf16.gmra.mrb[28].mxu0 %v650_v43  ;;  %v4731_v43 = vld [vmem:[%s4422_s28 + $0x120] sm:$0xff] }
  0xd3   : > { %3612 = vmatprep.mubr.msk.bf16.mxu0 %vm599_vm0, %v653_v49  ;;  %v3867_v49 = vunpack.i.l.bf16 %v3866_v47  ;;  %v669_v58 = vpack.c.bf16 %v4734_v48, %v4731_v43 }
  0xd5   : > { %v632_v51 = vsel %vm599_vm0, %v4582_v54, %v3867_v49  ;;  %v4138_v54 = vld [vmem:[%s6548_s2 + $0x10] sm:$0xff]  }
  0xd6   : > { %v668_v59 = vpack.c.bf16 %v633_v52, %v632_v51  ;;  %1646 = vmatpush1.bf16.msra.mxu1 %v4138_v54 }
  0xd7   : > { %1647 = vmatprep.subr.bf16.mxu1 %v6560_v1 }
  0xda   : > { %926 = vmatmul.mubr.bf16.gmra.mrb[32].mxu0 %v652_v53  ;;  %1648 = vmatpush1.bf16.msra.mxu1 %v4139_v55  ;;  %v4141_v53 = vld [vmem:[%s6548_s2 + $0x28] sm:$0xff]  }
  0xdb   : > { %3613 = vmatprep.mubr.msk.bf16.mxu0 %vm599_vm0, %v655_v5  ;;  %1649 = vmatprep.subr.bf16.mxu1 %v6560_v1  ;;  %v4144_v5 = vld [vmem:[%s6548_s2 + $0x40] sm:$0xff]  }
  0xde   : > { %1650 = vmatpush1.bf16.msra.mxu1 %v4140_v25 }
  0xdf   : > { %1651 = vmatprep.subr.bf16.mxu1 %v6560_v1 }
  0xe2   : > { %934 = vmatmul.mubr.bf16.gmra.mrb[36].mxu0 %v654_v61  ;;  %1652 = vmatpush1.bf16.msra.mxu1 %v4141_v53  ;;  %v4147_v61 = vld [vmem:[%s6548_s2 + $0x58] sm:$0xff]  }
  0xe3   : > { %3614 = vmatprep.mubr.msk.bf16.mxu0 %vm599_vm0, %v657_v62  ;;  %1653 = vmatprep.subr.bf16.mxu1 %v6560_v1 }
  0xe6   : > { %1654 = vmatpush1.bf16.msra.mxu1 %v4142_v56 }
  0xe7   : > { %1655 = vmatprep.subr.bf16.mxu1 %v6560_v1 }
  0xea   : > { %942 = vmatmul.mubr.bf16.gmra.mrb[40].mxu0 %v656_v0  ;;  %1656 = vmatpush1.bf16.msra.mxu1 %v4143_v26  ;;  %v4800_v0 = vadd.s32 8, %v4795_v28  ;;  %v6323_v28 = vld [vmem:[%s6556_s10] ss:$0 sm:$0xff] }
  0xeb   : > { %3615 = vmatprep.mubr.msk.bf16.mxu0 %vm599_vm0, %v659_v3  ;;  %1657 = vmatprep.subr.bf16.mxu1 %v6560_v1 }
  0xec   : > { %vm1161_vm2 = vcmp.lt.s32.totalorder %v4800_v0, 15 }
  0xee   : > { %1658 = vmatpush1.bf16.msra.mxu1 %v4144_v5 }
  0xef   : > { %1659 = vmatprep.subr.bf16.mxu1 %v6560_v1 }
  0xf2   : > { %950 = vmatmul.mubr.bf16.gmra.mrb[44].mxu0 %v658_v11  ;;  %1660 = vmatpush1.bf16.msra.mxu1 %v4145_v57 }
  0xf3   : > { %3616 = vmatprep.mubr.msk.bf16.mxu0 %vm599_vm0, %v661_v14  ;;  %1661 = vmatprep.subr.bf16.mxu1 %v6560_v1 }
  0xf6   : > { %1662 = vmatpush1.bf16.msra.mxu1 %v4146_v60 }
  0xf7   : > { %1663 = vmatprep.subr.bf16.mxu1 %v6560_v1 }
  0xfa   : > { %958 = vmatmul.mubr.bf16.gmra.mrb[48].mxu0 %v660_v12  ;;  %1664 = vmatpush1.bf16.msra.mxu1 %v4147_v61 }
  0xfb   : > { %3617 = vmatprep.mubr.msk.bf16.mxu0 %vm599_vm0, %v663_v22  ;;  %3150 = vmatprep.subr.bf16.mxu1 %v6560_v1 }
 0x102   : > { %966 = vmatmul.mubr.bf16.gmra.mrb[52].mxu0 %v662_v24 }
 0x103   : > { %3618 = vmatprep.mubr.msk.bf16.mxu0 %vm599_vm0, %v665_v18 }
 0x10a   : > { %974 = vmatmul.mubr.bf16.gmra.mrb[56].mxu0 %v664_v45 }
 0x10b   : > { %3619 = vmatprep.mubr.msk.bf16.mxu0 %vm599_vm0, %v667_v38 }
 0x112   : > { %982 = vmatmul.mubr.bf16.gmra.mrb[60].mxu0 %v666_v46 }
 0x113   : > { %3620 = vmatprep.mubr.msk.bf16.mxu0 %vm599_vm0, %v669_v58 }
 0x11a   : > { %990 = vmatmul.mubr.bf16.gmra.mrb[64].mxu0 %v668_v59 }
 0x16d   : > { %v863_v62 = vpop.f32.mrb[0].mxu0 }
 0x16e   : > { %v864_v63 = vadd.f32 %v4793_v6, %v863_v62  ;;  %v865_v8 = vpop.f32.mrb[1].mxu0 }
 0x16f   : > { %v866_v31 = vpop.f32.mrb[2].mxu0 }
 0x170   : > { %v1006_v2 = vmax.f32 %v864_v63, 0.0  ;;  %v867_v33 = vadd.f32 %v4793_v6, %v866_v31  ;;  %v868_v3 = vpop.f32.mrb[3].mxu0 }
 0x172   : > { %v1007_v9 = vmax.f32 %v867_v33, 0.0  ;;  %v1047_v7 = vrot.slane %v1006_v2, 7  ;;  %v1162_v34 = vrot.slane %v1006_v2, 1 }
 0x174   : > { %v1065_v11 = vrot.slane %v1007_v9, 7  ;;  %v1180_v10 = vrot.slane %v1007_v9, 1  ;;  %v3869_v35 = vpack.i.bf16 %v1007_v9, %v1006_v2 }
 0x175   : > { %v871_v14 = vpop.f32.mrb[4].mxu0 }
 0x176   : > { %v872_v15 = vadd.f32 %v4793_v6, %v871_v14  ;;  %v873_v16 = vpop.f32.mrb[5].mxu0  ;;  %3870 = vrot.lane.b32.xlu1 %v3869_v35, %s6577_s14  ;;  %v1199_v37 = vsel %vm1198_vm3, %v1162_v34, %v1180_v10  ;;  %v1217_v12 = vsel %vm1198_vm3, %v1180_v10, %v1162_v34  ;;  %v4814_v17 = vsel %vm1083_vm1, %v1047_v7, %v1065_v11 }
 0x177   : > { %v874_v40 = vpop.f32.mrb[6].mxu0  ;;  %v1240_v22 = vsel %vm1161_vm2, %v1217_v12, 0.0  ;;  %v4820_v13 = vsel %vm1083_vm1, %v1065_v11, %v1047_v7 }
 0x178   : > { %v1008_v23 = vmax.f32 %v872_v15, 0.0  ;;  %v875_v41 = vadd.f32 %v4793_v6, %v874_v40  ;;  %v876_v24 = vpop.f32.mrb[7].mxu0  ;;  %v1456_v29 = vpack.c.bf16 %v1240_v22, %v1199_v37 }
 0x17a   : > { %v1009_v42 = vmax.f32 %v875_v41, 0.0  ;;  %3634 = vmatprep.mubr.msk.bf16.mxu1 %vm599_vm0, %v1456_v29  ;;  %v1048_v18 = vrot.slane %v1008_v23, 7  ;;  %v1163_v30 = vrot.slane %v1008_v23, 1 }
 0x17c   : > { %v1066_v44 = vrot.slane %v1009_v42, 7  ;;  %v1181_v32 = vrot.slane %v1009_v42, 1  ;;  %v3874_v45 = vpack.i.bf16 %v1009_v42, %v1008_v23 }
 0x17d   : > { %v879_v19 = vpop.f32.mrb[8].mxu0 }
 0x17e   : > { %v880_v36 = vadd.f32 %v4793_v6, %v879_v19  ;;  %v881_v38 = vpop.f32.mrb[9].mxu0  ;;  %3875 = vrot.lane.b32.xlu0 %v3874_v45, %s6577_s14  ;;  %v4828_v39 = vsel %vm1198_vm3, %v1163_v30, %v1181_v32  ;;  %v1218_v20 = vsel %vm1198_vm3, %v1181_v32, %v1163_v30  ;;  %v4834_v47 = vsel %vm1083_vm1, %v1048_v18, %v1066_v44 }
 0x17f   : > { %v882_v46 = vpop.f32.mrb[10].mxu0  ;;  %v4838_v21 = vsel %vm1161_vm2, %v1218_v20, 0.0  ;;  %v4842_v49 = vsel %vm1083_vm1, %v1066_v44, %v1048_v18 }
 0x180   : > { %v1010_v58 = vmax.f32 %v880_v36, 0.0  ;;  %v883_v51 = vadd.f32 %v4793_v6, %v882_v46  ;;  %v884_v52 = vpop.f32.mrb[11].mxu0 }
 0x182   : > { %v1011_v50 = vmax.f32 %v883_v51, 0.0  ;;  %v1049_v4 = vrot.slane %v1010_v58, 7  ;;  %v1164_v54 = vrot.slane %v1010_v58, 1 }
 0x184   : > { %v1067_v55 = vrot.slane %v1011_v50, 7  ;;  %v1182_v25 = vrot.slane %v1011_v50, 1  ;;  %v3879_v53 = vpack.i.bf16 %v1011_v50, %v1010_v58 }
 0x185   : > { %v887_v56 = vpop.f32.mrb[12].mxu0 }
 0x186   : > { %v888_v26 = vadd.f32 %v4793_v6, %v887_v56  ;;  %v889_v5 = vpop.f32.mrb[13].mxu0  ;;  %3880 = vrot.lane.b32.xlu1 %v3879_v53, %s6577_s14  ;;  %v4851_v57 = vsel %vm1198_vm3, %v1164_v54, %v1182_v25  ;;  %v1219_v60 = vsel %vm1198_vm3, %v1182_v25, %v1164_v54  ;;  %v4857_v27 = vsel %vm1083_vm1, %v1049_v4, %v1067_v55 }
 0x187   : > { %v890_v61 = vpop.f32.mrb[14].mxu0  ;;  %v4861_v62 = vsel %vm1161_vm2, %v1219_v60, 0.0  ;;  %v4865_v63 = vsel %vm1083_vm1, %v1067_v55, %v1049_v4 }
 0x188   : > { %v1012_v8 = vmax.f32 %v888_v26, 0.0  ;;  %v891_v31 = vadd.f32 %v4793_v6, %v890_v61  ;;  %v892_v2 = vpop.f32.mrb[15].mxu0 }
 0x18a   : > { %v1013_v3 = vmax.f32 %v891_v31, 0.0  ;;  %v1050_v9 = vrot.slane %v1012_v8, 7  ;;  %v1165_v7 = vrot.slane %v1012_v8, 1 }
 0x18c   : > { %v1068_v34 = vrot.slane %v1013_v3, 7  ;;  %v1183_v11 = vrot.slane %v1013_v3, 1  ;;  %v3884_v10 = vpack.i.bf16 %v1013_v3, %v1012_v8 }
 0x18d   : > { %v895_v35 = vpop.f32.mrb[16].mxu0 }
 0x18e   : > { %v896_v14 = vadd.f32 %v4793_v6, %v895_v35  ;;  %v897_v15 = vpop.f32.mrb[17].mxu0  ;;  %3885 = vrot.lane.b32.xlu0 %v3884_v10, %s6577_s14  ;;  %v4874_v16 = vsel %vm1198_vm3, %v1165_v7, %v1183_v11  ;;  %v1220_v37 = vsel %vm1198_vm3, %v1183_v11, %v1165_v7  ;;  %v4880_v12 = vsel %vm1083_vm1, %v1050_v9, %v1068_v34 }
 0x18f   : > { %v898_v40 = vpop.f32.mrb[18].mxu0  ;;  %v4884_v22 = vsel %vm1161_vm2, %v1220_v37, 0.0  ;;  %v4888_v23 = vsel %vm1083_vm1, %v1068_v34, %v1050_v9 }
 0x190   : > { %v1014_v41 = vmax.f32 %v896_v14, 0.0  ;;  %v899_v24 = vadd.f32 %v4793_v6, %v898_v40  ;;  %v900_v29 = vpop.f32.mrb[19].mxu0 }
 0x192   : > { %v1015_v18 = vmax.f32 %v899_v24, 0.0  ;;  %v1051_v30 = vrot.slane %v1014_v41, 7  ;;  %v1166_v44 = vrot.slane %v1014_v41, 1 }
 0x194   : > { %v1069_v32 = vrot.slane %v1015_v18, 7  ;;  %v1184_v45 = vrot.slane %v1015_v18, 1  ;;  %v3889_v19 = vpack.i.bf16 %v1015_v18, %v1014_v41 }
 0x195   : > { %v903_v36 = vpop.f32.mrb[20].mxu0 }
 0x196   : > { %v904_v38 = vadd.f32 %v4793_v6, %v903_v36  ;;  %v905_v20 = vpop.f32.mrb[21].mxu0  ;;  %3890 = vrot.lane.b32.xlu1 %v3889_v19, %s6577_s14  ;;  %v4897_v46 = vsel %vm1198_vm3, %v1166_v44, %v1184_v45  ;;  %v1221_v58 = vsel %vm1198_vm3, %v1184_v45, %v1166_v44  ;;  %v4903_v51 = vsel %vm1083_vm1, %v1051_v30, %v1069_v32 }
 0x197   : > { %v906_v52 = vpop.f32.mrb[22].mxu0  ;;  %v4907_v50 = vsel %vm1161_vm2, %v1221_v58, 0.0  ;;  %v4911_v4 = vsel %vm1083_vm1, %v1069_v32, %v1051_v30 }
 0x198   : > { %v1016_v54 = vmax.f32 %v904_v38, 0.0  ;;  %v907_v55 = vadd.f32 %v4793_v6, %v906_v52  ;;  %v908_v25 = vpop.f32.mrb[23].mxu0 }
 0x19a   : > { %v1017_v56 = vmax.f32 %v907_v55, 0.0  ;;  %v1052_v26 = vrot.slane %v1016_v54, 7  ;;  %v1167_v5 = vrot.slane %v1016_v54, 1 }
 0x19c   : > { %v1070_v60 = vrot.slane %v1017_v56, 7  ;;  %v1185_v61 = vrot.slane %v1017_v56, 1  ;;  %v3894_v8 = vpack.i.bf16 %v1017_v56, %v1016_v54 }
 0x19d   : > { %v911_v31 = vpop.f32.mrb[24].mxu0 }
 0x19e   : > { %v912_v2 = vadd.f32 %v4793_v6, %v911_v31  ;;  %v913_v3 = vpop.f32.mrb[25].mxu0  ;;  %3895 = vrot.lane.b32.xlu0 %v3894_v8, %s6577_s14  ;;  %v4920_v9 = vsel %vm1198_vm3, %v1167_v5, %v1185_v61  ;;  %v1222_v7 = vsel %vm1198_vm3, %v1185_v61, %v1167_v5  ;;  %v4926_v34 = vsel %vm1083_vm1, %v1052_v26, %v1070_v60 }
 0x19f   : > { %v914_v11 = vpop.f32.mrb[26].mxu0  ;;  %v4930_v10 = vsel %vm1161_vm2, %v1222_v7, 0.0  ;;  %v4934_v35 = vsel %vm1083_vm1, %v1070_v60, %v1052_v26 }
 0x1a0   : > { %v1018_v14 = vmax.f32 %v912_v2, 0.0  ;;  %v915_v15 = vadd.f32 %v4793_v6, %v914_v11  ;;  %v916_v37 = vpop.f32.mrb[27].mxu0 }
 0x1a2   : > { %v1019_v41 = vmax.f32 %v915_v15, 0.0  ;;  %v1053_v24 = vrot.slane %v1018_v14, 7  ;;  %v1168_v29 = vrot.slane %v1018_v14, 1 }
 0x1a4   : > { %v1071_v18 = vrot.slane %v1019_v41, 7  ;;  %v1186_v30 = vrot.slane %v1019_v41, 1  ;;  %v3899_v44 = vpack.i.bf16 %v1019_v41, %v1018_v14 }
 0x1a5   : > { %v919_v32 = vpop.f32.mrb[28].mxu0 }
 0x1a6   : > { %v920_v45 = vadd.f32 %v4793_v6, %v919_v32  ;;  %v921_v19 = vpop.f32.mrb[29].mxu0  ;;  %3900 = vrot.lane.b32.xlu1 %v3899_v44, %s6577_s14  ;;  %v4943_v36 = vsel %vm1198_vm3, %v1168_v29, %v1186_v30  ;;  %v1223_v38 = vsel %vm1198_vm3, %v1186_v30, %v1168_v29  ;;  %v4949_v20 = vsel %vm1083_vm1, %v1053_v24, %v1071_v18 }
 0x1a7   : > { %v922_v58 = vpop.f32.mrb[30].mxu0  ;;  %v4953_v52 = vsel %vm1161_vm2, %v1223_v38, 0.0  ;;  %v4957_v54 = vsel %vm1083_vm1, %v1071_v18, %v1053_v24 }
 0x1a8   : > { %v1020_v55 = vmax.f32 %v920_v45, 0.0  ;;  %v923_v25 = vadd.f32 %v4793_v6, %v922_v58  ;;  %v924_v56 = vpop.f32.mrb[31].mxu0 }
 0x1aa   : > { %v1021_v5 = vmax.f32 %v923_v25, 0.0  ;;  %v1054_v60 = vrot.slane %v1020_v55, 7  ;;  %v1169_v61 = vrot.slane %v1020_v55, 1 }
 0x1ac   : > { %v1072_v8 = vrot.slane %v1021_v5, 7  ;;  %v1187_v31 = vrot.slane %v1021_v5, 1  ;;  %v3904_v2 = vpack.i.bf16 %v1021_v5, %v1020_v55 }
 0x1ad   : > { %v927_v3 = vpop.f32.mrb[32].mxu0 }
 0x1ae   : > { %v928_v7 = vadd.f32 %v4793_v6, %v927_v3  ;;  %v929_v11 = vpop.f32.mrb[33].mxu0  ;;  %3905 = vrot.lane.b32.xlu0 %v3904_v2, %s6577_s14  ;;  %v4966_v14 = vsel %vm1198_vm3, %v1169_v61, %v1187_v31  ;;  %v1224_v15 = vsel %vm1198_vm3, %v1187_v31, %v1169_v61  ;;  %v4972_v37 = vsel %vm1083_vm1, %v1054_v60, %v1072_v8 }
 0x1af   : > { %v930_v41 = vpop.f32.mrb[34].mxu0  ;;  %v4976_v24 = vsel %vm1161_vm2, %v1224_v15, 0.0  ;;  %v4980_v29 = vsel %vm1083_vm1, %v1072_v8, %v1054_v60 }
 0x1b0   : > { %v1022_v18 = vmax.f32 %v928_v7, 0.0  ;;  %v931_v30 = vadd.f32 %v4793_v6, %v930_v41  ;;  %v932_v44 = vpop.f32.mrb[35].mxu0 }
 0x1b2   : > { %v1023_v45 = vmax.f32 %v931_v30, 0.0  ;;  %v1055_v19 = vrot.slane %v1022_v18, 7  ;;  %v1170_v38 = vrot.slane %v1022_v18, 1 }
 0x1b4   : > { %v1073_v58 = vrot.slane %v1023_v45, 7  ;;  %v1188_v55 = vrot.slane %v1023_v45, 1  ;;  %v3909_v25 = vpack.i.bf16 %v1023_v45, %v1022_v18 }
 0x1b5   : > { %v935_v56 = vpop.f32.mrb[36].mxu0 }
 0x1b6   : > { %v936_v5 = vadd.f32 %v4793_v6, %v935_v56  ;;  %v937_v61 = vpop.f32.mrb[37].mxu0  ;;  %3910 = vrot.lane.b32.xlu1 %v3909_v25, %s6577_s14  ;;  %v4989_v60 = vsel %vm1198_vm3, %v1170_v38, %v1188_v55  ;;  %v1225_v8 = vsel %vm1198_vm3, %v1188_v55, %v1170_v38  ;;  %v4995_v31 = vsel %vm1083_vm1, %v1055_v19, %v1073_v58 }
 0x1b7   : > { %v938_v2 = vpop.f32.mrb[38].mxu0  ;;  %v4999_v3 = vsel %vm1161_vm2, %v1225_v8, 0.0  ;;  %v5003_v7 = vsel %vm1083_vm1, %v1073_v58, %v1055_v19 }
 0x1b8   : > { %v1024_v11 = vmax.f32 %v936_v5, 0.0  ;;  %v939_v15 = vadd.f32 %v4793_v6, %v938_v2  ;;  %v940_v41 = vpop.f32.mrb[39].mxu0 }
 0x1ba   : > { %v1025_v30 = vmax.f32 %v939_v15, 0.0  ;;  %v1056_v44 = vrot.slane %v1024_v11, 7  ;;  %v1171_v45 = vrot.slane %v1024_v11, 1 }
 0x1bc   : > { %v1074_v38 = vrot.slane %v1025_v30, 7  ;;  %v1189_v55 = vrot.slane %v1025_v30, 1  ;;  %v3914_v25 = vpack.i.bf16 %v1025_v30, %v1024_v11 }
 0x1bd   : > { %v943_v56 = vpop.f32.mrb[40].mxu0 }
 0x1be   : > { %v944_v61 = vadd.f32 %v4793_v6, %v943_v56  ;;  %v945_v8 = vpop.f32.mrb[41].mxu0  ;;  %3915 = vrot.lane.b32.xlu0 %v3914_v25, %s6577_s14  ;;  %v5012_v19 = vsel %vm1198_vm3, %v1171_v45, %v1189_v55  ;;  %v1226_v58 = vsel %vm1198_vm3, %v1189_v55, %v1171_v45  ;;  %v5018_v5 = vsel %vm1083_vm1, %v1056_v44, %v1074_v38 }
 0x1bf   : > { %v946_v2 = vpop.f32.mrb[42].mxu0  ;;  %v5022_v11 = vsel %vm1161_vm2, %v1226_v58, 0.0  ;;  %v5026_v15 = vsel %vm1083_vm1, %v1074_v38, %v1056_v44 }
 0x1c0   : > { %v1026_v41 = vmax.f32 %v944_v61, 0.0  ;;  %v947_v30 = vadd.f32 %v4793_v6, %v946_v2  ;;  %v948_v25 = vpop.f32.mrb[43].mxu0 }
 0x1c2   : > { %v1027_v55 = vmax.f32 %v947_v30, 0.0  ;;  %v1057_v56 = vrot.slane %v1026_v41, 7  ;;  %v1172_v8 = vrot.slane %v1026_v41, 1 }
 0x1c4   : > { %v1075_v18 = vrot.slane %v1027_v55, 7  ;;  %v1190_v32 = vrot.slane %v1027_v55, 1  ;;  %v3919_v26 = vpack.i.bf16 %v1027_v55, %v1026_v41 }
 0x1c5   : > { %v951_v40 = vpop.f32.mrb[44].mxu0 }
 0x1c6   : > { %v952_v58 = vadd.f32 %v4793_v6, %v951_v40  ;;  %v953_v53 = vpop.f32.mrb[45].mxu0  ;;  %3920 = vrot.lane.b32.xlu1 %v3919_v26, %s6577_s14  ;;  %v5035_v44 = vsel %vm1198_vm3, %v1172_v8, %v1190_v32  ;;  %v1227_v38 = vsel %vm1198_vm3, %v1190_v32, %v1172_v8  ;;  %v5041_v61 = vsel %vm1083_vm1, %v1057_v56, %v1075_v18 }
 0x1c7   : > { %6578 = vst [vmem:[#allocation5_spill] sm:$0xff] %v5035_v44  ;;  %6579 = vst [vmem:[#allocation6_spill] sm:$0xff] %v5041_v61  ;;  %v954_v2 = vpop.f32.mrb[46].mxu0  ;;  %v5045_v41 = vsel %vm1161_vm2, %v1227_v38, 0.0  ;;  %v5049_v53 = vsel %vm1083_vm1, %v1075_v18, %v1057_v56 }
 0x1c8   : > { %6580 = vst [vmem:[#allocation7_spill] sm:$0xff] %v5049_v53  ;;  %v1028_v40 = vmax.f32 %v952_v58, 0.0  ;;  %v955_v26 = vadd.f32 %v4793_v6, %v954_v2  ;;  %v956_v30 = vpop.f32.mrb[47].mxu0 }
 0x1ca   : > { %v1029_v25 = vmax.f32 %v955_v26, 0.0  ;;  %v1058_v55 = vrot.slane %v1028_v40, 7  ;;  %v1173_v8 = vrot.slane %v1028_v40, 1 }
 0x1cc   : > { %v1076_v45 = vrot.slane %v1029_v25, 7  ;;  %v1191_v42 = vrot.slane %v1029_v25, 1  ;;  %v3924_v33 = vpack.i.bf16 %v1029_v25, %v1028_v40 }
 0x1cd   : > { %v959_v1 = vpop.f32.mrb[48].mxu0 }
 0x1ce   : > { %v960_v38 = vadd.f32 %v4793_v6, %v959_v1  ;;  %v961_v59 = vpop.f32.mrb[49].mxu0  ;;  %3925 = vrot.lane.b32.xlu0 %v3924_v33, %s6577_s14  ;;  %v5058_v18 = vsel %vm1198_vm3, %v1173_v8, %v1191_v42  ;;  %v1228_v56 = vsel %vm1198_vm3, %v1191_v42, %v1173_v8  ;;  %v5064_v58 = vsel %vm1083_vm1, %v1058_v55, %v1076_v45 }
 0x1cf   : > { %6581 = vst [vmem:[#allocation8_spill] sm:$0xff] %v5058_v18  ;;  %6582 = vst [vmem:[#allocation9_spill] sm:$0xff] %v5064_v58  ;;  %v962_v2 = vpop.f32.mrb[50].mxu0  ;;  %v5068_v40 = vsel %vm1161_vm2, %v1228_v56, 0.0  ;;  %v5072_v1 = vsel %vm1083_vm1, %v1076_v45, %v1058_v55 }
 0x1d0   : > { %6583 = vst [vmem:[#allocation10_spill] sm:$0xff] %v5068_v40  ;;  %6584 = vst [vmem:[#allocation11_spill] sm:$0xff] %v5072_v1  ;;  %v1030_v59 = vmax.f32 %v960_v38, 0.0  ;;  %v963_v33 = vadd.f32 %v4793_v6, %v962_v2  ;;  %v964_v26 = vpop.f32.mrb[51].mxu0 }
 0x1d2   : > { %v1031_v30 = vmax.f32 %v963_v33, 0.0  ;;  %v1059_v25 = vrot.slane %v1030_v59, 7  ;;  %v1174_v8 = vrot.slane %v1030_v59, 1 }
 0x1d4   : > { %v1077_v32 = vrot.slane %v1031_v30, 7  ;;  %v1192_v58 = vrot.slane %v1031_v30, 1  ;;  %v3929_v61 = vpack.i.bf16 %v1031_v30, %v1030_v59 }
 0x1d5   : > { %v967_v53 = vpop.f32.mrb[52].mxu0 }
 0x1d6   : > { %v968_v56 = vadd.f32 %v4793_v6, %v967_v53  ;;  %v969_v44 = vpop.f32.mrb[53].mxu0  ;;  %3930 = vrot.lane.b32.xlu1 %v3929_v61, %s6577_s14  ;;  %v5081_v45 = vsel %vm1198_vm3, %v1174_v8, %v1192_v58  ;;  %v1229_v55 = vsel %vm1198_vm3, %v1192_v58, %v1174_v8  ;;  %v5087_v38 = vsel %vm1083_vm1, %v1059_v25, %v1077_v32 }
 0x1d7   : > { %6585 = vst [vmem:[#allocation12_spill] sm:$0xff] %v5081_v45  ;;  %6586 = vst [vmem:[#allocation13_spill] sm:$0xff] %v5087_v38  ;;  %v970_v2 = vpop.f32.mrb[54].mxu0  ;;  %v5091_v59 = vsel %vm1161_vm2, %v1229_v55, 0.0  ;;  %v5095_v44 = vsel %vm1083_vm1, %v1077_v32, %v1059_v25 }
 0x1d8   : > { %6587 = vst [vmem:[#allocation14_spill] sm:$0xff] %v5091_v59  ;;  %6588 = vst [vmem:[#allocation15_spill] sm:$0xff] %v5095_v44  ;;  %v1032_v61 = vmax.f32 %v968_v56, 0.0  ;;  %v971_v53 = vadd.f32 %v4793_v6, %v970_v2  ;;  %v972_v33 = vpop.f32.mrb[55].mxu0 }
 0x1da   : > { %v1033_v26 = vmax.f32 %v971_v53, 0.0  ;;  %v1060_v30 = vrot.slane %v1032_v61, 7  ;;  %v1175_v8 = vrot.slane %v1032_v61, 1 }
 0x1dc   : > { %v1078_v42 = vrot.slane %v1033_v26, 7  ;;  %v1193_v38 = vrot.slane %v1033_v26, 1  ;;  %v3934_v1 = vpack.i.bf16 %v1033_v26, %v1032_v61 }
 0x1dd   : > { %v975_v18 = vpop.f32.mrb[56].mxu0 }
 0x1de   : > { %v976_v55 = vadd.f32 %v4793_v6, %v975_v18  ;;  %v977_v40 = vpop.f32.mrb[57].mxu0  ;;  %3935 = vrot.lane.b32.xlu0 %v3934_v1, %s6577_s14  ;;  %v5104_v32 = vsel %vm1198_vm3, %v1175_v8, %v1193_v38  ;;  %v1230_v25 = vsel %vm1198_vm3, %v1193_v38, %v1175_v8  ;;  %v5110_v56 = vsel %vm1083_vm1, %v1060_v30, %v1078_v42 }
 0x1df   : > { %6589 = vst [vmem:[#allocation16_spill] sm:$0xff] %v5104_v32  ;;  %6590 = vst [vmem:[#allocation17_spill] sm:$0xff] %v5110_v56  ;;  %v978_v2 = vpop.f32.mrb[58].mxu0  ;;  %v5114_v61 = vsel %vm1161_vm2, %v1230_v25, 0.0  ;;  %v5118_v18 = vsel %vm1083_vm1, %v1078_v42, %v1060_v30 }
 0x1e0   : > { %6591 = vst [vmem:[#allocation18_spill] sm:$0xff] %v5118_v18  ;;  %v1034_v40 = vmax.f32 %v976_v55, 0.0  ;;  %v979_v1 = vadd.f32 %v4793_v6, %v978_v2  ;;  %v980_v53 = vpop.f32.mrb[59].mxu0 }
 0x1e2   : > { %v1035_v33 = vmax.f32 %v979_v1, 0.0  ;;  %v1061_v26 = vrot.slane %v1034_v40, 7  ;;  %v1176_v8 = vrot.slane %v1034_v40, 1 }
 0x1e4   : > { %v1079_v58 = vrot.slane %v1035_v33, 7  ;;  %v1194_v56 = vrot.slane %v1035_v33, 1  ;;  %v3939_v44 = vpack.i.bf16 %v1035_v33, %v1034_v40 }
 0x1e5   : > { %v983_v45 = vpop.f32.mrb[60].mxu0 }
 0x1e6   : > { %v984_v25 = vadd.f32 %v4793_v6, %v983_v45  ;;  %v985_v59 = vpop.f32.mrb[61].mxu0  ;;  %3940 = vrot.lane.b32.xlu1 %v3939_v44, %s6577_s14  ;;  %v5127_v42 = vsel %vm1198_vm3, %v1176_v8, %v1194_v56  ;;  %v1231_v30 = vsel %vm1198_vm3, %v1194_v56, %v1176_v8  ;;  %v5133_v55 = vsel %vm1083_vm1, %v1061_v26, %v1079_v58 }
 0x1e7   : > { %6592 = vst [vmem:[#allocation19_spill] sm:$0xff] %v5133_v55  ;;  %v986_v2 = vpop.f32.mrb[62].mxu0  ;;  %v5138_v45 = vsel %vm1161_vm2, %v1231_v30, 0.0  ;;  %v5142_v59 = vsel %vm1083_vm1, %v1079_v58, %v1061_v26  ;;  %v1124_v30 = vsel %vm1045_vm4, %v4820_v13, 0.0 }
 0x1e8   : > { %6593 = vst [vmem:[#allocation20_spill] sm:$0xff] %v5142_v59  ;;  %v1036_v44 = vmax.f32 %v984_v25, 0.0  ;;  %v987_v40 = vadd.f32 %v4793_v6, %v986_v2  ;;  %v988_v1 = vpop.f32.mrb[63].mxu0  ;;  %v3871_v56 = vpop.permute.xlu1 %3870 }
 0x1e9   : > { %v3873_v33 = vunpack.i.h.bf16 %v3871_v56  ;;  %v3872_v8 = vunpack.i.l.bf16 %v3871_v56  ;;  %v3954_v56 = vpack.i.bf16 %v4734_v48, %v4731_v43  ;;  %v6594_v43 = vpack.c.bf16 %v4838_v21, %v4828_v39 }
 0x1ea   : > { %v1037_v38 = vmax.f32 %v987_v40, 0.0  ;;  %v1177_v55 = vrot.slane %v1036_v44, 1  ;;  %v1062_v59 = vrot.slane %v1036_v44, 7 }
 0x1eb   : > { %v1419_v18 = vsel %vm599_vm0, %v1124_v30, %v3872_v8  ;;  %v1420_v58 = vsel %vm599_vm0, %v4814_v17, %v3873_v33 }
 0x1ec   : > { %v1080_v26 = vrot.slane %v1037_v38, 7  ;;  %v1195_v25 = vrot.slane %v1037_v38, 1  ;;  %v3944_v2 = vpack.i.bf16 %v1037_v38, %v1036_v44  ;;  %v1455_v1 = vpack.c.bf16 %v1420_v58, %v1419_v18  ;;  %v4148_v18 = vld [vmem:[%s6549_s3] sm:$0xff]  }
 0x1ed   : > { %v991_v32 = vpop.f32.mrb[64].mxu0  ;;  %2430 = vmatpush1.bf16.msra.mxu0 %v4148_v18  ;;  %v6595_v58 = vmov 0  }
 0x1ee   : > { %v992_v40 = vadd.f32 %v4793_v6, %v991_v32  ;;  %v993_v53 = vpop.f32.mrb[65].mxu0  ;;  %3945 = vrot.lane.b32.xlu0 %v3944_v2, %s6577_s14  ;;  %1674 = vmatmul.mubr.bf16.vlgmr.msra.gmra.mrb[0].mxu1 %v1455_v1  ;;  %v5159_v13 = vsel %vm1198_vm3, %v1177_v55, %v1195_v25  ;;  %v1232_v17 = vsel %vm1198_vm3, %v1195_v25, %v1177_v55  ;;  %v1126_v2 = vsel %vm1045_vm4, %v4842_v49, 0.0 }
 0x1ef   : > { %v994_v38 = vpop.f32.mrb[66].mxu0  ;;  %3635 = vmatprep.mubr.msk.bf16.mxu1 %vm599_vm0, %v6594_v43  ;;  %v5172_v48 = vsel %vm1161_vm2, %v1232_v17, 0.0  ;;  %v5176_v32 = vsel %vm1083_vm1, %v1062_v59, %v1080_v26  ;;  %v5180_v55 = vsel %vm1083_vm1, %v1080_v26, %v1062_v59  ;;  %2431 = vmatprep.subr.bf16.mxu0 %v6595_v58 }
 0x1f0   : > { %v1038_v44 = vmax.f32 %v992_v40, 0.0  ;;  %v995_v53 = vadd.f32 %v4793_v6, %v994_v38  ;;  %v996_v33 = vpop.f32.mrb[67].mxu0  ;;  %v3876_v8 = vpop.permute.xlu0 %3875  ;;  %v1486_v39 = vpack.c.bf16 %v5172_v48, %v5159_v13 }
 0x1f1   : > { %v3878_v21 = vunpack.i.h.bf16 %v3876_v8  ;;  %v3877_v30 = vunpack.i.l.bf16 %v3876_v8 }
 0x1f2   : > { %v1039_v25 = vmax.f32 %v995_v53, 0.0  ;;  %3955 = vrot.lane.b32.xlu0 %v3954_v56, %s6577_s14  ;;  %v1063_v59 = vrot.slane %v1038_v44, 7  ;;  %v1178_v26 = vrot.slane %v1038_v44, 1 }
 0x1f3   : > { %v1421_v6 = vsel %vm599_vm0, %v1126_v2, %v3877_v30  ;;  %v1422_v1 = vsel %vm599_vm0, %v4834_v47, %v3878_v21  ;;  %v6596_v47 = vpack.c.bf16 %v4861_v62, %v4851_v57  ;;  %v1128_v57 = vsel %vm1045_vm4, %v4865_v63, 0.0 }
 0x1f4   : > { %v1081_v40 = vrot.slane %v1039_v25, 7  ;;  %v1196_v17 = vrot.slane %v1039_v25, 1  ;;  %v3949_v18 = vpack.i.bf16 %v1039_v25, %v1038_v44  ;;  %v1457_v38 = vpack.c.bf16 %v1422_v1, %v1421_v6 }
 0x1f6   : > { %3950 = vrot.lane.b32.xlu1 %v3949_v18, %s6577_s14  ;;  %1682 = vmatmul.mubr.bf16.gmra.mrb[4].mxu1 %v1457_v38  ;;  %v5196_v43 = vsel %vm1198_vm3, %v1178_v26, %v1196_v17  ;;  %v1233_v49 = vsel %vm1198_vm3, %v1196_v17, %v1178_v26  ;;  %v5202_v56 = vsel %vm1083_vm1, %v1063_v59, %v1081_v40 }
 0x1f7   : > { %3636 = vmatprep.mubr.msk.bf16.mxu1 %vm599_vm0, %v6596_v47  ;;  %v5210_v44 = vsel %vm1161_vm2, %v1233_v49, 0.0  ;;  %v5214_v53 = vsel %vm1083_vm1, %v1081_v40, %v1063_v59  ;;  %v6597_v59 = vpack.c.bf16 %v4884_v22, %v4874_v16  ;;  %v1130_v40 = vsel %vm1045_vm4, %v4888_v23, 0.0 }
 0x1f8   : > { %v3881_v33 = vpop.permute.xlu1 %3880  ;;  %v1488_v8 = vpack.c.bf16 %v5210_v44, %v5196_v43  ;;  %v6598_v18 = vpack.c.bf16 %v4907_v50, %v4897_v46  ;;  %v1132_v49 = vsel %vm1045_vm4, %v4911_v4, 0.0 }
 0x1f9   : > { %v3883_v21 = vunpack.i.h.bf16 %v3881_v33  ;;  %v3882_v30 = vunpack.i.l.bf16 %v3881_v33  ;;  %v6599_v33 = vpack.c.bf16 %v4930_v10, %v4920_v9 }
 0x1fb   : > { %v1423_v62 = vsel %vm599_vm0, %v1128_v57, %v3882_v30  ;;  %v1424_v25 = vsel %vm599_vm0, %v4857_v27, %v3883_v21  ;;  %v1134_v30 = vsel %vm1045_vm4, %v4934_v35, 0.0 }
 0x1fc   : > { %v1459_v2 = vpack.c.bf16 %v1424_v25, %v1423_v62  ;;  %v6600_v62 = vpack.c.bf16 %v4953_v52, %v4943_v36 }
 0x1fe   : > { %1690 = vmatmul.mubr.bf16.gmra.mrb[8].mxu1 %v1459_v2  ;;  %v1136_v2 = vsel %vm1045_vm4, %v4957_v54, 0.0 }
 0x1ff   : > { %3637 = vmatprep.mubr.msk.bf16.mxu1 %vm599_vm0, %v6597_v59 }
 0x200   : > { %v3886_v26 = vpop.permute.xlu0 %3885 }
 0x201   : > { %v3888_v6 = vunpack.i.h.bf16 %v3886_v26  ;;  %v3887_v1 = vunpack.i.l.bf16 %v3886_v26  ;;  %v6601_v26 = vpack.c.bf16 %v4976_v24, %v4966_v14 }
 0x203   : > { %v1425_v63 = vsel %vm599_vm0, %v1130_v40, %v3887_v1  ;;  %v1426_v17 = vsel %vm599_vm0, %v4880_v12, %v3888_v6  ;;  %v1138_v1 = vsel %vm1045_vm4, %v4980_v29, 0.0 }
 0x204   : > { %v1461_v27 = vpack.c.bf16 %v1426_v17, %v1425_v63  ;;  %v6602_v63 = vpack.c.bf16 %v4999_v3, %v4989_v60 }
 0x206   : > { %1698 = vmatmul.mubr.bf16.gmra.mrb[12].mxu1 %v1461_v27  ;;  %v1140_v27 = vsel %vm1045_vm4, %v5003_v7, 0.0 }
 0x207   : > { %3638 = vmatprep.mubr.msk.bf16.mxu1 %vm599_vm0, %v6598_v18 }
 0x208   : > { %v3891_v16 = vpop.permute.xlu1 %3890 }
 0x209   : > { %v3893_v22 = vunpack.i.h.bf16 %v3891_v16  ;;  %v3892_v38 = vunpack.i.l.bf16 %v3891_v16  ;;  %v6603_v16 = vpack.c.bf16 %v5022_v11, %v5012_v19 }
 0x20b   : > { %v1427_v23 = vsel %vm599_vm0, %v1132_v49, %v3892_v38  ;;  %v1428_v47 = vsel %vm599_vm0, %v4903_v51, %v3893_v22  ;;  %v1142_v38 = vsel %vm1045_vm4, %v5026_v15, 0.0 }
 0x20c   : > { %v1463_v12 = vpack.c.bf16 %v1428_v47, %v1427_v23  ;;  %v6604_v23 = vld [vmem:[#allocation5_spill] sm:$0xff] }
 0x20d   : > { %v6605_v47 = vpack.c.bf16 %v5045_v41, %v6604_v23 }
 0x20e   : > { %1706 = vmatmul.mubr.bf16.gmra.mrb[16].mxu1 %v1463_v12 }
 0x20f   : > { %3639 = vmatprep.mubr.msk.bf16.mxu1 %vm599_vm0, %v6599_v33  ;;  %v6606_v33 = vld [vmem:[#allocation7_spill] sm:$0xff] }
 0x210   : > { %v3896_v46 = vpop.permute.xlu0 %3895 }
 0x211   : > { %v3898_v50 = vunpack.i.h.bf16 %v3896_v46  ;;  %v3897_v21 = vunpack.i.l.bf16 %v3896_v46  ;;  %v1144_v46 = vsel %vm1045_vm4, %v6606_v33, 0.0 }
 0x213   : > { %v1429_v4 = vsel %vm599_vm0, %v1134_v30, %v3897_v21  ;;  %v1430_v57 = vsel %vm599_vm0, %v4926_v34, %v3898_v50  ;;  %v6607_v50 = vld [vmem:[#allocation6_spill] sm:$0xff] }
 0x214   : > { %v1465_v51 = vpack.c.bf16 %v1430_v57, %v1429_v4  ;;  %v6608_v30 = vld [vmem:[#allocation10_spill] sm:$0xff]  ;;  %v6609_v4 = vld [vmem:[#allocation8_spill] sm:$0xff] }
 0x215   : > { %v6610_v41 = vpack.c.bf16 %v6608_v30, %v6609_v4  ;;  %v4151_v30 = vld [vmem:[%s6549_s3 + $0x18] sm:$0xff]  }
 0x216   : > { %1714 = vmatmul.mubr.bf16.gmra.mrb[20].mxu1 %v1465_v51 }
 0x217   : > { %3640 = vmatprep.mubr.msk.bf16.mxu1 %vm599_vm0, %v6600_v62 }
 0x218   : > { %v3901_v9 = vpop.permute.xlu1 %3900 }
 0x219   : > { %v3903_v10 = vunpack.i.h.bf16 %v3901_v9  ;;  %v3902_v25 = vunpack.i.l.bf16 %v3901_v9  ;;  %v6611_v9 = vld [vmem:[#allocation11_spill] sm:$0xff] }
 0x21b   : > { %v1431_v35 = vsel %vm599_vm0, %v1136_v2, %v3902_v25  ;;  %v1432_v59 = vsel %vm599_vm0, %v4949_v20, %v3903_v10  ;;  %v1146_v10 = vsel %vm1045_vm4, %v6611_v9, 0.0  ;;  %v6612_v2 = vld [vmem:[#allocation9_spill] sm:$0xff] }
 0x21c   : > { %v1467_v34 = vpack.c.bf16 %v1432_v59, %v1431_v35 }
 0x21e   : > { %1722 = vmatmul.mubr.bf16.gmra.mrb[24].mxu1 %v1467_v34  ;;  %v4149_v34 = vld [vmem:[%s6549_s3 + $0x8] sm:$0xff]  }
 0x21f   : > { %3641 = vmatprep.mubr.msk.bf16.mxu1 %vm599_vm0, %v6601_v26  ;;  %2432 = vmatpush1.bf16.msra.mxu0 %v4149_v34  ;;  %v6613_v26 = vld [vmem:[#allocation14_spill] sm:$0xff] }
 0x220   : > { %v3906_v36 = vpop.permute.xlu0 %3905  ;;  %2433 = vmatprep.subr.bf16.mxu0 %v6595_v58 }
 0x221   : > { %v3908_v52 = vunpack.i.h.bf16 %v3906_v36  ;;  %v3907_v6 = vunpack.i.l.bf16 %v3906_v36  ;;  %v6614_v36 = vld [vmem:[#allocation12_spill] sm:$0xff] }
 0x223   : > { %v1433_v54 = vsel %vm599_vm0, %v1138_v1, %v3907_v6  ;;  %v1434_v40 = vsel %vm599_vm0, %v4972_v37, %v3908_v52  ;;  %v6615_v52 = vpack.c.bf16 %v6613_v26, %v6614_v36  ;;  %v453_v1 = vld [vmem:[%s4422_s28 + $0x130] sm:$0xff]  ;;  %v1156_v26 = vsel %vm1045_vm4, %v5214_v53, 0.0  ;;  %v4155_v53 = vld [vmem:[%s6549_s3 + $0x38] sm:$0xff]  }
 0x224   : > { %v1469_v20 = vpack.c.bf16 %v1434_v40, %v1433_v54  ;;  %v454_v54 = vld [vmem:[%s4422_s28 + $0x138] sm:$0xff] }
 0x226   : > { %1730 = vmatmul.mubr.bf16.gmra.mrb[28].mxu1 %v1469_v20 }
 0x227   : > { %3642 = vmatprep.mubr.msk.bf16.mxu1 %vm599_vm0, %v6602_v63  ;;  %v671_v63 = vpack.c.bf16 %v454_v54, %v453_v1  ;;  %v4157_v1 = vld [vmem:[%s6549_s3 + $0x48] sm:$0xff]   ;;  %v4158_v54 = vld [vmem:[%s6549_s3 + $0x50] sm:$0xff]  }
 0x228   : > { %v3911_v14 = vpop.permute.xlu1 %3910 }
 0x229   : > { %v3913_v24 = vunpack.i.h.bf16 %v3911_v14  ;;  %v3912_v17 = vunpack.i.l.bf16 %v3911_v14  ;;  %v6616_v14 = vld [vmem:[#allocation15_spill] sm:$0xff]  ;;  %3621 = vmatprep.mubr.msk.bf16.mxu0 %vm599_vm0, %v671_v63 }
 0x22b   : > { %v1435_v29 = vsel %vm599_vm0, %v1140_v27, %v3912_v17  ;;  %v1436_v18 = vsel %vm599_vm0, %v4995_v31, %v3913_v24  ;;  %v1148_v24 = vsel %vm1045_vm4, %v6616_v14, 0.0  ;;  %v6617_v27 = vld [vmem:[#allocation13_spill] sm:$0xff] }
 0x22c   : > { %v1471_v37 = vpack.c.bf16 %v1436_v18, %v1435_v29 }
 0x22e   : > { %1738 = vmatmul.mubr.bf16.gmra.mrb[32].mxu1 %v1471_v37  ;;  %v6618_v37 = vld [vmem:[#allocation16_spill] sm:$0xff] }
 0x22f   : > { %3643 = vmatprep.mubr.msk.bf16.mxu1 %vm599_vm0, %v6603_v16  ;;  %v6619_v16 = vpack.c.bf16 %v5114_v61, %v6618_v37 }
 0x230   : > { %v3916_v60 = vpop.permute.xlu0 %3915 }
 0x231   : > { %v3918_v3 = vunpack.i.h.bf16 %v3916_v60  ;;  %v3917_v22 = vunpack.i.l.bf16 %v3916_v60 }
 0x233   : > { %v1437_v7 = vsel %vm599_vm0, %v1142_v38, %v3917_v22  ;;  %v1438_v49 = vsel %vm599_vm0, %v5018_v5, %v3918_v3  ;;  %v6620_v38 = vld [vmem:[#allocation18_spill] sm:$0xff] }
 0x234   : > { %v1473_v31 = vpack.c.bf16 %v1438_v49, %v1437_v7  ;;  %v1150_v7 = vsel %vm1045_vm4, %v6620_v38, 0.0 }
 0x236   : > { %1746 = vmatmul.mubr.bf16.gmra.mrb[36].mxu1 %v1473_v31  ;;  %v6621_v31 = vld [vmem:[#allocation17_spill] sm:$0xff] }
 0x237   : > { %3644 = vmatprep.mubr.msk.bf16.mxu1 %vm599_vm0, %v6605_v47 }
 0x238   : > { %v3921_v19 = vpop.permute.xlu1 %3920 }
 0x239   : > { %v3923_v11 = vunpack.i.h.bf16 %v3921_v19  ;;  %v3922_v12 = vunpack.i.l.bf16 %v3921_v19  ;;  %v6622_v19 = vpack.c.bf16 %v5138_v45, %v5127_v42 }
 0x23b   : > { %v1439_v15 = vsel %vm599_vm0, %v1144_v46, %v3922_v12  ;;  %v1440_v21 = vsel %vm599_vm0, %v6607_v50, %v3923_v11  ;;  %v4150_v11 = vld [vmem:[%s6549_s3 + $0x10] sm:$0xff]   ;;  %v6623_v46 = vld [vmem:[#allocation20_spill] sm:$0xff] }
 0x23c   : > { %v1475_v5 = vpack.c.bf16 %v1440_v21, %v1439_v15  ;;  %v1152_v15 = vsel %vm1045_vm4, %v6623_v46, 0.0  ;;  %2434 = vmatpush1.bf16.msra.mxu0 %v4150_v11  ;;  %v6624_v21 = vld [vmem:[#allocation19_spill] sm:$0xff] }
 0x23d   : > { %2435 = vmatprep.subr.bf16.mxu0 %v6595_v58 }
 0x23e   : > { %1754 = vmatmul.mubr.bf16.gmra.mrb[40].mxu1 %v1475_v5 }
 0x23f   : > { %3645 = vmatprep.mubr.msk.bf16.mxu1 %vm599_vm0, %v6610_v41 }
 0x240   : > { %v3926_v57 = vpop.permute.xlu0 %3925  ;;  %2436 = vmatpush1.bf16.msra.mxu0 %v4151_v30 }
 0x241   : > { %v3928_v51 = vunpack.i.h.bf16 %v3926_v57  ;;  %v3927_v62 = vunpack.i.l.bf16 %v3926_v57  ;;  %v1154_v57 = vsel %vm1045_vm4, %v5180_v55, 0.0  ;;  %2437 = vmatprep.subr.bf16.mxu0 %v6595_v58 }
 0x243   : > { %v1441_v25 = vsel %vm599_vm0, %v1146_v10, %v3927_v62  ;;  %v1442_v35 = vsel %vm599_vm0, %v6612_v2, %v3928_v51  ;;  %v4172_v10 = vld [vmem:[%s4422_s28 + $0x110] sm:$0xff] }
 0x244   : > { %v1477_v59 = vpack.c.bf16 %v1442_v35, %v1441_v25  ;;  %v4173_v25 = vld [vmem:[%s4422_s28 + $0x118] sm:$0xff] }
 0x246   : > { %1762 = vmatmul.mubr.bf16.gmra.mrb[44].mxu1 %v1477_v59 }
 0x247   : > { %3646 = vmatprep.mubr.msk.bf16.mxu1 %vm599_vm0, %v6615_v52  ;;  %v4153_v52 = vld [vmem:[%s6549_s3 + $0x28] sm:$0xff]  }
 0x248   : > { %v3931_v6 = vpop.permute.xlu1 %3930 }
 0x249   : > { %v3933_v40 = vunpack.i.h.bf16 %v3931_v6  ;;  %v3932_v20 = vunpack.i.l.bf16 %v3931_v6  ;;  %v4156_v6 = vld [vmem:[%s6549_s3 + $0x40] sm:$0xff]  }
 0x24b   : > { %v1443_v17 = vsel %vm599_vm0, %v1148_v24, %v3932_v20  ;;  %v1444_v29 = vsel %vm599_vm0, %v6617_v27, %v3933_v40  ;;  %v4159_v40 = vld [vmem:[%s6549_s3 + $0x58] sm:$0xff]  }
 0x24c   : > { %v1479_v18 = vpack.c.bf16 %v1444_v29, %v1443_v17  ;;  %v5417_v17 = vld [vmem:[%s6552_s6] ss:$0 sm:$0xff] }
 0x24d   : > { %v5422_v29 = vld [vmem:[%s6553_s7] ss:$0 sm:$0xff] }
 0x24e   : > { %1770 = vmatmul.mubr.bf16.gmra.mrb[48].mxu1 %v1479_v18 }
 0x24f   : > { %3647 = vmatprep.mubr.msk.bf16.mxu1 %vm599_vm0, %v6619_v16 }
 0x250   : > { %v3936_v60 = vpop.permute.xlu0 %3935 }
 0x251   : > { %v3938_v3 = vunpack.i.h.bf16 %v3936_v60  ;;  %v3937_v22 = vunpack.i.l.bf16 %v3936_v60 }
 0x253   : > { %v1445_v49 = vsel %vm599_vm0, %v1150_v7, %v3937_v22  ;;  %v1446_v23 = vsel %vm599_vm0, %v6621_v31, %v3938_v3 }
 0x254   : > { %v1481_v47 = vpack.c.bf16 %v1446_v23, %v1445_v49 }
 0x256   : > { %1778 = vmatmul.mubr.bf16.gmra.mrb[52].mxu1 %v1481_v47 }
 0x257   : > { %3648 = vmatprep.mubr.msk.bf16.mxu1 %vm599_vm0, %v6622_v19 }
 0x258   : > { %v3941_v61 = vpop.permute.xlu1 %3940 }
 0x259   : > { %v3943_v12 = vunpack.i.h.bf16 %v3941_v61  ;;  %v3942_v33 = vunpack.i.l.bf16 %v3941_v61 }
 0x25b   : > { %v1447_v50 = vsel %vm599_vm0, %v1152_v15, %v3942_v33  ;;  %v1448_v5 = vsel %vm599_vm0, %v6624_v21, %v3943_v12 }
 0x25c   : > { %v1483_v42 = vpack.c.bf16 %v1448_v5, %v1447_v50 }
 0x25e   : > { %1786 = vmatmul.mubr.bf16.gmra.mrb[56].mxu1 %v1483_v42 }
 0x25f   : > { %3649 = vmatprep.mubr.msk.bf16.mxu1 %vm599_vm0, %v1486_v39 }
 0x260   : > { %v3946_v45 = vpop.permute.xlu0 %3945 }
 0x261   : > { %v3948_v4 = vunpack.i.h.bf16 %v3946_v45  ;;  %v3947_v41 = vunpack.i.l.bf16 %v3946_v45 }
 0x263   : > { %v1449_v51 = vsel %vm599_vm0, %v1154_v57, %v3947_v41  ;;  %v1450_v13 = vsel %vm599_vm0, %v5176_v32, %v3948_v4 }
 0x264   : > { %v1485_v48 = vpack.c.bf16 %v1450_v13, %v1449_v51  ;;  %v3956_v39 = vpop.permute.xlu0 %3955 }
 0x265   : > { %v3958_v62 = vunpack.i.h.bf16 %v3956_v39  ;;  %v3957_v9 = vunpack.i.l.bf16 %v3956_v39 }
 0x266   : > { %1794 = vmatmul.mubr.bf16.gmra.mrb[60].mxu1 %v1485_v48 }
 0x267   : > { %3650 = vmatprep.mubr.msk.bf16.mxu1 %vm599_vm0, %v1488_v8  ;;  %v634_v55 = vsel %vm599_vm0, %v4172_v10, %v3957_v9  ;;  %v635_v2 = vsel %vm599_vm0, %v4173_v25, %v3958_v62  ;;  %v4152_v8 = vld [vmem:[%s6549_s3 + $0x20] sm:$0xff]  }
 0x268   : > { %v3951_v35 = vpop.permute.xlu1 %3950  ;;  %v670_v32 = vpack.c.bf16 %v635_v2, %v634_v55  ;;  %2438 = vmatpush1.bf16.msra.mxu0 %v4152_v8 }
 0x269   : > { %v3953_v59 = vunpack.i.h.bf16 %v3951_v35  ;;  %v3952_v34 = vunpack.i.l.bf16 %v3951_v35  ;;  %2439 = vmatprep.subr.bf16.mxu0 %v6595_v58 }
 0x26a   : > { %998 = vmatmul.mubr.bf16.gmra.mrb[68].mxu0 %v670_v32 }
 0x26b   : > { %v1451_v36 = vsel %vm599_vm0, %v1156_v26, %v3952_v34  ;;  %v1452_v43 = vsel %vm599_vm0, %v5202_v56, %v3953_v59  ;;  %v4154_v56 = vld [vmem:[%s6549_s3 + $0x30] sm:$0xff]  }
 0x26c   : > { %v1487_v44 = vpack.c.bf16 %v1452_v43, %v1451_v36  ;;  %2440 = vmatpush1.bf16.msra.mxu0 %v4153_v52 }
 0x26d   : > { %2441 = vmatprep.subr.bf16.mxu0 %v6595_v58 }
 0x26e   : > { %1802 = vmatmul.mubr.bf16.gmra.mrb[64].mxu1 %v1487_v44 }
 0x270   : > { %2442 = vmatpush1.bf16.msra.mxu0 %v4154_v56 }
 0x271   : > { %2443 = vmatprep.subr.bf16.mxu0 %v6595_v58 }
 0x274   : > { %2444 = vmatpush1.bf16.msra.mxu0 %v4155_v53 }
 0x275   : > { %2445 = vmatprep.subr.bf16.mxu0 %v6595_v58 }
 0x278   : > { %2446 = vmatpush1.bf16.msra.mxu0 %v4156_v6 }
 0x279   : > { %2447 = vmatprep.subr.bf16.mxu0 %v6595_v58 }
 0x27c   : > { %2448 = vmatpush1.bf16.msra.mxu0 %v4157_v1 }
 0x27d   : > { %2449 = vmatprep.subr.bf16.mxu0 %v6595_v58 }
 0x280   : > { %2450 = vmatpush1.bf16.msra.mxu0 %v4158_v54 }
 0x281   : > { %2451 = vmatprep.subr.bf16.mxu0 %v6595_v58 }
 0x284   : > { %2452 = vmatpush1.bf16.msra.mxu0 %v4159_v40 }
 0x2c1   : > { %v1675_v20 = vpop.f32.mrb[0].mxu1 }
 0x2c2   : > { %v1677_v63 = vpop.f32.mrb[1].mxu1 }
 0x2c3   : > { %v1678_v14 = vpop.f32.mrb[2].mxu1 }
 0x2c4   : > { %v1680_v24 = vpop.f32.mrb[3].mxu1 }
 0x2c9   : > { %v1683_v27 = vpop.f32.mrb[4].mxu1 }
 0x2ca   : > { %v1827_v18 = vmul.f32 %v5417_v17, %v1683_v27  ;;  %v1685_v37 = vpop.f32.mrb[5].mxu1 }
 0x2cb   : > { %v1686_v16 = vpop.f32.mrb[6].mxu1 }
 0x2cc   : > { %v5426_v60 = vadd.f32 %v5422_v29, %v1827_v18  ;;  %v1828_v3 = vmul.f32 %v5417_v17, %v1686_v16  ;;  %v1688_v22 = vpop.f32.mrb[7].mxu1 }
 0x2ce   : > { %v5430_v38 = vadd.f32 %v5422_v29, %v1828_v3  ;;  %v1906_v7 = vmax.f32 %v5426_v60, 0.0 }
 0x2d0   : > { %v1907_v49 = vmax.f32 %v5430_v38, 0.0 }
 0x2d1   : > { %v1691_v31 = vpop.f32.mrb[8].mxu1 }
 0x2d2   : > { %v1829_v23 = vmul.f32 %v5417_v17, %v1691_v31  ;;  %v1693_v47 = vpop.f32.mrb[9].mxu1  ;;  %v3959_v19 = vpack.i.bf16 %v1907_v49, %v1906_v7 }
 0x2d3   : > { %v1694_v61 = vpop.f32.mrb[10].mxu1 }
 0x2d4   : > { %v1872_v11 = vadd.f32 %v5422_v29, %v1829_v23  ;;  %v1830_v12 = vmul.f32 %v5417_v17, %v1694_v61  ;;  %3960 = vrot.lane.b32.xlu1 %v3959_v19, %s6577_s14  ;;  %v1696_v33 = vpop.f32.mrb[11].mxu1 }
 0x2d6   : > { %v1873_v46 = vadd.f32 %v5422_v29, %v1830_v12  ;;  %v5443_v15 = vmax.f32 %v1872_v11, 0.0 }
 0x2d8   : > { %v5445_v50 = vmax.f32 %v1873_v46, 0.0 }
 0x2d9   : > { %v1699_v21 = vpop.f32.mrb[12].mxu1 }
 0x2da   : > { %v1831_v5 = vmul.f32 %v5417_v17, %v1699_v21  ;;  %v1701_v42 = vpop.f32.mrb[13].mxu1  ;;  %v3964_v45 = vpack.i.bf16 %v5445_v50, %v5443_v15  ;;  %v2247_v30 = vpack.c.bf16 %v5445_v50, %v5443_v15 }
 0x2db   : > { %v1702_v4 = vpop.f32.mrb[14].mxu1 }
 0x2dc   : > { %v1874_v41 = vadd.f32 %v5422_v29, %v1831_v5  ;;  %v1832_v57 = vmul.f32 %v5417_v17, %v1702_v4  ;;  %3965 = vrot.lane.b32.xlu0 %v3964_v45, %s6577_s14  ;;  %v1704_v51 = vpop.f32.mrb[15].mxu1  ;;  %3667 = vmatprep.mubr.msk.bf16.mxu0 %vm599_vm0, %v2247_v30 }
 0x2de   : > { %v1875_v13 = vadd.f32 %v5422_v29, %v1832_v57  ;;  %v5457_v48 = vmax.f32 %v1874_v41, 0.0 }
 0x2e0   : > { %v5459_v39 = vmax.f32 %v1875_v13, 0.0 }
 0x2e1   : > { %v1707_v62 = vpop.f32.mrb[16].mxu1 }
 0x2e2   : > { %v1833_v9 = vmul.f32 %v5417_v17, %v1707_v62  ;;  %v1709_v10 = vpop.f32.mrb[17].mxu1  ;;  %v3969_v55 = vpack.i.bf16 %v5459_v39, %v5457_v48 }
 0x2e3   : > { %v1710_v25 = vpop.f32.mrb[18].mxu1 }
 0x2e4   : > { %v1876_v2 = vadd.f32 %v5422_v29, %v1833_v9  ;;  %v1834_v35 = vmul.f32 %v5417_v17, %v1710_v25  ;;  %3970 = vrot.lane.b32.xlu1 %v3969_v55, %s6577_s14  ;;  %v1712_v32 = vpop.f32.mrb[19].mxu1 }
 0x2e6   : > { %v1877_v59 = vadd.f32 %v5422_v29, %v1834_v35  ;;  %v5468_v34 = vmax.f32 %v1876_v2, 0.0 }
 0x2e8   : > { %v5470_v26 = vmax.f32 %v1877_v59, 0.0 }
 0x2e9   : > { %v1715_v36 = vpop.f32.mrb[20].mxu1 }
 0x2ea   : > { %v1835_v43 = vmul.f32 %v5417_v17, %v1715_v36  ;;  %v1717_v44 = vpop.f32.mrb[21].mxu1  ;;  %v3974_v8 = vpack.i.bf16 %v5470_v26, %v5468_v34 }
 0x2eb   : > { %v1718_v52 = vpop.f32.mrb[22].mxu1 }
 0x2ec   : > { %v1878_v56 = vadd.f32 %v5422_v29, %v1835_v43  ;;  %v1836_v53 = vmul.f32 %v5417_v17, %v1718_v52  ;;  %3975 = vrot.lane.b32.xlu0 %v3974_v8, %s6577_s14  ;;  %v1720_v6 = vpop.f32.mrb[23].mxu1 }
 0x2ee   : > { %v1879_v1 = vadd.f32 %v5422_v29, %v1836_v53  ;;  %v5479_v54 = vmax.f32 %v1878_v56, 0.0 }
 0x2f0   : > { %v5481_v40 = vmax.f32 %v1879_v1, 0.0 }
 0x2f1   : > { %v1723_v20 = vpop.f32.mrb[24].mxu1 }
 0x2f2   : > { %v1837_v63 = vmul.f32 %v5417_v17, %v1723_v20  ;;  %v1725_v14 = vpop.f32.mrb[25].mxu1  ;;  %v3979_v24 = vpack.i.bf16 %v5481_v40, %v5479_v54  ;;  %v2253_v38 = vpack.c.bf16 %v5481_v40, %v5479_v54 }
 0x2f3   : > { %v1726_v27 = vpop.f32.mrb[26].mxu1 }
 0x2f4   : > { %v1880_v18 = vadd.f32 %v5422_v29, %v1837_v63  ;;  %v1838_v37 = vmul.f32 %v5417_v17, %v1726_v27  ;;  %3980 = vrot.lane.b32.xlu1 %v3979_v24, %s6577_s14  ;;  %v1728_v16 = vpop.f32.mrb[27].mxu1 }
 0x2f6   : > { %v1881_v3 = vadd.f32 %v5422_v29, %v1838_v37  ;;  %v5490_v22 = vmax.f32 %v1880_v18, 0.0 }
 0x2f8   : > { %v5492_v31 = vmax.f32 %v1881_v3, 0.0 }
 0x2f9   : > { %v1731_v23 = vpop.f32.mrb[28].mxu1 }
 0x2fa   : > { %v1839_v47 = vmul.f32 %v5417_v17, %v1731_v23  ;;  %v1733_v19 = vpop.f32.mrb[29].mxu1  ;;  %v3984_v61 = vpack.i.bf16 %v5492_v31, %v5490_v22 }
 0x2fb   : > { %v1734_v11 = vpop.f32.mrb[30].mxu1 }
 0x2fc   : > { %v1882_v12 = vadd.f32 %v5422_v29, %v1839_v47  ;;  %v1840_v33 = vmul.f32 %v5417_v17, %v1734_v11  ;;  %3985 = vrot.lane.b32.xlu0 %v3984_v61, %s6577_s14  ;;  %v1736_v46 = vpop.f32.mrb[31].mxu1 }
 0x2fe   : > { %v1883_v21 = vadd.f32 %v5422_v29, %v1840_v33  ;;  %v5501_v5 = vmax.f32 %v1882_v12, 0.0 }
 0x300   : > { %v5503_v42 = vmax.f32 %v1883_v21, 0.0 }
 0x301   : > { %v1739_v45 = vpop.f32.mrb[32].mxu1 }
 0x302   : > { %v1841_v30 = vmul.f32 %v5417_v17, %v1739_v45  ;;  %v1741_v4 = vpop.f32.mrb[33].mxu1  ;;  %v3989_v41 = vpack.i.bf16 %v5503_v42, %v5501_v5 }
 0x303   : > { %v1742_v57 = vpop.f32.mrb[34].mxu1 }
 0x304   : > { %v1884_v51 = vadd.f32 %v5422_v29, %v1841_v30  ;;  %v1842_v13 = vmul.f32 %v5417_v17, %v1742_v57  ;;  %3990 = vrot.lane.b32.xlu1 %v3989_v41, %s6577_s14  ;;  %v1744_v62 = vpop.f32.mrb[35].mxu1 }
 0x306   : > { %v1885_v9 = vadd.f32 %v5422_v29, %v1842_v13  ;;  %v5512_v10 = vmax.f32 %v1884_v51, 0.0 }
 0x308   : > { %v5514_v55 = vmax.f32 %v1885_v9, 0.0 }
 0x309   : > { %v1747_v25 = vpop.f32.mrb[36].mxu1 }
 0x30a   : > { %v1843_v2 = vmul.f32 %v5417_v17, %v1747_v25  ;;  %v1749_v35 = vpop.f32.mrb[37].mxu1  ;;  %v3994_v32 = vpack.i.bf16 %v5514_v55, %v5512_v10 }
 0x30b   : > { %v1750_v59 = vpop.f32.mrb[38].mxu1 }
 0x30c   : > { %v1886_v36 = vadd.f32 %v5422_v29, %v1843_v2  ;;  %v1844_v43 = vmul.f32 %v5417_v17, %v1750_v59  ;;  %3995 = vrot.lane.b32.xlu0 %v3994_v32, %s6577_s14  ;;  %v1752_v44 = vpop.f32.mrb[39].mxu1 }
 0x30e   : > { %v1887_v8 = vadd.f32 %v5422_v29, %v1844_v43  ;;  %v5523_v52 = vmax.f32 %v1886_v36, 0.0 }
 0x310   : > { %v5525_v56 = vmax.f32 %v1887_v8, 0.0 }
 0x311   : > { %v1755_v53 = vpop.f32.mrb[40].mxu1 }
 0x312   : > { %v1845_v6 = vmul.f32 %v5417_v17, %v1755_v53  ;;  %v1757_v1 = vpop.f32.mrb[41].mxu1  ;;  %v3999_v20 = vpack.i.bf16 %v5525_v56, %v5523_v52 }
 0x313   : > { %v1758_v63 = vpop.f32.mrb[42].mxu1 }
 0x314   : > { %v1888_v14 = vadd.f32 %v5422_v29, %v1845_v6  ;;  %v1846_v24 = vmul.f32 %v5417_v17, %v1758_v63  ;;  %4000 = vrot.lane.b32.xlu1 %v3999_v20, %s6577_s14  ;;  %v1760_v27 = vpop.f32.mrb[43].mxu1 }
 0x316   : > { %v1889_v18 = vadd.f32 %v5422_v29, %v1846_v24  ;;  %v5534_v37 = vmax.f32 %v1888_v14, 0.0 }
 0x318   : > { %v5536_v16 = vmax.f32 %v1889_v18, 0.0 }
 0x319   : > { %v1763_v3 = vpop.f32.mrb[44].mxu1 }
 0x31a   : > { %v1847_v23 = vmul.f32 %v5417_v17, %v1763_v3  ;;  %v1765_v47 = vpop.f32.mrb[45].mxu1  ;;  %v4004_v19 = vpack.i.bf16 %v5536_v16, %v5534_v37 }
 0x31b   : > { %v1766_v61 = vpop.f32.mrb[46].mxu1 }
 0x31c   : > { %v1890_v11 = vadd.f32 %v5422_v29, %v1847_v23  ;;  %v1848_v12 = vmul.f32 %v5417_v17, %v1766_v61  ;;  %4005 = vrot.lane.b32.xlu0 %v4004_v19, %s6577_s14  ;;  %v1768_v33 = vpop.f32.mrb[47].mxu1 }
 0x31e   : > { %v1891_v46 = vadd.f32 %v5422_v29, %v1848_v12  ;;  %v5545_v21 = vmax.f32 %v1890_v11, 0.0 }
 0x320   : > { %v5547_v45 = vmax.f32 %v1891_v46, 0.0 }
 0x321   : > { %v1771_v30 = vpop.f32.mrb[48].mxu1 }
 0x322   : > { %v1849_v4 = vmul.f32 %v5417_v17, %v1771_v30  ;;  %v1773_v41 = vpop.f32.mrb[49].mxu1  ;;  %v4009_v57 = vpack.i.bf16 %v5547_v45, %v5545_v21 }
 0x323   : > { %v1774_v51 = vpop.f32.mrb[50].mxu1 }
 0x324   : > { %v1892_v13 = vadd.f32 %v5422_v29, %v1849_v4  ;;  %v1850_v62 = vmul.f32 %v5417_v17, %v1774_v51  ;;  %4010 = vrot.lane.b32.xlu1 %v4009_v57, %s6577_s14  ;;  %v1776_v9 = vpop.f32.mrb[51].mxu1 }
 0x326   : > { %v1893_v25 = vadd.f32 %v5422_v29, %v1850_v62  ;;  %v5556_v2 = vmax.f32 %v1892_v13, 0.0 }
 0x328   : > { %v5558_v35 = vmax.f32 %v1893_v25, 0.0  ;;  %v4174_v25 = vld [vmem:[%s6551_s5] ss:$0 sm:$0xff] }
 0x329   : > { %v1779_v32 = vpop.f32.mrb[52].mxu1 }
 0x32a   : > { %v1851_v59 = vmul.f32 %v5417_v17, %v1779_v32  ;;  %v1781_v36 = vpop.f32.mrb[53].mxu1  ;;  %v4014_v43 = vpack.i.bf16 %v5558_v35, %v5556_v2 }
 0x32b   : > { %v1782_v44 = vpop.f32.mrb[54].mxu1 }
 0x32c   : > { %v1894_v8 = vadd.f32 %v5422_v29, %v1851_v59  ;;  %v1852_v53 = vmul.f32 %v5417_v17, %v1782_v44  ;;  %4015 = vrot.lane.b32.xlu0 %v4014_v43, %s6577_s14  ;;  %v1784_v6 = vpop.f32.mrb[55].mxu1 }
 0x32e   : > { %v1895_v1 = vadd.f32 %v5422_v29, %v1852_v53  ;;  %v5567_v20 = vmax.f32 %v1894_v8, 0.0 }
 0x330   : > { %v5569_v63 = vmax.f32 %v1895_v1, 0.0 }
 0x331   : > { %v1787_v14 = vpop.f32.mrb[56].mxu1 }
 0x332   : > { %v1853_v24 = vmul.f32 %v5417_v17, %v1787_v14  ;;  %v1789_v27 = vpop.f32.mrb[57].mxu1  ;;  %v4019_v18 = vpack.i.bf16 %v5569_v63, %v5567_v20 }
 0x333   : > { %v1790_v3 = vpop.f32.mrb[58].mxu1 }
 0x334   : > { %v1896_v23 = vadd.f32 %v5422_v29, %v1853_v24  ;;  %v1854_v47 = vmul.f32 %v5417_v17, %v1790_v3  ;;  %4020 = vrot.lane.b32.xlu1 %v4019_v18, %s6577_s14  ;;  %v1792_v19 = vpop.f32.mrb[59].mxu1 }
 0x336   : > { %v1897_v61 = vadd.f32 %v5422_v29, %v1854_v47  ;;  %v5578_v11 = vmax.f32 %v1896_v23, 0.0 }
 0x338   : > { %v5580_v12 = vmax.f32 %v1897_v61, 0.0 }
 0x339   : > { %v1795_v33 = vpop.f32.mrb[60].mxu1 }
 0x33a   : > { %v1855_v46 = vmul.f32 %v5417_v17, %v1795_v33  ;;  %v1797_v30 = vpop.f32.mrb[61].mxu1  ;;  %v4024_v4 = vpack.i.bf16 %v5580_v12, %v5578_v11  ;;  %v4160_v33 = vld [vmem:[%s6550_s4] sm:$0xff]  }
 0x33b   : > { %v1798_v41 = vpop.f32.mrb[62].mxu1  ;;  %3151 = vmatpush1.bf16.msra.mxu1 %v4160_v33 }
 0x33c   : > { %v1898_v57 = vadd.f32 %v5422_v29, %v1855_v46  ;;  %v1856_v51 = vmul.f32 %v5417_v17, %v1798_v41  ;;  %4025 = vrot.lane.b32.xlu0 %v4024_v4, %s6577_s14  ;;  %v1800_v13 = vpop.f32.mrb[63].mxu1  ;;  %3152 = vmatprep.subr.bf16.mxu1 %v6595_v58 }
 0x33d   : > { %v999_v62 = vpop.f32.mrb[68].mxu0 }
 0x33e   : > { %v1899_v9 = vadd.f32 %v5422_v29, %v1856_v51  ;;  %v1000_v32 = vadd.f32 %v4174_v25, %v999_v62  ;;  %v1001_v59 = vpop.f32.mrb[69].mxu0  ;;  %v5592_v43 = vmax.f32 %v1898_v57, 0.0  ;;  %v4161_v57 = vld [vmem:[%s6550_s4 + $0x8] sm:$0xff]  }
 0x33f   : > { %v1002_v36 = vpop.f32.mrb[70].mxu0  ;;  %3153 = vmatpush1.bf16.msra.mxu1 %v4161_v57 }
 0x340   : > { %v5594_v44 = vmax.f32 %v1899_v9, 0.0  ;;  %v1003_v8 = vadd.f32 %v4174_v25, %v1002_v36  ;;  %v1004_v53 = vpop.f32.mrb[71].mxu0  ;;  %v5596_v1 = vmax.f32 %v1000_v32, 0.0  ;;  %3154 = vmatprep.subr.bf16.mxu1 %v6595_v58 }
 0x341   : > { %v1803_v6 = vpop.f32.mrb[64].mxu1  ;;  %v2249_v53 = vpack.c.bf16 %v5459_v39, %v5457_v48 }
 0x342   : > { %v1857_v14 = vmul.f32 %v5417_v17, %v1803_v6  ;;  %v1805_v24 = vpop.f32.mrb[65].mxu1  ;;  %v4029_v27 = vpack.i.bf16 %v5594_v44, %v5592_v43  ;;  %v1179_v3 = vrot.slane %v5596_v1, 1  ;;  %v5602_v23 = vmax.f32 %v1003_v8, 0.0 }
 0x343   : > { %v1806_v18 = vpop.f32.mrb[66].mxu1 }
 0x344   : > { %v1900_v47 = vadd.f32 %v5422_v29, %v1857_v14  ;;  %v1858_v19 = vmul.f32 %v5417_v17, %v1806_v18  ;;  %4030 = vrot.lane.b32.xlu1 %v4029_v27, %s6577_s14  ;;  %v1808_v61 = vpop.f32.mrb[67].mxu1  ;;  %v1197_v30 = vrot.slane %v5602_v23, 1  ;;  %v4039_v4 = vpack.i.bf16 %v5602_v23, %v5596_v1 }
 0x346   : > { %v1901_v41 = vadd.f32 %v5422_v29, %v1858_v19  ;;  %v3961_v17 = vpop.permute.xlu1 %3960  ;;  %v1216_v62 = vsel %vm1198_vm3, %v1179_v3, %v1197_v30  ;;  %v1234_v9 = vsel %vm1198_vm3, %v1197_v30, %v1179_v3  ;;  %v1936_v25 = vmax.f32 %v1900_v47, 0.0 }
 0x347   : > { %v3963_v51 = vunpack.i.h.bf16 %v3961_v17  ;;  %v3962_v13 = vunpack.i.l.bf16 %v3961_v17  ;;  %v1274_v29 = vsel %vm1161_vm2, %v1234_v9, 0.0  ;;  %v2251_v19 = vpack.c.bf16 %v5470_v26, %v5468_v34 }
 0x348   : > { %v1937_v32 = vmax.f32 %v1901_v41, 0.0  ;;  %4040 = vrot.lane.b32.xlu1 %v4039_v4, %s6577_s14  ;;  %v1490_v36 = vpack.c.bf16 %v1274_v29, %v1216_v62 }
 0x349   : > { %v3671_v59 = vpack.c.bf16 %v3963_v51, %v3962_v13 }
 0x34a   : > { %v5633_v8 = vpack.c.bf16 %v1937_v32, %v1936_v25  ;;  %v4034_v6 = vpack.i.bf16 %v1937_v32, %v1936_v25  ;;  %3651 = vmatprep.mubr.msk.bf16.mxu1 %vm599_vm0, %v1490_v36 }
 0x34b   : > { %3672 = vmatmul.mubr.msk.bf16.vlgmr.msra.gmra.mrb[72].mxu0 %vm3670_vm6, %v3671_v59 }
 0x34c   : > { %3673 = vmatprep.mubr.msk.bf16.mxu0 %vm599_vm0, %v2249_v53  ;;  %4035 = vrot.lane.b32.xlu0 %v4034_v6, %s6577_s14 }
 0x34e   : > { %v3966_v14 = vpop.permute.xlu0 %3965 }
 0x34f   : > { %v3968_v24 = vunpack.i.h.bf16 %v3966_v14  ;;  %v3967_v27 = vunpack.i.l.bf16 %v3966_v14 }
 0x351   : > { %v2216_v18 = vsel %vm599_vm0, %v1906_v7, %v3967_v27  ;;  %v2217_v3 = vsel %vm599_vm0, %v1907_v49, %v3968_v24 }
 0x352   : > { %v2248_v47 = vpack.c.bf16 %v2217_v3, %v2216_v18 }
 0x354   : > { %2470 = vmatmul.mubr.bf16.gmra.mrb[76].mxu0 %v2248_v47 }
 0x355   : > { %3674 = vmatprep.mubr.msk.bf16.mxu0 %vm599_vm0, %v2251_v19 }
 0x356   : > { %v3971_v61 = vpop.permute.xlu1 %3970 }
 0x357   : > { %v3973_v33 = vunpack.i.h.bf16 %v3971_v61  ;;  %v3972_v46 = vunpack.i.l.bf16 %v3971_v61 }
 0x359   : > { %v2218_v30 = vsel %vm599_vm0, %v5443_v15, %v3972_v46  ;;  %v2219_v60 = vsel %vm599_vm0, %v5445_v50, %v3973_v33  ;;  %v2255_v50 = vpack.c.bf16 %v5492_v31, %v5490_v22 }
 0x35a   : > { %v2250_v7 = vpack.c.bf16 %v2219_v60, %v2218_v30 }
 0x35c   : > { %2478 = vmatmul.mubr.bf16.gmra.mrb[80].mxu0 %v2250_v7 }
 0x35d   : > { %3675 = vmatprep.mubr.msk.bf16.mxu0 %vm599_vm0, %v2253_v38 }
 0x35e   : > { %v3976_v49 = vpop.permute.xlu0 %3975 }
 0x35f   : > { %v3978_v4 = vunpack.i.h.bf16 %v3976_v49  ;;  %v3977_v41 = vunpack.i.l.bf16 %v3976_v49 }
 0x361   : > { %v2220_v17 = vsel %vm599_vm0, %v5457_v48, %v3977_v41  ;;  %v2221_v57 = vsel %vm599_vm0, %v5459_v39, %v3978_v4  ;;  %v2257_v39 = vpack.c.bf16 %v5503_v42, %v5501_v5 }
 0x362   : > { %v2252_v15 = vpack.c.bf16 %v2221_v57, %v2220_v17 }
 0x364   : > { %2486 = vmatmul.mubr.bf16.gmra.mrb[84].mxu0 %v2252_v15 }
 0x365   : > { %3676 = vmatprep.mubr.msk.bf16.mxu0 %vm599_vm0, %v2255_v50 }
 0x366   : > { %v3981_v51 = vpop.permute.xlu1 %3980 }
 0x367   : > { %v3983_v13 = vunpack.i.h.bf16 %v3981_v51  ;;  %v3982_v62 = vunpack.i.l.bf16 %v3981_v51 }
 0x369   : > { %v2222_v9 = vsel %vm599_vm0, %v5468_v34, %v3982_v62  ;;  %v2223_v25 = vsel %vm599_vm0, %v5470_v26, %v3983_v13  ;;  %v2259_v26 = vpack.c.bf16 %v5514_v55, %v5512_v10  ;;  %v1064_v13 = vrot.slane %v5596_v1, 7 }
 0x36a   : > { %v2254_v48 = vpack.c.bf16 %v2223_v25, %v2222_v9  ;;  %v1082_v62 = vrot.slane %v5602_v23, 7  ;;  %v2269_v25 = vpack.c.bf16 %v5569_v63, %v5567_v20 }
 0x36c   : > { %2494 = vmatmul.mubr.bf16.gmra.mrb[88].mxu0 %v2254_v48  ;;  %v1119_v48 = vsel %vm1083_vm1, %v1082_v62, %v1064_v13 }
 0x36d   : > { %3677 = vmatprep.mubr.msk.bf16.mxu0 %vm599_vm0, %v2257_v39  ;;  %v1101_v39 = vsel %vm1083_vm1, %v1064_v13, %v1082_v62 }
 0x36e   : > { %v3986_v32 = vpop.permute.xlu0 %3985 }
 0x36f   : > { %v3988_v29 = vunpack.i.h.bf16 %v3986_v32  ;;  %v3987_v59 = vunpack.i.l.bf16 %v3986_v32 }
 0x371   : > { %v2224_v36 = vsel %vm599_vm0, %v5479_v54, %v3987_v59  ;;  %v2225_v53 = vsel %vm599_vm0, %v5481_v40, %v3988_v29  ;;  %v2261_v40 = vpack.c.bf16 %v5525_v56, %v5523_v52  ;;  %v2271_v59 = vpack.c.bf16 %v5580_v12, %v5578_v11 }
 0x372   : > { %v2256_v34 = vpack.c.bf16 %v2225_v53, %v2224_v36 }
 0x374   : > { %2502 = vmatmul.mubr.bf16.gmra.mrb[92].mxu0 %v2256_v34 }
 0x375   : > { %3678 = vmatprep.mubr.msk.bf16.mxu0 %vm599_vm0, %v2259_v26 }
 0x376   : > { %v3991_v6 = vpop.permute.xlu1 %3990 }
 0x377   : > { %v3993_v14 = vunpack.i.h.bf16 %v3991_v6  ;;  %v3992_v24 = vunpack.i.l.bf16 %v3991_v6 }
 0x379   : > { %v2226_v27 = vsel %vm599_vm0, %v5490_v22, %v3992_v24  ;;  %v2227_v18 = vsel %vm599_vm0, %v5492_v31, %v3993_v14  ;;  %v2263_v31 = vpack.c.bf16 %v5536_v16, %v5534_v37  ;;  %v4162_v14 = vld [vmem:[%s6550_s4 + $0x10] sm:$0xff]  }
 0x37a   : > { %v2258_v54 = vpack.c.bf16 %v2227_v18, %v2226_v27  ;;  %3155 = vmatpush1.bf16.msra.mxu1 %v4162_v14 }
 0x37b   : > { %3156 = vmatprep.subr.bf16.mxu1 %v6595_v58 }
 0x37c   : > { %2510 = vmatmul.mubr.bf16.gmra.mrb[96].mxu0 %v2258_v54 }
 0x37d   : > { %3679 = vmatprep.mubr.msk.bf16.mxu0 %vm599_vm0, %v2261_v40 }
 0x37e   : > { %v3996_v3 = vpop.permute.xlu0 %3995 }
 0x37f   : > { %v3998_v47 = vunpack.i.h.bf16 %v3996_v3  ;;  %v3997_v19 = vunpack.i.l.bf16 %v3996_v3  ;;  %v4163_v3 = vld [vmem:[%s6550_s4 + $0x18] sm:$0xff]  }
 0x380   : > { %3157 = vmatpush1.bf16.msra.mxu1 %v4163_v3 }
 0x381   : > { %v2228_v61 = vsel %vm599_vm0, %v5501_v5, %v3997_v19  ;;  %v2229_v33 = vsel %vm599_vm0, %v5503_v42, %v3998_v47  ;;  %v2265_v42 = vpack.c.bf16 %v5547_v45, %v5545_v21  ;;  %3158 = vmatprep.subr.bf16.mxu1 %v6595_v58 }
 0x382   : > { %v2260_v22 = vpack.c.bf16 %v2229_v33, %v2228_v61 }
 0x384   : > { %2518 = vmatmul.mubr.bf16.gmra.mrb[100].mxu0 %v2260_v22 }
 0x385   : > { %3680 = vmatprep.mubr.msk.bf16.mxu0 %vm599_vm0, %v2263_v31 }
 0x386   : > { %v4001_v46 = vpop.permute.xlu1 %4000 }
 0x387   : > { %v4003_v30 = vunpack.i.h.bf16 %v4001_v46  ;;  %v4002_v60 = vunpack.i.l.bf16 %v4001_v46  ;;  %v4289_v46 = vmov 0.0|0.0  }
 0x389   : > { %v2230_v7 = vsel %vm599_vm0, %v5512_v10, %v4002_v60  ;;  %v2231_v38 = vsel %vm599_vm0, %v5514_v55, %v4003_v30  ;;  %v2267_v55 = vpack.c.bf16 %v5558_v35, %v5556_v2 }
 0x38a   : > { %v2262_v5 = vpack.c.bf16 %v2231_v38, %v2230_v7 }
 0x38c   : > { %2526 = vmatmul.mubr.bf16.gmra.mrb[104].mxu0 %v2262_v5 }
 0x38d   : > { %3681 = vmatprep.mubr.msk.bf16.mxu0 %vm599_vm0, %v2265_v42 }
 0x38e   : > { %v4006_v49 = vpop.permute.xlu0 %4005 }
 0x38f   : > { %v4008_v4 = vunpack.i.h.bf16 %v4006_v49  ;;  %v4007_v41 = vunpack.i.l.bf16 %v4006_v49 }
 0x391   : > { %v2232_v17 = vsel %vm599_vm0, %v5523_v52, %v4007_v41  ;;  %v2233_v57 = vsel %vm599_vm0, %v5525_v56, %v4008_v4  ;;  %v4164_v4 = vld [vmem:[%s6550_s4 + $0x20] sm:$0xff]   ;;  %v4165_v41 = vld [vmem:[%s6550_s4 + $0x28] sm:$0xff]  }
 0x392   : > { %v2264_v10 = vpack.c.bf16 %v2233_v57, %v2232_v17  ;;  %3159 = vmatpush1.bf16.msra.mxu1 %v4164_v4  ;;  %v4168_v17 = vld [vmem:[%s6550_s4 + $0x40] sm:$0xff]   ;;  %v4169_v57 = vld [vmem:[%s6550_s4 + $0x48] sm:$0xff]  }
 0x393   : > { %3160 = vmatprep.subr.bf16.mxu1 %v6595_v58 }
 0x394   : > { %2534 = vmatmul.mubr.bf16.gmra.mrb[108].mxu0 %v2264_v10  ;;  %v4170_v10 = vld [vmem:[%s6550_s4 + $0x50] sm:$0xff]  }
 0x395   : > { %3682 = vmatprep.mubr.msk.bf16.mxu0 %vm599_vm0, %v2267_v55  ;;  %v4171_v55 = vld [vmem:[%s6550_s4 + $0x58] sm:$0xff]  }
 0x396   : > { %v4011_v15 = vpop.permute.xlu1 %4010  ;;  %3161 = vmatpush1.bf16.msra.mxu1 %v4165_v41 }
 0x397   : > { %v4013_v50 = vunpack.i.h.bf16 %v4011_v15  ;;  %v4012_v51 = vunpack.i.l.bf16 %v4011_v15  ;;  %3162 = vmatprep.subr.bf16.mxu1 %v6595_v58  ;;  %v5793_v15 = vld [vmem:[%s6554_s8] ss:$0 sm:$0xff] }
 0x399   : > { %v2234_v52 = vsel %vm599_vm0, %v5534_v37, %v4012_v51  ;;  %v2235_v56 = vsel %vm599_vm0, %v5536_v16, %v4013_v50 }
 0x39a   : > { %v2266_v9 = vpack.c.bf16 %v2235_v56, %v2234_v52 }
 0x39c   : > { %2542 = vmatmul.mubr.bf16.gmra.mrb[112].mxu0 %v2266_v9 }
 0x39d   : > { %3683 = vmatprep.mubr.msk.bf16.mxu0 %vm599_vm0, %v2269_v25 }
 0x39e   : > { %v4016_v1 = vpop.permute.xlu0 %4015 }
 0x39f   : > { %v4018_v23 = vunpack.i.h.bf16 %v4016_v1  ;;  %v4017_v32 = vunpack.i.l.bf16 %v4016_v1 }
 0x3a1   : > { %v2236_v37 = vsel %vm599_vm0, %v5545_v21, %v4017_v32  ;;  %v2237_v16 = vsel %vm599_vm0, %v5547_v45, %v4018_v23  ;;  %v2273_v45 = vpack.c.bf16 %v5594_v44, %v5592_v43 }
 0x3a2   : > { %v2268_v29 = vpack.c.bf16 %v2237_v16, %v2236_v37 }
 0x3a4   : > { %2550 = vmatmul.mubr.bf16.gmra.mrb[116].mxu0 %v2268_v29 }
 0x3a5   : > { %3684 = vmatprep.mubr.msk.bf16.mxu0 %vm599_vm0, %v2271_v59 }
 0x3a6   : > { %v4021_v36 = vpop.permute.xlu1 %4020 }
 0x3a7   : > { %v4023_v53 = vunpack.i.h.bf16 %v4021_v36  ;;  %v4022_v34 = vunpack.i.l.bf16 %v4021_v36 }
 0x3a9   : > { %v2238_v26 = vsel %vm599_vm0, %v5556_v2, %v4022_v34  ;;  %v2239_v6 = vsel %vm599_vm0, %v5558_v35, %v4023_v53 }
 0x3aa   : > { %v2270_v21 = vpack.c.bf16 %v2239_v6, %v2238_v26 }
 0x3ac   : > { %2558 = vmatmul.mubr.bf16.gmra.mrb[120].mxu0 %v2270_v21 }
 0x3ad   : > { %3685 = vmatprep.mubr.msk.bf16.mxu0 %vm599_vm0, %v2273_v45 }
 0x3ae   : > { %v4026_v24 = vpop.permute.xlu0 %4025 }
 0x3af   : > { %v4028_v27 = vunpack.i.h.bf16 %v4026_v24  ;;  %v4027_v18 = vunpack.i.l.bf16 %v4026_v24 }
 0x3b1   : > { %v2240_v2 = vsel %vm599_vm0, %v5567_v20, %v4027_v18  ;;  %v2241_v35 = vsel %vm599_vm0, %v5569_v63, %v4028_v27 }
 0x3b2   : > { %v2272_v54 = vpack.c.bf16 %v2241_v35, %v2240_v2 }
 0x3b4   : > { %2566 = vmatmul.mubr.bf16.gmra.mrb[124].mxu0 %v2272_v54 }
 0x3b5   : > { %3686 = vmatprep.mubr.msk.bf16.mxu0 %vm599_vm0, %v5633_v8  ;;  %v1158_v8 = vsel %vm1045_vm4, %v1119_v48, 0.0 }
 0x3b6   : > { %v4031_v40 = vpop.permute.xlu1 %4030 }
 0x3b7   : > { %v4033_v47 = vunpack.i.h.bf16 %v4031_v40  ;;  %v4032_v19 = vunpack.i.l.bf16 %v4031_v40 }
 0x3b9   : > { %v2242_v61 = vsel %vm599_vm0, %v5578_v11, %v4032_v19  ;;  %v2243_v20 = vsel %vm599_vm0, %v5580_v12, %v4033_v47 }
 0x3ba   : > { %v2274_v63 = vpack.c.bf16 %v2243_v20, %v2242_v61  ;;  %v4041_v33 = vpop.permute.xlu1 %4040 }
 0x3bb   : > { %v4043_v22 = vunpack.i.h.bf16 %v4041_v33  ;;  %v4042_v31 = vunpack.i.l.bf16 %v4041_v33 }
 0x3bc   : > { %2574 = vmatmul.mubr.bf16.gmra.mrb[128].mxu0 %v2274_v63 }
 0x3bd   : > { %2581 = vmatprep.mubr.bf16.mxu0 %v4289_v46  ;;  %v1453_v30 = vsel %vm599_vm0, %v1158_v8, %v4042_v31  ;;  %v1454_v60 = vsel %vm599_vm0, %v1101_v39, %v4043_v22 }
 0x3be   : > { %v4036_v11 = vpop.permute.xlu0 %4035  ;;  %v1489_v7 = vpack.c.bf16 %v1454_v60, %v1453_v30 }
 0x3bf   : > { %v4038_v38 = vunpack.i.h.bf16 %v4036_v11  ;;  %v4037_v12 = vunpack.i.l.bf16 %v4036_v11 }
 0x3c0   : > { %1810 = vmatmul.mubr.bf16.gmra.mrb[68].mxu1 %v1489_v7 }
 0x3c1   : > { %v2244_v5 = vsel %vm599_vm0, %v5592_v43, %v4037_v12  ;;  %v2245_v42 = vsel %vm599_vm0, %v5594_v44, %v4038_v38  ;;  %v4166_v43 = vld [vmem:[%s6550_s4 + $0x30] sm:$0xff]   ;;  %v4167_v44 = vld [vmem:[%s6550_s4 + $0x38] sm:$0xff]  }
 0x3c2   : > { %v2276_v49 = vpack.c.bf16 %v2245_v42, %v2244_v5  ;;  %3163 = vmatpush1.bf16.msra.mxu1 %v4166_v43 }
 0x3c3   : > { %3164 = vmatprep.subr.bf16.mxu1 %v6595_v58 }
 0x3c4   : > { %2582 = vmatmul.mubr.bf16.gmra.mrb[132].mxu0 %v2276_v49 }
 0x3c6   : > { %3165 = vmatpush1.bf16.msra.mxu1 %v4167_v44 }
 0x3c7   : > { %3166 = vmatprep.subr.bf16.mxu1 %v6595_v58 }
 0x3ca   : > { %3167 = vmatpush1.bf16.msra.mxu1 %v4168_v17 }
 0x3cb   : > { %3168 = vmatprep.subr.bf16.mxu1 %v6595_v58 }
 0x3ce   : > { %3169 = vmatpush1.bf16.msra.mxu1 %v4169_v57 }
 0x3cf   : > { %3170 = vmatprep.subr.bf16.mxu1 %v6595_v58 }
 0x3d2   : > { %3171 = vmatpush1.bf16.msra.mxu1 %v4170_v10 }
 0x3d3   : > { %3172 = vmatprep.subr.bf16.mxu1 %v6595_v58 }
 0x3d6   : > { %3173 = vmatpush1.bf16.msra.mxu1 %v4171_v55 }
 0x41e   : > { %v2463_v50 = vpop.f32.mrb[72].mxu0 }
 0x41f   : > { %v2464_v51 = vadd.f32 %v5793_v15, %v2463_v50  ;;  %v2465_v13 = vpop.f32.mrb[73].mxu0 }
 0x420   : > { %v2466_v62 = vpop.f32.mrb[74].mxu0 }
 0x421   : > { %v2590_v52 = vmax.f32 %v2464_v51, 0.0  ;;  %v2467_v56 = vadd.f32 %v5793_v15, %v2466_v62  ;;  %v2468_v9 = vpop.f32.mrb[75].mxu0 }
 0x423   : > { %v2591_v58 = vmax.f32 %v2467_v56, 0.0  ;;  %v2622_v25 = vrot.slane %v2590_v52, 7  ;;  %v2718_v48 = vrot.slane %v2590_v52, 1 }
 0x425   : > { %v2638_v39 = vrot.slane %v2591_v58, 7  ;;  %v2734_v1 = vrot.slane %v2591_v58, 1  ;;  %v4044_v23 = vpack.i.bf16 %v2591_v58, %v2590_v52 }
 0x427   : > { %v2471_v32 = vpop.f32.mrb[76].mxu0  ;;  %4045 = vrot.lane.b32.xlu0 %v4044_v23, %s6577_s14  ;;  %v2750_v37 = vsel %vm1198_vm3, %v2718_v48, %v2734_v1  ;;  %v2766_v16 = vsel %vm1198_vm3, %v2734_v1, %v2718_v48  ;;  %v5804_v29 = vsel %vm1083_vm1, %v2622_v25, %v2638_v39  ;;  %v5808_v59 = vsel %vm1083_vm1, %v2638_v39, %v2622_v25 }
 0x428   : > { %v2472_v36 = vadd.f32 %v5793_v15, %v2471_v32  ;;  %v2473_v53 = vpop.f32.mrb[77].mxu0  ;;  %v2783_v34 = vsel %vm1161_vm2, %v2766_v16, 0.0 }
 0x429   : > { %v2474_v26 = vpop.f32.mrb[78].mxu0  ;;  %v2975_v6 = vpack.c.bf16 %v2783_v34, %v2750_v37 }
 0x42a   : > { %v2592_v21 = vmax.f32 %v2472_v36, 0.0  ;;  %v2475_v45 = vadd.f32 %v5793_v15, %v2474_v26  ;;  %v2476_v14 = vpop.f32.mrb[79].mxu0 }
 0x42b   : > { %3699 = vmatprep.mubr.msk.bf16.mxu1 %vm599_vm0, %v2975_v6 }
 0x42c   : > { %v2593_v24 = vmax.f32 %v2475_v45, 0.0  ;;  %v2623_v27 = vrot.slane %v2592_v21, 7  ;;  %v2719_v18 = vrot.slane %v2592_v21, 1 }
 0x42e   : > { %v2639_v2 = vrot.slane %v2593_v24, 7  ;;  %v2735_v35 = vrot.slane %v2593_v24, 1  ;;  %v4049_v54 = vpack.i.bf16 %v2593_v24, %v2592_v21 }
 0x42f   : > { %v2479_v40 = vpop.f32.mrb[80].mxu0 }
 0x430   : > { %v2480_v3 = vadd.f32 %v5793_v15, %v2479_v40  ;;  %v2481_v47 = vpop.f32.mrb[81].mxu0  ;;  %4050 = vrot.lane.b32.xlu1 %v4049_v54, %s6577_s14  ;;  %v5819_v19 = vsel %vm1198_vm3, %v2719_v18, %v2735_v35  ;;  %v2767_v61 = vsel %vm1198_vm3, %v2735_v35, %v2719_v18  ;;  %v5825_v20 = vsel %vm1083_vm1, %v2623_v27, %v2639_v2 }
 0x431   : > { %v2482_v63 = vpop.f32.mrb[82].mxu0  ;;  %v5829_v33 = vsel %vm1161_vm2, %v2767_v61, 0.0  ;;  %v5833_v8 = vsel %vm1083_vm1, %v2639_v2, %v2623_v27 }
 0x432   : > { %v2594_v22 = vmax.f32 %v2480_v3, 0.0  ;;  %v2483_v31 = vadd.f32 %v5793_v15, %v2482_v63  ;;  %v2484_v46 = vpop.f32.mrb[83].mxu0 }
 0x434   : > { %v2595_v60 = vmax.f32 %v2483_v31, 0.0  ;;  %v2624_v11 = vrot.slane %v2594_v22, 7  ;;  %v2720_v7 = vrot.slane %v2594_v22, 1 }
 0x436   : > { %v2640_v38 = vrot.slane %v2595_v60, 7  ;;  %v2736_v12 = vrot.slane %v2595_v60, 1  ;;  %v4054_v5 = vpack.i.bf16 %v2595_v60, %v2594_v22 }
 0x437   : > { %v2487_v42 = vpop.f32.mrb[84].mxu0 }
 0x438   : > { %v2488_v49 = vadd.f32 %v5793_v15, %v2487_v42  ;;  %v2489_v4 = vpop.f32.mrb[85].mxu0  ;;  %4055 = vrot.lane.b32.xlu0 %v4054_v5, %s6577_s14  ;;  %v5842_v41 = vsel %vm1198_vm3, %v2720_v7, %v2736_v12  ;;  %v2768_v43 = vsel %vm1198_vm3, %v2736_v12, %v2720_v7  ;;  %v5848_v44 = vsel %vm1083_vm1, %v2624_v11, %v2640_v38 }
 0x439   : > { %v2490_v17 = vpop.f32.mrb[86].mxu0  ;;  %v5852_v57 = vsel %vm1161_vm2, %v2768_v43, 0.0  ;;  %v5856_v10 = vsel %vm1083_vm1, %v2640_v38, %v2624_v11 }
 0x43a   : > { %v2596_v55 = vmax.f32 %v2488_v49, 0.0  ;;  %v2491_v50 = vadd.f32 %v5793_v15, %v2490_v17  ;;  %v2492_v51 = vpop.f32.mrb[87].mxu0  ;;  %v6641_v0 = vpack.c.bf16 %v5852_v57, %v5842_v41 }
 0x43c   : > { %v2597_v62 = vmax.f32 %v2491_v50, 0.0  ;;  %v2625_v52 = vrot.slane %v2596_v55, 7  ;;  %v2721_v56 = vrot.slane %v2596_v55, 1 }
 0x43e   : > { %v2641_v9 = vrot.slane %v2597_v62, 7  ;;  %v2737_v58 = vrot.slane %v2597_v62, 1  ;;  %v4059_v25 = vpack.i.bf16 %v2597_v62, %v2596_v55 }
 0x43f   : > { %v2495_v48 = vpop.f32.mrb[88].mxu0 }
 0x440   : > { %v2496_v39 = vadd.f32 %v5793_v15, %v2495_v48  ;;  %v2497_v1 = vpop.f32.mrb[89].mxu0  ;;  %4060 = vrot.lane.b32.xlu1 %v4059_v25, %s6577_s14  ;;  %v5865_v23 = vsel %vm1198_vm3, %v2721_v56, %v2737_v58  ;;  %v2769_v32 = vsel %vm1198_vm3, %v2737_v58, %v2721_v56  ;;  %v5871_v37 = vsel %vm1083_vm1, %v2625_v52, %v2641_v9 }
 0x441   : > { %v2498_v16 = vpop.f32.mrb[90].mxu0  ;;  %v5875_v36 = vsel %vm1161_vm2, %v2769_v32, 0.0  ;;  %v5879_v53 = vsel %vm1083_vm1, %v2641_v9, %v2625_v52 }
 0x442   : > { %v2598_v34 = vmax.f32 %v2496_v39, 0.0  ;;  %v2499_v26 = vadd.f32 %v5793_v15, %v2498_v16  ;;  %v2500_v6 = vpop.f32.mrb[91].mxu0 }
 0x444   : > { %v2599_v45 = vmax.f32 %v2499_v26, 0.0  ;;  %v2626_v14 = vrot.slane %v2598_v34, 7  ;;  %v2722_v24 = vrot.slane %v2598_v34, 1 }
 0x446   : > { %v2642_v27 = vrot.slane %v2599_v45, 7  ;;  %v2738_v18 = vrot.slane %v2599_v45, 1  ;;  %v4064_v2 = vpack.i.bf16 %v2599_v45, %v2598_v34 }
 0x447   : > { %v2503_v35 = vpop.f32.mrb[92].mxu0 }
 0x448   : > { %v2504_v54 = vadd.f32 %v5793_v15, %v2503_v35  ;;  %v2505_v40 = vpop.f32.mrb[93].mxu0  ;;  %4065 = vrot.lane.b32.xlu0 %v4064_v2, %s6577_s14  ;;  %v5888_v3 = vsel %vm1198_vm3, %v2722_v24, %v2738_v18  ;;  %v2770_v47 = vsel %vm1198_vm3, %v2738_v18, %v2722_v24  ;;  %v5894_v61 = vsel %vm1083_vm1, %v2626_v14, %v2642_v27 }
 0x449   : > { %v2506_v63 = vpop.f32.mrb[94].mxu0  ;;  %v5898_v22 = vsel %vm1161_vm2, %v2770_v47, 0.0  ;;  %v5902_v31 = vsel %vm1083_vm1, %v2642_v27, %v2626_v14 }
 0x44a   : > { %v2600_v46 = vmax.f32 %v2504_v54, 0.0  ;;  %v2507_v60 = vadd.f32 %v5793_v15, %v2506_v63  ;;  %v2508_v11 = vpop.f32.mrb[95].mxu0 }
 0x44c   : > { %v2601_v38 = vmax.f32 %v2507_v60, 0.0  ;;  %v2627_v12 = vrot.slane %v2600_v46, 7  ;;  %v2723_v5 = vrot.slane %v2600_v46, 1 }
 0x44e   : > { %v2643_v42 = vrot.slane %v2601_v38, 7  ;;  %v2739_v49 = vrot.slane %v2601_v38, 1  ;;  %v4069_v4 = vpack.i.bf16 %v2601_v38, %v2600_v46 }
 0x44f   : > { %v2511_v43 = vpop.f32.mrb[96].mxu0 }
 0x450   : > { %v2512_v17 = vadd.f32 %v5793_v15, %v2511_v43  ;;  %v2513_v55 = vpop.f32.mrb[97].mxu0  ;;  %4070 = vrot.lane.b32.xlu1 %v4069_v4, %s6577_s14  ;;  %v5911_v50 = vsel %vm1198_vm3, %v2723_v5, %v2739_v49  ;;  %v2771_v51 = vsel %vm1198_vm3, %v2739_v49, %v2723_v5  ;;  %v5917_v62 = vsel %vm1083_vm1, %v2627_v12, %v2643_v42 }
 0x451   : > { %v2514_v52 = vpop.f32.mrb[98].mxu0  ;;  %v5921_v56 = vsel %vm1161_vm2, %v2771_v51, 0.0  ;;  %v5925_v9 = vsel %vm1083_vm1, %v2643_v42, %v2627_v12 }
 0x452   : > { %v2602_v58 = vmax.f32 %v2512_v17, 0.0  ;;  %v2515_v25 = vadd.f32 %v5793_v15, %v2514_v52  ;;  %v2516_v48 = vpop.f32.mrb[99].mxu0 }
 0x454   : > { %v2603_v1 = vmax.f32 %v2515_v25, 0.0  ;;  %v2628_v32 = vrot.slane %v2602_v58, 7  ;;  %v2724_v16 = vrot.slane %v2602_v58, 1 }
 0x456   : > { %v2644_v34 = vrot.slane %v2603_v1, 7  ;;  %v2740_v26 = vrot.slane %v2603_v1, 1  ;;  %v4074_v6 = vpack.i.bf16 %v2603_v1, %v2602_v58 }
 0x457   : > { %v2519_v45 = vpop.f32.mrb[100].mxu0 }
 0x458   : > { %v2520_v14 = vadd.f32 %v5793_v15, %v2519_v45  ;;  %v2521_v24 = vpop.f32.mrb[101].mxu0  ;;  %4075 = vrot.lane.b32.xlu0 %v4074_v6, %s6577_s14  ;;  %v5934_v27 = vsel %vm1198_vm3, %v2724_v16, %v2740_v26  ;;  %v2772_v18 = vsel %vm1198_vm3, %v2740_v26, %v2724_v16  ;;  %v5940_v2 = vsel %vm1083_vm1, %v2628_v32, %v2644_v34 }
 0x459   : > { %v2522_v35 = vpop.f32.mrb[102].mxu0  ;;  %v5944_v54 = vsel %vm1161_vm2, %v2772_v18, 0.0  ;;  %v5948_v40 = vsel %vm1083_vm1, %v2644_v34, %v2628_v32 }
 0x45a   : > { %v2604_v47 = vmax.f32 %v2520_v14, 0.0  ;;  %v2523_v63 = vadd.f32 %v5793_v15, %v2522_v35  ;;  %v2524_v46 = vpop.f32.mrb[103].mxu0 }
 0x45c   : > { %v2605_v11 = vmax.f32 %v2523_v63, 0.0  ;;  %v2629_v38 = vrot.slane %v2604_v47, 7  ;;  %v2725_v12 = vrot.slane %v2604_v47, 1 }
 0x45e   : > { %v2645_v5 = vrot.slane %v2605_v11, 7  ;;  %v2741_v42 = vrot.slane %v2605_v11, 1  ;;  %v4079_v49 = vpack.i.bf16 %v2605_v11, %v2604_v47 }
 0x45f   : > { %v2527_v4 = vpop.f32.mrb[104].mxu0 }
 0x460   : > { %v2528_v43 = vadd.f32 %v5793_v15, %v2527_v4  ;;  %v2529_v17 = vpop.f32.mrb[105].mxu0  ;;  %4080 = vrot.lane.b32.xlu1 %v4079_v49, %s6577_s14  ;;  %v5957_v55 = vsel %vm1198_vm3, %v2725_v12, %v2741_v42  ;;  %v2773_v51 = vsel %vm1198_vm3, %v2741_v42, %v2725_v12  ;;  %v5963_v52 = vsel %vm1083_vm1, %v2629_v38, %v2645_v5 }
 0x461   : > { %v2530_v58 = vpop.f32.mrb[106].mxu0  ;;  %v5967_v25 = vsel %vm1161_vm2, %v2773_v51, 0.0  ;;  %v5971_v48 = vsel %vm1083_vm1, %v2645_v5, %v2629_v38 }
 0x462   : > { %v2606_v1 = vmax.f32 %v2528_v43, 0.0  ;;  %v2531_v32 = vadd.f32 %v5793_v15, %v2530_v58  ;;  %v2532_v16 = vpop.f32.mrb[107].mxu0 }
 0x464   : > { %v2607_v26 = vmax.f32 %v2531_v32, 0.0  ;;  %v2630_v6 = vrot.slane %v2606_v1, 7  ;;  %v2726_v45 = vrot.slane %v2606_v1, 1 }
 0x466   : > { %v2646_v14 = vrot.slane %v2607_v26, 7  ;;  %v2742_v24 = vrot.slane %v2607_v26, 1  ;;  %v4084_v18 = vpack.i.bf16 %v2607_v26, %v2606_v1 }
 0x467   : > { %v2535_v35 = vpop.f32.mrb[108].mxu0 }
 0x468   : > { %v2536_v47 = vadd.f32 %v5793_v15, %v2535_v35  ;;  %v2537_v63 = vpop.f32.mrb[109].mxu0  ;;  %4085 = vrot.lane.b32.xlu0 %v4084_v18, %s6577_s14  ;;  %v5980_v46 = vsel %vm1198_vm3, %v2726_v45, %v2742_v24  ;;  %v2774_v11 = vsel %vm1198_vm3, %v2742_v24, %v2726_v45  ;;  %v5986_v38 = vsel %vm1083_vm1, %v2630_v6, %v2646_v14 }
 0x469   : > { %v2538_v12 = vpop.f32.mrb[110].mxu0  ;;  %v5990_v5 = vsel %vm1161_vm2, %v2774_v11, 0.0  ;;  %v5994_v42 = vsel %vm1083_vm1, %v2646_v14, %v2630_v6 }
 0x46a   : > { %v2608_v49 = vmax.f32 %v2536_v47, 0.0  ;;  %v2539_v4 = vadd.f32 %v5793_v15, %v2538_v12  ;;  %v2540_v43 = vpop.f32.mrb[111].mxu0 }
 0x46c   : > { %v2609_v51 = vmax.f32 %v2539_v4, 0.0  ;;  %v2631_v58 = vrot.slane %v2608_v49, 7  ;;  %v2727_v1 = vrot.slane %v2608_v49, 1 }
 0x46e   : > { %v2647_v32 = vrot.slane %v2609_v51, 7  ;;  %v2743_v16 = vrot.slane %v2609_v51, 1  ;;  %v4089_v26 = vpack.i.bf16 %v2609_v51, %v2608_v49 }
 0x46f   : > { %v2543_v45 = vpop.f32.mrb[112].mxu0 }
 0x470   : > { %v2544_v24 = vadd.f32 %v5793_v15, %v2543_v45  ;;  %v2545_v18 = vpop.f32.mrb[113].mxu0  ;;  %4090 = vrot.lane.b32.xlu1 %v4089_v26, %s6577_s14  ;;  %v6003_v6 = vsel %vm1198_vm3, %v2727_v1, %v2743_v16  ;;  %v2775_v14 = vsel %vm1198_vm3, %v2743_v16, %v2727_v1  ;;  %v6009_v35 = vsel %vm1083_vm1, %v2631_v58, %v2647_v32 }
 0x471   : > { %v2546_v47 = vpop.f32.mrb[114].mxu0  ;;  %v6013_v63 = vsel %vm1161_vm2, %v2775_v14, 0.0  ;;  %v6017_v11 = vsel %vm1083_vm1, %v2647_v32, %v2631_v58 }
 0x472   : > { %v2610_v12 = vmax.f32 %v2544_v24, 0.0  ;;  %v2547_v49 = vadd.f32 %v5793_v15, %v2546_v47  ;;  %v2548_v4 = vpop.f32.mrb[115].mxu0 }
 0x474   : > { %v2611_v51 = vmax.f32 %v2547_v49, 0.0  ;;  %v2632_v1 = vrot.slane %v2610_v12, 7  ;;  %v2728_v16 = vrot.slane %v2610_v12, 1 }
 0x476   : > { %v2648_v26 = vrot.slane %v2611_v51, 7  ;;  %v2744_v45 = vrot.slane %v2611_v51, 1  ;;  %v4094_v18 = vpack.i.bf16 %v2611_v51, %v2610_v12 }
 0x477   : > { %v2551_v17 = vpop.f32.mrb[116].mxu0 }
 0x478   : > { %v2552_v14 = vadd.f32 %v5793_v15, %v2551_v17  ;;  %v2553_v34 = vpop.f32.mrb[117].mxu0  ;;  %4095 = vrot.lane.b32.xlu0 %v4094_v18, %s6577_s14  ;;  %v6026_v58 = vsel %vm1198_vm3, %v2728_v16, %v2744_v45  ;;  %v2776_v32 = vsel %vm1198_vm3, %v2744_v45, %v2728_v16  ;;  %v6032_v24 = vsel %vm1083_vm1, %v2632_v1, %v2648_v26 }
 0x479   : > { %6627 = vst [vmem:[#allocation5_spill] sm:$0xff] %v6026_v58  ;;  %6628 = vst [vmem:[#allocation7_spill] sm:$0xff] %v6032_v24  ;;  %v2554_v47 = vpop.f32.mrb[118].mxu0  ;;  %v6036_v12 = vsel %vm1161_vm2, %v2776_v32, 0.0  ;;  %v6040_v34 = vsel %vm1083_vm1, %v2648_v26, %v2632_v1 }
 0x47a   : > { %6629 = vst [vmem:[#allocation6_spill] sm:$0xff] %v6040_v34  ;;  %v2612_v17 = vmax.f32 %v2552_v14, 0.0  ;;  %v2555_v49 = vadd.f32 %v5793_v15, %v2554_v47  ;;  %v2556_v4 = vpop.f32.mrb[119].mxu0 }
 0x47c   : > { %v2613_v16 = vmax.f32 %v2555_v49, 0.0  ;;  %v2633_v45 = vrot.slane %v2612_v17, 7  ;;  %v2729_v18 = vrot.slane %v2612_v17, 1 }
 0x47e   : > { %v2649_v43 = vrot.slane %v2613_v16, 7  ;;  %v2745_v60 = vrot.slane %v2613_v16, 1  ;;  %v4099_v39 = vpack.i.bf16 %v2613_v16, %v2612_v17 }
 0x47f   : > { %v2559_v7 = vpop.f32.mrb[120].mxu0 }
 0x480   : > { %v2560_v32 = vadd.f32 %v5793_v15, %v2559_v7  ;;  %v2561_v21 = vpop.f32.mrb[121].mxu0  ;;  %4100 = vrot.lane.b32.xlu1 %v4099_v39, %s6577_s14  ;;  %v6049_v1 = vsel %vm1198_vm3, %v2729_v18, %v2745_v60  ;;  %v2777_v26 = vsel %vm1198_vm3, %v2745_v60, %v2729_v18  ;;  %v6055_v14 = vsel %vm1083_vm1, %v2633_v45, %v2649_v43 }
 0x481   : > { %6630 = vst [vmem:[#allocation10_spill] sm:$0xff] %v6049_v1  ;;  %6631 = vst [vmem:[#allocation8_spill] sm:$0xff] %v6055_v14  ;;  %v2562_v47 = vpop.f32.mrb[122].mxu0  ;;  %v6059_v17 = vsel %vm1161_vm2, %v2777_v26, 0.0  ;;  %v6063_v21 = vsel %vm1083_vm1, %v2649_v43, %v2633_v45 }
 0x482   : > { %6632 = vst [vmem:[#allocation11_spill] sm:$0xff] %v6059_v17  ;;  %6633 = vst [vmem:[#allocation9_spill] sm:$0xff] %v6063_v21  ;;  %v2614_v7 = vmax.f32 %v2560_v32, 0.0  ;;  %v2563_v39 = vadd.f32 %v5793_v15, %v2562_v47  ;;  %v2564_v49 = vpop.f32.mrb[123].mxu0 }
 0x484   : > { %v2615_v4 = vmax.f32 %v2563_v39, 0.0  ;;  %v2634_v16 = vrot.slane %v2614_v7, 7  ;;  %v2730_v18 = vrot.slane %v2614_v7, 1 }
 0x486   : > { %v2650_v51 = vrot.slane %v2615_v4, 7  ;;  %v2746_v13 = vrot.slane %v2615_v4, 1  ;;  %v4104_v30 = vpack.i.bf16 %v2615_v4, %v2614_v7 }
 0x487   : > { %v2567_v14 = vpop.f32.mrb[124].mxu0 }
 0x488   : > { %v2568_v26 = vadd.f32 %v5793_v15, %v2567_v14  ;;  %v2569_v24 = vpop.f32.mrb[125].mxu0  ;;  %4105 = vrot.lane.b32.xlu0 %v4104_v30, %s6577_s14  ;;  %v6072_v43 = vsel %vm1198_vm3, %v2730_v18, %v2746_v13  ;;  %v2778_v45 = vsel %vm1198_vm3, %v2746_v13, %v2730_v18  ;;  %v6078_v32 = vsel %vm1083_vm1, %v2634_v16, %v2650_v51 }
 0x489   : > { %6634 = vst [vmem:[#allocation14_spill] sm:$0xff] %v6072_v43  ;;  %6635 = vst [vmem:[#allocation12_spill] sm:$0xff] %v6078_v32  ;;  %v2570_v47 = vpop.f32.mrb[126].mxu0  ;;  %v6082_v7 = vsel %vm1161_vm2, %v2778_v45, 0.0  ;;  %v6086_v24 = vsel %vm1083_vm1, %v2650_v51, %v2634_v16 }
 0x48a   : > { %6636 = vst [vmem:[#allocation15_spill] sm:$0xff] %v6082_v7  ;;  %6637 = vst [vmem:[#allocation13_spill] sm:$0xff] %v6086_v24  ;;  %v2616_v30 = vmax.f32 %v2568_v26, 0.0  ;;  %v2571_v14 = vadd.f32 %v5793_v15, %v2570_v47  ;;  %v2572_v39 = vpop.f32.mrb[127].mxu0 }
 0x48c   : > { %v2617_v49 = vmax.f32 %v2571_v14, 0.0  ;;  %v2635_v4 = vrot.slane %v2616_v30, 7  ;;  %v2731_v18 = vrot.slane %v2616_v30, 1 }
 0x48e   : > { %v2651_v60 = vrot.slane %v2617_v49, 7  ;;  %v2747_v32 = vrot.slane %v2617_v49, 1  ;;  %v4109_v21 = vpack.i.bf16 %v2617_v49, %v2616_v30 }
 0x48f   : > { %v2575_v1 = vpop.f32.mrb[128].mxu0 }
 0x490   : > { %v2576_v45 = vadd.f32 %v5793_v15, %v2575_v1  ;;  %4110 = vrot.lane.b32.xlu1 %v4109_v21, %s6577_s14  ;;  %v2577_v51 = vpop.f32.mrb[129].mxu0  ;;  %v6095_v16 = vsel %vm1198_vm3, %v2731_v18, %v2747_v32  ;;  %v2779_v26 = vsel %vm1198_vm3, %v2747_v32, %v2731_v18  ;;  %v6101_v47 = vsel %vm1083_vm1, %v2635_v4, %v2651_v60 }
 0x491   : > { %6638 = vst [vmem:[#allocation16_spill] sm:$0xff] %v6101_v47  ;;  %v2578_v14 = vpop.f32.mrb[130].mxu0  ;;  %v6105_v30 = vsel %vm1161_vm2, %v2779_v26, 0.0  ;;  %v6109_v1 = vsel %vm1083_vm1, %v2651_v60, %v2635_v4 }
 0x492   : > { %v2618_v21 = vmax.f32 %v2576_v45, 0.0  ;;  %v2579_v39 = vadd.f32 %v5793_v15, %v2578_v14  ;;  %v2580_v49 = vpop.f32.mrb[131].mxu0 }
 0x493   : > { %v1811_v18 = vpop.f32.mrb[68].mxu1 }
 0x494   : > { %v2619_v51 = vmax.f32 %v2579_v39, 0.0  ;;  %v1813_v13 = vpop.f32.mrb[69].mxu1  ;;  %v2636_v47 = vrot.slane %v2618_v21, 7  ;;  %v2732_v43 = vrot.slane %v2618_v21, 1 }
 0x495   : > { %v1814_v24 = vpop.f32.mrb[70].mxu1 }
 0x496   : > { %v2652_v7 = vrot.slane %v2619_v51, 7  ;;  %v2748_v26 = vrot.slane %v2619_v51, 1  ;;  %v4114_v17 = vpack.i.bf16 %v2619_v51, %v2618_v21  ;;  %v1816_v34 = vpop.f32.mrb[71].mxu1  ;;  %v2686_v51 = vsel %vm1045_vm4, %v5808_v59, 0.0 }
 0x497   : > { %v2583_v58 = vpop.f32.mrb[132].mxu0 }
 0x498   : > { %v2584_v60 = vadd.f32 %v5793_v15, %v2583_v58  ;;  %v2585_v4 = vpop.f32.mrb[133].mxu0  ;;  %4115 = vrot.lane.b32.xlu0 %v4114_v17, %s6577_s14  ;;  %v6118_v45 = vsel %vm1198_vm3, %v2732_v43, %v2748_v26  ;;  %v2780_v13 = vsel %vm1198_vm3, %v2748_v26, %v2732_v43  ;;  %v6124_v24 = vsel %vm1083_vm1, %v2636_v47, %v2652_v7 }
 0x499   : > { %6639 = vst [vmem:[#allocation18_spill] sm:$0xff] %v6124_v24  ;;  %v4046_v14 = vpop.permute.xlu0 %4045  ;;  %v2586_v21 = vpop.f32.mrb[134].mxu0  ;;  %v6128_v34 = vsel %vm1161_vm2, %v2780_v13, 0.0  ;;  %v6132_v58 = vsel %vm1083_vm1, %v2652_v7, %v2636_v47 }
 0x49a   : > { %v2620_v17 = vmax.f32 %v2584_v60, 0.0  ;;  %v4048_v39 = vunpack.i.h.bf16 %v4046_v14  ;;  %v4047_v49 = vunpack.i.l.bf16 %v4046_v14  ;;  %v2587_v18 = vadd.f32 %v5793_v15, %v2586_v21  ;;  %v2588_v43 = vpop.f32.mrb[135].mxu0 }
 0x49b   : > { %v3003_v26 = vpack.c.bf16 %v6128_v34, %v6118_v45  ;;  %v6640_v21 = vpack.c.bf16 %v5829_v33, %v5819_v19 }
 0x49c   : > { %v2943_v4 = vsel %vm599_vm0, %v5804_v29, %v4048_v39  ;;  %v2942_v13 = vsel %vm599_vm0, %v2686_v51, %v4047_v49  ;;  %v2621_v47 = vmax.f32 %v2587_v18, 0.0  ;;  %v2637_v60 = vrot.slane %v2620_v17, 7 }
 0x49d   : > { %v2974_v7 = vpack.c.bf16 %v2943_v4, %v2942_v13  ;;  %v2733_v32 = vrot.slane %v2620_v17, 1 }
 0x49e   : > { %v2653_v14 = vrot.slane %v2621_v47, 7  ;;  %v2749_v24 = vrot.slane %v2621_v47, 1  ;;  %v4119_v15 = vpack.i.bf16 %v2621_v47, %v2620_v17 }
 0x49f   : > { %3183 = vmatmul.mubr.bf16.vlgmr.msra.gmra.mrb[72].mxu1 %v2974_v7 }
 0x4a0   : > { %3700 = vmatprep.mubr.msk.bf16.mxu1 %vm599_vm0, %v6640_v21  ;;  %4120 = vrot.lane.b32.xlu1 %v4119_v15, %s6577_s14  ;;  %v6150_v29 = vsel %vm1198_vm3, %v2733_v32, %v2749_v24  ;;  %v2781_v59 = vsel %vm1198_vm3, %v2749_v24, %v2733_v32  ;;  %v6156_v39 = vsel %vm1083_vm1, %v2637_v60, %v2653_v14  ;;  %v2688_v32 = vsel %vm1045_vm4, %v5833_v8, 0.0 }
 0x4a1   : > { %v6160_v17 = vsel %vm1083_vm1, %v2653_v14, %v2637_v60  ;;  %v6164_v33 = vsel %vm1161_vm2, %v2781_v59, 0.0  ;;  %v2690_v60 = vsel %vm1045_vm4, %v5856_v10, 0.0  ;;  %v6642_v15 = vpack.c.bf16 %v5875_v36, %v5865_v23 }
 0x4a2   : > { %v4051_v19 = vpop.permute.xlu1 %4050  ;;  %v3005_v43 = vpack.c.bf16 %v6164_v33, %v6150_v29  ;;  %v2692_v59 = vsel %vm1045_vm4, %v5879_v53, 0.0  ;;  %v6317_v29 = vld [vmem:[%s6555_s9] ss:$0 sm:$0xff] }
 0x4a3   : > { %v4053_v49 = vunpack.i.h.bf16 %v4051_v19  ;;  %v4052_v18 = vunpack.i.l.bf16 %v4051_v19 }
 0x4a5   : > { %v2944_v24 = vsel %vm599_vm0, %v2688_v32, %v4052_v18  ;;  %v2945_v51 = vsel %vm599_vm0, %v5825_v20, %v4053_v49  ;;  %v6643_v49 = vpack.c.bf16 %v5898_v22, %v5888_v3  ;;  %v2694_v32 = vsel %vm1045_vm4, %v5902_v31, 0.0 }
 0x4a6   : > { %v2976_v4 = vpack.c.bf16 %v2945_v51, %v2944_v24  ;;  %v6644_v51 = vpack.c.bf16 %v5921_v56, %v5911_v50 }
 0x4a8   : > { %3191 = vmatmul.mubr.bf16.gmra.mrb[76].mxu1 %v2976_v4 }
 0x4a9   : > { %3701 = vmatprep.mubr.msk.bf16.mxu1 %vm599_vm0, %v6641_v0  ;;  %v2696_v0 = vsel %vm1045_vm4, %v5925_v9, 0.0 }
 0x4aa   : > { %v4056_v13 = vpop.permute.xlu0 %4055 }
 0x4ab   : > { %v4058_v7 = vunpack.i.h.bf16 %v4056_v13  ;;  %v4057_v47 = vunpack.i.l.bf16 %v4056_v13 }
 0x4ad   : > { %v2946_v8 = vsel %vm599_vm0, %v2690_v60, %v4057_v47  ;;  %v2947_v14 = vsel %vm599_vm0, %v5848_v44, %v4058_v7  ;;  %v6645_v7 = vpack.c.bf16 %v5944_v54, %v5934_v27  ;;  %v2698_v60 = vsel %vm1045_vm4, %v5948_v40, 0.0 }
 0x4ae   : > { %v2978_v20 = vpack.c.bf16 %v2947_v14, %v2946_v8  ;;  %v6646_v14 = vpack.c.bf16 %v5967_v25, %v5957_v55 }
 0x4b0   : > { %3199 = vmatmul.mubr.bf16.gmra.mrb[80].mxu1 %v2978_v20 }
 0x4b1   : > { %3702 = vmatprep.mubr.msk.bf16.mxu1 %vm599_vm0, %v6642_v15  ;;  %v2700_v15 = vsel %vm1045_vm4, %v5971_v48, 0.0 }
 0x4b2   : > { %v4061_v41 = vpop.permute.xlu1 %4060 }
 0x4b3   : > { %v4063_v57 = vunpack.i.h.bf16 %v4061_v41  ;;  %v4062_v21 = vunpack.i.l.bf16 %v4061_v41 }
 0x4b5   : > { %v2948_v10 = vsel %vm599_vm0, %v2692_v59, %v4062_v21  ;;  %v2949_v19 = vsel %vm599_vm0, %v5871_v37, %v4063_v57  ;;  %v6647_v57 = vpack.c.bf16 %v5990_v5, %v5980_v46  ;;  %v2702_v59 = vsel %vm1045_vm4, %v5994_v42, 0.0 }
 0x4b6   : > { %v2980_v44 = vpack.c.bf16 %v2949_v19, %v2948_v10  ;;  %v6648_v19 = vpack.c.bf16 %v6013_v63, %v6003_v6 }
 0x4b8   : > { %3207 = vmatmul.mubr.bf16.gmra.mrb[84].mxu1 %v2980_v44 }
 0x4b9   : > { %3703 = vmatprep.mubr.msk.bf16.mxu1 %vm599_vm0, %v6643_v49  ;;  %v2704_v49 = vsel %vm1045_vm4, %v6017_v11, 0.0 }
 0x4ba   : > { %v4066_v23 = vpop.permute.xlu0 %4065 }
 0x4bb   : > { %v4068_v36 = vunpack.i.h.bf16 %v4066_v23  ;;  %v4067_v18 = vunpack.i.l.bf16 %v4066_v23 }
 0x4bd   : > { %v2950_v53 = vsel %vm599_vm0, %v2694_v32, %v4067_v18  ;;  %v2951_v24 = vsel %vm599_vm0, %v5894_v61, %v4068_v36  ;;  %v6649_v36 = vld [vmem:[#allocation5_spill] sm:$0xff] }
 0x4be   : > { %v2982_v37 = vpack.c.bf16 %v2951_v24, %v2950_v53  ;;  %v6650_v18 = vpack.c.bf16 %v6036_v12, %v6649_v36  ;;  %v6651_v53 = vld [vmem:[#allocation6_spill] sm:$0xff] }
 0x4bf   : > { %v2706_v24 = vsel %vm1045_vm4, %v6651_v53, 0.0 }
 0x4c0   : > { %3215 = vmatmul.mubr.bf16.gmra.mrb[88].mxu1 %v2982_v37  ;;  %v6652_v37 = vld [vmem:[#allocation7_spill] sm:$0xff] }
 0x4c1   : > { %3704 = vmatprep.mubr.msk.bf16.mxu1 %vm599_vm0, %v6644_v51 }
 0x4c2   : > { %v4071_v3 = vpop.permute.xlu1 %4070 }
 0x4c3   : > { %v4073_v22 = vunpack.i.h.bf16 %v4071_v3  ;;  %v4072_v4 = vunpack.i.l.bf16 %v4071_v3  ;;  %v6653_v3 = vld [vmem:[#allocation11_spill] sm:$0xff] }
 0x4c5   : > { %v2952_v31 = vsel %vm599_vm0, %v2696_v0, %v4072_v4  ;;  %v2953_v13 = vsel %vm599_vm0, %v5917_v62, %v4073_v22  ;;  %v6654_v22 = vld [vmem:[#allocation10_spill] sm:$0xff] }
 0x4c6   : > { %v2984_v61 = vpack.c.bf16 %v2953_v13, %v2952_v31  ;;  %v6655_v4 = vpack.c.bf16 %v6653_v3, %v6654_v22  ;;  %v6656_v13 = vld [vmem:[#allocation9_spill] sm:$0xff] }
 0x4c8   : > { %3223 = vmatmul.mubr.bf16.gmra.mrb[92].mxu1 %v2984_v61  ;;  %v2708_v61 = vsel %vm1045_vm4, %v6656_v13, 0.0 }
 0x4c9   : > { %3705 = vmatprep.mubr.msk.bf16.mxu1 %vm599_vm0, %v6645_v7 }
 0x4ca   : > { %v4076_v50 = vpop.permute.xlu0 %4075 }
 0x4cb   : > { %v4078_v56 = vunpack.i.h.bf16 %v4076_v50  ;;  %v4077_v47 = vunpack.i.l.bf16 %v4076_v50  ;;  %v6657_v50 = vld [vmem:[#allocation8_spill] sm:$0xff] }
 0x4cd   : > { %v2954_v9 = vsel %vm599_vm0, %v2698_v60, %v4077_v47  ;;  %v2955_v8 = vsel %vm599_vm0, %v5940_v2, %v4078_v56  ;;  %v6658_v60 = vld [vmem:[#allocation15_spill] sm:$0xff] }
 0x4ce   : > { %v2986_v62 = vpack.c.bf16 %v2955_v8, %v2954_v9  ;;  %v6659_v9 = vld [vmem:[#allocation14_spill] sm:$0xff] }
 0x4cf   : > { %v6660_v8 = vpack.c.bf16 %v6658_v60, %v6659_v9 }
 0x4d0   : > { %3231 = vmatmul.mubr.bf16.gmra.mrb[96].mxu1 %v2986_v62 }
 0x4d1   : > { %3706 = vmatprep.mubr.msk.bf16.mxu1 %vm599_vm0, %v6646_v14 }
 0x4d2   : > { %v4081_v27 = vpop.permute.xlu1 %4080 }
 0x4d3   : > { %v4083_v54 = vunpack.i.h.bf16 %v4081_v27  ;;  %v4082_v20 = vunpack.i.l.bf16 %v4081_v27 }
 0x4d5   : > { %v2956_v40 = vsel %vm599_vm0, %v2700_v15, %v4082_v20  ;;  %v2957_v41 = vsel %vm599_vm0, %v5963_v52, %v4083_v54  ;;  %v6661_v54 = vld [vmem:[#allocation13_spill] sm:$0xff] }
 0x4d6   : > { %v2988_v2 = vpack.c.bf16 %v2957_v41, %v2956_v40  ;;  %v2710_v20 = vsel %vm1045_vm4, %v6661_v54, 0.0  ;;  %v6662_v40 = vld [vmem:[#allocation12_spill] sm:$0xff] }
 0x4d8   : > { %3239 = vmatmul.mubr.bf16.gmra.mrb[100].mxu1 %v2988_v2 }
 0x4d9   : > { %3707 = vmatprep.mubr.msk.bf16.mxu1 %vm599_vm0, %v6647_v57  ;;  %v6663_v57 = vpack.c.bf16 %v6105_v30, %v6095_v16 }
 0x4da   : > { %v4086_v55 = vpop.permute.xlu0 %4085 }
 0x4db   : > { %v4088_v25 = vunpack.i.h.bf16 %v4086_v55  ;;  %v4087_v21 = vunpack.i.l.bf16 %v4086_v55 }
 0x4dd   : > { %v2958_v48 = vsel %vm599_vm0, %v2702_v59, %v4087_v21  ;;  %v2959_v10 = vsel %vm599_vm0, %v5986_v38, %v4088_v25  ;;  %v2712_v59 = vsel %vm1045_vm4, %v6109_v1, 0.0  ;;  %v2714_v1 = vsel %vm1045_vm4, %v6132_v58, 0.0 }
 0x4de   : > { %v2990_v52 = vpack.c.bf16 %v2959_v10, %v2958_v48  ;;  %v6664_v10 = vld [vmem:[#allocation16_spill] sm:$0xff]  ;;  %v2716_v58 = vsel %vm1045_vm4, %v6160_v17, 0.0 }
 0x4e0   : > { %3247 = vmatmul.mubr.bf16.gmra.mrb[104].mxu1 %v2990_v52 }
 0x4e1   : > { %3708 = vmatprep.mubr.msk.bf16.mxu1 %vm599_vm0, %v6648_v19 }
 0x4e2   : > { %v4091_v46 = vpop.permute.xlu1 %4090 }
 0x4e3   : > { %v4093_v5 = vunpack.i.h.bf16 %v4091_v46  ;;  %v4092_v44 = vunpack.i.l.bf16 %v4091_v46 }
 0x4e5   : > { %v2960_v42 = vsel %vm599_vm0, %v2704_v49, %v4092_v44  ;;  %v2961_v23 = vsel %vm599_vm0, %v6009_v35, %v4093_v5  ;;  %v6665_v44 = vld [vmem:[#allocation18_spill] sm:$0xff] }
 0x4e6   : > { %v2992_v38 = vpack.c.bf16 %v2961_v23, %v2960_v42 }
 0x4e8   : > { %3255 = vmatmul.mubr.bf16.gmra.mrb[108].mxu1 %v2992_v38 }
 0x4e9   : > { %3709 = vmatprep.mubr.msk.bf16.mxu1 %vm599_vm0, %v6650_v18 }
 0x4ea   : > { %v4096_v6 = vpop.permute.xlu0 %4095 }
 0x4eb   : > { %v4098_v63 = vunpack.i.h.bf16 %v4096_v6  ;;  %v4097_v32 = vunpack.i.l.bf16 %v4096_v6 }
 0x4ed   : > { %v2962_v11 = vsel %vm599_vm0, %v2706_v24, %v4097_v32  ;;  %v2963_v51 = vsel %vm599_vm0, %v6652_v37, %v4098_v63  ;;  %v4175_v32 = vld [vmem:[%s4422_s28 + $0x20] sm:$0xff]  ;;  %v4176_v37 = vld [vmem:[%s4422_s28 + $0x28] sm:$0xff] }
 0x4ee   : > { %v2994_v35 = vpack.c.bf16 %v2963_v51, %v2962_v11 }
 0x4f0   : > { %3263 = vmatmul.mubr.bf16.gmra.mrb[112].mxu1 %v2994_v35 }
 0x4f1   : > { %3710 = vmatprep.mubr.msk.bf16.mxu1 %vm599_vm0, %v6655_v4 }
 0x4f2   : > { %v4101_v12 = vpop.permute.xlu1 %4100 }
 0x4f3   : > { %v4103_v0 = vunpack.i.h.bf16 %v4101_v12  ;;  %v4102_v31 = vunpack.i.l.bf16 %v4101_v12 }
 0x4f5   : > { %v2964_v7 = vsel %vm599_vm0, %v2708_v61, %v4102_v31  ;;  %v2965_v56 = vsel %vm599_vm0, %v6657_v50, %v4103_v0  ;;  %v4177_v61 = vld [vmem:[%s4422_s28 + $0x30] sm:$0xff] }
 0x4f6   : > { %v2996_v47 = vpack.c.bf16 %v2965_v56, %v2964_v7 }
 0x4f8   : > { %3271 = vmatmul.mubr.bf16.gmra.mrb[116].mxu1 %v2996_v47  ;;  %v4178_v47 = vld [vmem:[%s4422_s28 + $0x38] sm:$0xff] }
 0x4f9   : > { %3711 = vmatprep.mubr.msk.bf16.mxu1 %vm599_vm0, %v6660_v8 }
 0x4fa   : > { %v4106_v62 = vpop.permute.xlu0 %4105 }
 0x4fb   : > { %v4108_v14 = vunpack.i.h.bf16 %v4106_v62  ;;  %v4107_v27 = vunpack.i.l.bf16 %v4106_v62 }
 0x4fd   : > { %v2966_v15 = vsel %vm599_vm0, %v2710_v20, %v4107_v27  ;;  %v2967_v41 = vsel %vm599_vm0, %v6662_v40, %v4108_v14  ;;  %v4179_v40 = vld [vmem:[%s4422_s28 + $0x40] sm:$0xff] }
 0x4fe   : > { %v2998_v2 = vpack.c.bf16 %v2967_v41, %v2966_v15 }
 0x500   : > { %3279 = vmatmul.mubr.bf16.gmra.mrb[120].mxu1 %v2998_v2 }
 0x501   : > { %3712 = vmatprep.mubr.msk.bf16.mxu1 %vm599_vm0, %v6663_v57 }
 0x502   : > { %v4111_v55 = vpop.permute.xlu1 %4110 }
 0x503   : > { %v4113_v25 = vunpack.i.h.bf16 %v4111_v55  ;;  %v4112_v21 = vunpack.i.l.bf16 %v4111_v55  ;;  %v4180_v55 = vld [vmem:[%s4422_s28 + $0x48] sm:$0xff] }
 0x505   : > { %v2968_v48 = vsel %vm599_vm0, %v2712_v59, %v4112_v21  ;;  %v2969_v52 = vsel %vm599_vm0, %v6664_v10, %v4113_v25 }
 0x506   : > { %v3000_v19 = vpack.c.bf16 %v2969_v52, %v2968_v48 }
 0x508   : > { %3287 = vmatmul.mubr.bf16.gmra.mrb[124].mxu1 %v3000_v19 }
 0x509   : > { %3713 = vmatprep.mubr.msk.bf16.mxu1 %vm599_vm0, %v3003_v26 }
 0x50a   : > { %v4116_v16 = vpop.permute.xlu0 %4115 }
 0x50b   : > { %v4118_v30 = vunpack.i.h.bf16 %v4116_v16  ;;  %v4117_v46 = vunpack.i.l.bf16 %v4116_v16 }
 0x50d   : > { %v2970_v5 = vsel %vm599_vm0, %v2714_v1, %v4117_v46  ;;  %v2971_v49 = vsel %vm599_vm0, %v6665_v44, %v4118_v30  ;;  %v4181_v46 = vld [vmem:[%s4422_s28 + $0x50] sm:$0xff] }
 0x50e   : > { %v3002_v42 = vpack.c.bf16 %v2971_v49, %v2970_v5  ;;  %v4182_v49 = vld [vmem:[%s4422_s28 + $0x58] sm:$0xff] }
 0x510   : > { %3295 = vmatmul.mubr.bf16.gmra.mrb[128].mxu1 %v3002_v42 }
 0x511   : > { %3714 = vmatprep.mubr.msk.bf16.mxu1 %vm599_vm0, %v3005_v43 }
 0x512   : > { %v4121_v45 = vpop.permute.xlu1 %4120 }
 0x513   : > { %v4123_v34 = vunpack.i.h.bf16 %v4121_v45  ;;  %v4122_v26 = vunpack.i.l.bf16 %v4121_v45 }
 0x515   : > { %v2972_v23 = vsel %vm599_vm0, %v2716_v58, %v4122_v26  ;;  %v2973_v38 = vsel %vm599_vm0, %v6156_v39, %v4123_v34 }
 0x516   : > { %v3004_v36 = vpack.c.bf16 %v2973_v38, %v2972_v23 }
 0x518   : > { %3303 = vmatmul.mubr.bf16.gmra.mrb[132].mxu1 %v3004_v36 }
 0x572   : > { %v3184_v33 = vpop.f32.mrb[72].mxu1 }
 0x573   : > { %v3318_v17 = vmul.f32 %v6317_v29, %v3184_v33  ;;  %v3186_v43 = vpop.f32.mrb[73].mxu1 }
 0x574   : > { %v3187_v18 = vpop.f32.mrb[74].mxu1 }
 0x575   : > { %v3357_v39 = vadd.f32 %v6323_v28, %v3318_v17  ;;  %v3319_v6 = vmul.f32 %v6317_v29, %v3187_v18  ;;  %v3189_v63 = vpop.f32.mrb[75].mxu1  ;;  %v4183_v17 = vld [vmem:[%s4422_s28 + $0x60] sm:$0xff] }
 0x577   : > { %v3389_v53 = vadd.f32 %v4175_v32, %v3357_v39  ;;  %v3358_v24 = vadd.f32 %v6323_v28, %v3319_v6  ;;  %v4184_v6 = vld [vmem:[%s4422_s28 + $0x68] sm:$0xff] }
 0x579   : > { %v3421_v11 = vmax.f32 %v3389_v53, 0.0  ;;  %v3390_v51 = vadd.f32 %v4176_v37, %v3358_v24 }
 0x57b   : > { %3453 = vst.msk [vmem:[%s6333_s26] sm:$0xff] %vm599_vm0, %v3421_v11  ;;  %v3422_v35 = vmax.f32 %v3390_v51, 0.0  ;;  %v3192_v3 = vpop.f32.mrb[76].mxu1 }
 0x57c   : > { %v3320_v22 = vmul.f32 %v6317_v29, %v3192_v3  ;;  %v3194_v4 = vpop.f32.mrb[77].mxu1 }
 0x57d   : > { %3454 = vst.msk [vmem:[%s6333_s26 + $0x8] sm:$0xff] %vm599_vm0, %v3422_v35  ;;  %v3195_v12 = vpop.f32.mrb[78].mxu1 }
 0x57e   : > { %v3359_v0 = vadd.f32 %v6323_v28, %v3320_v22  ;;  %v3321_v31 = vmul.f32 %v6317_v29, %v3195_v12  ;;  %v3197_v13 = vpop.f32.mrb[79].mxu1  ;;  %v4185_v22 = vld [vmem:[%s4422_s28 + $0x70] sm:$0xff] }
 0x580   : > { %v3391_v7 = vadd.f32 %v4177_v61, %v3359_v0  ;;  %v3360_v50 = vadd.f32 %v6323_v28, %v3321_v31  ;;  %v4186_v31 = vld [vmem:[%s4422_s28 + $0x78] sm:$0xff] }
 0x582   : > { %v3423_v56 = vmax.f32 %v3391_v7, 0.0  ;;  %v3392_v60 = vadd.f32 %v4178_v47, %v3360_v50 }
 0x583   : > { %v3200_v9 = vpop.f32.mrb[80].mxu1 }
 0x584   : > { %3455 = vst.msk [vmem:[%s6333_s26 + $0x10] sm:$0xff] %vm599_vm0, %v3423_v56  ;;  %v3424_v8 = vmax.f32 %v3392_v60, 0.0  ;;  %v3322_v62 = vmul.f32 %v6317_v29, %v3200_v9  ;;  %v3202_v14 = vpop.f32.mrb[81].mxu1 }
 0x585   : > { %v3203_v27 = vpop.f32.mrb[82].mxu1 }
 0x586   : > { %3456 = vst.msk [vmem:[%s6333_s26 + $0x18] sm:$0xff] %vm599_vm0, %v3424_v8  ;;  %v3361_v54 = vadd.f32 %v6323_v28, %v3322_v62  ;;  %v3323_v20 = vmul.f32 %v6317_v29, %v3203_v27  ;;  %v3205_v15 = vpop.f32.mrb[83].mxu1  ;;  %v4187_v62 = vld [vmem:[%s4422_s28 + $0x80] sm:$0xff] }
 0x588   : > { %v3393_v41 = vadd.f32 %v4179_v40, %v3361_v54  ;;  %v3362_v2 = vadd.f32 %v6323_v28, %v3323_v20  ;;  %v4188_v20 = vld [vmem:[%s4422_s28 + $0x88] sm:$0xff] }
 0x58a   : > { %v3425_v57 = vmax.f32 %v3393_v41, 0.0  ;;  %v3394_v25 = vadd.f32 %v4180_v55, %v3362_v2 }
 0x58b   : > { %v3208_v21 = vpop.f32.mrb[84].mxu1 }
 0x58c   : > { %3457 = vst.msk [vmem:[%s6333_s26 + $0x20] sm:$0xff] %vm599_vm0, %v3425_v57  ;;  %v3426_v59 = vmax.f32 %v3394_v25, 0.0  ;;  %v3324_v48 = vmul.f32 %v6317_v29, %v3208_v21  ;;  %v3210_v10 = vpop.f32.mrb[85].mxu1 }
 0x58d   : > { %v3211_v52 = vpop.f32.mrb[86].mxu1 }
 0x58e   : > { %3458 = vst.msk [vmem:[%s6333_s26 + $0x28] sm:$0xff] %vm599_vm0, %v3426_v59  ;;  %v3363_v19 = vadd.f32 %v6323_v28, %v3324_v48  ;;  %v3325_v16 = vmul.f32 %v6317_v29, %v3211_v52  ;;  %v3213_v30 = vpop.f32.mrb[87].mxu1  ;;  %v4189_v48 = vld [vmem:[%s4422_s28 + $0x90] sm:$0xff] }
 0x590   : > { %v3395_v1 = vadd.f32 %v4181_v46, %v3363_v19  ;;  %v3364_v5 = vadd.f32 %v6323_v28, %v3325_v16  ;;  %v4190_v16 = vld [vmem:[%s4422_s28 + $0x98] sm:$0xff] }
 0x592   : > { %v3427_v44 = vmax.f32 %v3395_v1, 0.0  ;;  %v3396_v42 = vadd.f32 %v4182_v49, %v3364_v5 }
 0x593   : > { %v3216_v45 = vpop.f32.mrb[88].mxu1 }
 0x594   : > { %3459 = vst.msk [vmem:[%s6333_s26 + $0x30] sm:$0xff] %vm599_vm0, %v3427_v44  ;;  %v3428_v34 = vmax.f32 %v3396_v42, 0.0  ;;  %v3326_v26 = vmul.f32 %v6317_v29, %v3216_v45  ;;  %v3218_v58 = vpop.f32.mrb[89].mxu1 }
 0x595   : > { %v3219_v23 = vpop.f32.mrb[90].mxu1 }
 0x596   : > { %3460 = vst.msk [vmem:[%s6333_s26 + $0x38] sm:$0xff] %vm599_vm0, %v3428_v34  ;;  %v3365_v38 = vadd.f32 %v6323_v28, %v3326_v26  ;;  %v3327_v36 = vmul.f32 %v6317_v29, %v3219_v23  ;;  %v3221_v33 = vpop.f32.mrb[91].mxu1  ;;  %v4191_v26 = vld [vmem:[%s4422_s28 + $0xa0] sm:$0xff] }
 0x598   : > { %v3397_v43 = vadd.f32 %v4183_v17, %v3365_v38  ;;  %v3366_v18 = vadd.f32 %v6323_v28, %v3327_v36  ;;  %v4192_v36 = vld [vmem:[%s4422_s28 + $0xa8] sm:$0xff] }
 0x59a   : > { %v3429_v39 = vmax.f32 %v3397_v43, 0.0  ;;  %v3398_v63 = vadd.f32 %v4184_v6, %v3366_v18 }
 0x59b   : > { %v3224_v32 = vpop.f32.mrb[92].mxu1 }
 0x59c   : > { %3461 = vst.msk [vmem:[%s6333_s26 + $0x40] sm:$0xff] %vm599_vm0, %v3429_v39  ;;  %v3430_v53 = vmax.f32 %v3398_v63, 0.0  ;;  %v3328_v24 = vmul.f32 %v6317_v29, %v3224_v32  ;;  %v3226_v11 = vpop.f32.mrb[93].mxu1 }
 0x59d   : > { %v3227_v37 = vpop.f32.mrb[94].mxu1 }
 0x59e   : > { %3462 = vst.msk [vmem:[%s6333_s26 + $0x48] sm:$0xff] %vm599_vm0, %v3430_v53  ;;  %v3367_v51 = vadd.f32 %v6323_v28, %v3328_v24  ;;  %v3329_v35 = vmul.f32 %v6317_v29, %v3227_v37  ;;  %v3229_v3 = vpop.f32.mrb[95].mxu1  ;;  %v4193_v24 = vld [vmem:[%s4422_s28 + $0xb0] sm:$0xff] }
 0x5a0   : > { %v3399_v4 = vadd.f32 %v4185_v22, %v3367_v51  ;;  %v3368_v12 = vadd.f32 %v6323_v28, %v3329_v35  ;;  %v4194_v35 = vld [vmem:[%s4422_s28 + $0xb8] sm:$0xff] }
 0x5a2   : > { %v3431_v0 = vmax.f32 %v3399_v4, 0.0  ;;  %v3400_v13 = vadd.f32 %v4186_v31, %v3368_v12 }
 0x5a3   : > { %v3232_v61 = vpop.f32.mrb[96].mxu1 }
 0x5a4   : > { %3463 = vst.msk [vmem:[%s6333_s26 + $0x50] sm:$0xff] %vm599_vm0, %v3431_v0  ;;  %v3432_v7 = vmax.f32 %v3400_v13, 0.0  ;;  %v3330_v50 = vmul.f32 %v6317_v29, %v3232_v61  ;;  %v3234_v56 = vpop.f32.mrb[97].mxu1 }
 0x5a5   : > { %v3235_v47 = vpop.f32.mrb[98].mxu1 }
 0x5a6   : > { %3464 = vst.msk [vmem:[%s6333_s26 + $0x58] sm:$0xff] %vm599_vm0, %v3432_v7  ;;  %v3369_v60 = vadd.f32 %v6323_v28, %v3330_v50  ;;  %v3331_v9 = vmul.f32 %v6317_v29, %v3235_v47  ;;  %v3237_v8 = vpop.f32.mrb[99].mxu1  ;;  %v4195_v50 = vld [vmem:[%s4422_s28 + $0xc0] sm:$0xff] }
 0x5a8   : > { %v3401_v14 = vadd.f32 %v4187_v62, %v3369_v60  ;;  %v3370_v27 = vadd.f32 %v6323_v28, %v3331_v9  ;;  %v4196_v9 = vld [vmem:[%s4422_s28 + $0xc8] sm:$0xff] }
 0x5aa   : > { %v3433_v54 = vmax.f32 %v3401_v14, 0.0  ;;  %v3402_v15 = vadd.f32 %v4188_v20, %v3370_v27 }
 0x5ab   : > { %v3240_v40 = vpop.f32.mrb[100].mxu1 }
 0x5ac   : > { %3465 = vst.msk [vmem:[%s6333_s26 + $0x60] sm:$0xff] %vm599_vm0, %v3433_v54  ;;  %v3434_v41 = vmax.f32 %v3402_v15, 0.0  ;;  %v3332_v2 = vmul.f32 %v6317_v29, %v3240_v40  ;;  %v3242_v57 = vpop.f32.mrb[101].mxu1 }
 0x5ad   : > { %v3243_v55 = vpop.f32.mrb[102].mxu1 }
 0x5ae   : > { %3466 = vst.msk [vmem:[%s6333_s26 + $0x68] sm:$0xff] %vm599_vm0, %v3434_v41  ;;  %v3371_v25 = vadd.f32 %v6323_v28, %v3332_v2  ;;  %v3333_v21 = vmul.f32 %v6317_v29, %v3243_v55  ;;  %v3245_v59 = vpop.f32.mrb[103].mxu1  ;;  %v4197_v2 = vld [vmem:[%s4422_s28 + $0xd0] sm:$0xff] }
 0x5b0   : > { %v3403_v10 = vadd.f32 %v4189_v48, %v3371_v25  ;;  %v3372_v52 = vadd.f32 %v6323_v28, %v3333_v21  ;;  %v4198_v21 = vld [vmem:[%s4422_s28 + $0xd8] sm:$0xff] }
 0x5b2   : > { %v3435_v19 = vmax.f32 %v3403_v10, 0.0  ;;  %v3404_v30 = vadd.f32 %v4190_v16, %v3372_v52 }
 0x5b3   : > { %v3248_v46 = vpop.f32.mrb[104].mxu1 }
 0x5b4   : > { %3467 = vst.msk [vmem:[%s6333_s26 + $0x70] sm:$0xff] %vm599_vm0, %v3435_v19  ;;  %v3436_v1 = vmax.f32 %v3404_v30, 0.0  ;;  %v3334_v5 = vmul.f32 %v6317_v29, %v3248_v46  ;;  %v3250_v44 = vpop.f32.mrb[105].mxu1 }
 0x5b5   : > { %v3251_v49 = vpop.f32.mrb[106].mxu1 }
 0x5b6   : > { %3468 = vst.msk [vmem:[%s6333_s26 + $0x78] sm:$0xff] %vm599_vm0, %v3436_v1  ;;  %v3373_v42 = vadd.f32 %v6323_v28, %v3334_v5  ;;  %v3335_v45 = vmul.f32 %v6317_v29, %v3251_v49  ;;  %v3253_v34 = vpop.f32.mrb[107].mxu1  ;;  %v4199_v5 = vld [vmem:[%s4422_s28 + $0xe0] sm:$0xff] }
 0x5b8   : > { %v3405_v58 = vadd.f32 %v4191_v26, %v3373_v42  ;;  %v3374_v23 = vadd.f32 %v6323_v28, %v3335_v45  ;;  %v4200_v45 = vld [vmem:[%s4422_s28 + $0xe8] sm:$0xff] }
 0x5ba   : > { %v3437_v38 = vmax.f32 %v3405_v58, 0.0  ;;  %v3406_v33 = vadd.f32 %v4192_v36, %v3374_v23 }
 0x5bb   : > { %v3256_v17 = vpop.f32.mrb[108].mxu1 }
 0x5bc   : > { %3469 = vst.msk [vmem:[%s6333_s26 + $0x80] sm:$0xff] %vm599_vm0, %v3437_v38  ;;  %v3438_v43 = vmax.f32 %v3406_v33, 0.0  ;;  %v3336_v18 = vmul.f32 %v6317_v29, %v3256_v17  ;;  %v3258_v39 = vpop.f32.mrb[109].mxu1 }
 0x5bd   : > { %v3259_v6 = vpop.f32.mrb[110].mxu1 }
 0x5be   : > { %3470 = vst.msk [vmem:[%s6333_s26 + $0x88] sm:$0xff] %vm599_vm0, %v3438_v43  ;;  %v3375_v63 = vadd.f32 %v6323_v28, %v3336_v18  ;;  %v3337_v32 = vmul.f32 %v6317_v29, %v3259_v6  ;;  %v3261_v53 = vpop.f32.mrb[111].mxu1  ;;  %v4201_v18 = vld [vmem:[%s4422_s28 + $0xf0] sm:$0xff] }
 0x5c0   : > { %v3407_v11 = vadd.f32 %v4193_v24, %v3375_v63  ;;  %v3376_v37 = vadd.f32 %v6323_v28, %v3337_v32  ;;  %v4202_v32 = vld [vmem:[%s4422_s28 + $0xf8] sm:$0xff] }
 0x5c2   : > { %v3439_v51 = vmax.f32 %v3407_v11, 0.0  ;;  %v3408_v3 = vadd.f32 %v4194_v35, %v3376_v37 }
 0x5c3   : > { %v3264_v22 = vpop.f32.mrb[112].mxu1 }
 0x5c4   : > { %3471 = vst.msk [vmem:[%s6333_s26 + $0x90] sm:$0xff] %vm599_vm0, %v3439_v51  ;;  %v3440_v4 = vmax.f32 %v3408_v3, 0.0  ;;  %v3338_v12 = vmul.f32 %v6317_v29, %v3264_v22  ;;  %v3266_v0 = vpop.f32.mrb[113].mxu1 }
 0x5c5   : > { %v3267_v31 = vpop.f32.mrb[114].mxu1 }
 0x5c6   : > { %3472 = vst.msk [vmem:[%s6333_s26 + $0x98] sm:$0xff] %vm599_vm0, %v3440_v4  ;;  %v3377_v13 = vadd.f32 %v6323_v28, %v3338_v12  ;;  %v3339_v61 = vmul.f32 %v6317_v29, %v3267_v31  ;;  %v3269_v7 = vpop.f32.mrb[115].mxu1  ;;  %v4203_v12 = vld [vmem:[%s4422_s28 + $0x100] sm:$0xff] }
 0x5c8   : > { %v3409_v56 = vadd.f32 %v4195_v50, %v3377_v13  ;;  %v3378_v47 = vadd.f32 %v6323_v28, %v3339_v61  ;;  %v4204_v61 = vld [vmem:[%s4422_s28 + $0x108] sm:$0xff] }
 0x5ca   : > { %v3441_v60 = vmax.f32 %v3409_v56, 0.0  ;;  %v3410_v8 = vadd.f32 %v4196_v9, %v3378_v47 }
 0x5cb   : > { %v3272_v62 = vpop.f32.mrb[116].mxu1 }
 0x5cc   : > { %3473 = vst.msk [vmem:[%s6333_s26 + $0xa0] sm:$0xff] %vm599_vm0, %v3441_v60  ;;  %v3442_v14 = vmax.f32 %v3410_v8, 0.0  ;;  %v3340_v27 = vmul.f32 %v6317_v29, %v3272_v62  ;;  %v3274_v54 = vpop.f32.mrb[117].mxu1 }
 0x5cd   : > { %v3275_v20 = vpop.f32.mrb[118].mxu1 }
 0x5ce   : > { %3474 = vst.msk [vmem:[%s6333_s26 + $0xa8] sm:$0xff] %vm599_vm0, %v3442_v14  ;;  %v3379_v15 = vadd.f32 %v6323_v28, %v3340_v27  ;;  %v3341_v40 = vmul.f32 %v6317_v29, %v3275_v20  ;;  %v3277_v41 = vpop.f32.mrb[119].mxu1  ;;  %v4205_v27 = vld [vmem:[%s4422_s28 + $0x110] sm:$0xff] }
 0x5d0   : > { %v3411_v57 = vadd.f32 %v4197_v2, %v3379_v15  ;;  %v3380_v55 = vadd.f32 %v6323_v28, %v3341_v40  ;;  %v4206_v40 = vld [vmem:[%s4422_s28 + $0x118] sm:$0xff]  ;;  %s4207_s28 = scalar_lea.vmem %s6492_s13, 4096 }
 0x5d1   : > { %p4208_p12 = scmp.ne.s32.totalorder %s6492_s13, %s4207_s28  ;;  %p4215_p2 = scmp.lt.s32.totalorder %s4213_s12, %s4207_s28 }
 0x5d2   : > { %v3443_v25 = vmax.f32 %v3411_v57, 0.0  ;;  %v3412_v59 = vadd.f32 %v4198_v21, %v3380_v55 }
 0x5d3   : > { %v3280_v48 = vpop.f32.mrb[120].mxu1  ;;  %p4209_p13 = pnand %p4208_p12, %p4393_p4  ;;  %p4216_p3 = por %p4215_p2, %p4214_p1 }
 0x5d4   : > { %3475 = vst.msk [vmem:[%s6333_s26 + $0xb0] sm:$0xff] %vm599_vm0, %v3443_v25  ;;  %v3444_v10 = vmax.f32 %v3412_v59, 0.0  ;;  %v3342_v52 = vmul.f32 %v6317_v29, %v3280_v48  ;;  %v3282_v19 = vpop.f32.mrb[121].mxu1 }
 0x5d5   : > { %v3283_v16 = vpop.f32.mrb[122].mxu1  ;;  %p4210_p0 = pneg %p4209_p13 }
 0x5d6   : > { %3476 = vst.msk [vmem:[%s6333_s26 + $0xb8] sm:$0xff] %vm599_vm0, %v3444_v10  ;;  %v3381_v30 = vadd.f32 %v6323_v28, %v3342_v52  ;;  %v3343_v46 = vmul.f32 %v6317_v29, %v3283_v16  ;;  %v3285_v1 = vpop.f32.mrb[123].mxu1 }
 0x5d7   : > { %p4217_p5 = pnand %p4216_p3, %p4210_p0 }
 0x5d8   : > { %v3413_v44 = vadd.f32 %v4199_v5, %v3381_v30  ;;  %v3382_v49 = vadd.f32 %v6323_v28, %v3343_v46 }
 0x5da   : > { %v3445_v42 = vmax.f32 %v3413_v44, 0.0  ;;  %v3414_v34 = vadd.f32 %v4200_v45, %v3382_v49 }
 0x5db   : > { %v3288_v26 = vpop.f32.mrb[124].mxu1 }
 0x5dc   : > { %3477 = vst.msk [vmem:[%s6333_s26 + $0xc0] sm:$0xff] %vm599_vm0, %v3445_v42  ;;  %v3446_v58 = vmax.f32 %v3414_v34, 0.0  ;;  %v3344_v23 = vmul.f32 %v6317_v29, %v3288_v26  ;;  %v3290_v38 = vpop.f32.mrb[125].mxu1 }
 0x5dd   : > { %v3291_v36 = vpop.f32.mrb[126].mxu1 }
 0x5de   : > { %3478 = vst.msk [vmem:[%s6333_s26 + $0xc8] sm:$0xff] %vm599_vm0, %v3446_v58  ;;  %v3383_v33 = vadd.f32 %v6323_v28, %v3344_v23  ;;  %v3345_v17 = vmul.f32 %v6317_v29, %v3291_v36  ;;  %v3293_v43 = vpop.f32.mrb[127].mxu1 }
 0x5e0   : > { %v3415_v39 = vadd.f32 %v4201_v18, %v3383_v33  ;;  %v3384_v6 = vadd.f32 %v6323_v28, %v3345_v17 }
 0x5e2   : > { %v3447_v63 = vmax.f32 %v3415_v39, 0.0  ;;  %v3416_v53 = vadd.f32 %v4202_v32, %v3384_v6 }
 0x5e3   : > { %v3296_v24 = vpop.f32.mrb[128].mxu1 }
 0x5e4   : > { %3479 = vst.msk [vmem:[%s6333_s26 + $0xd0] sm:$0xff] %vm599_vm0, %v3447_v63  ;;  %v3448_v11 = vmax.f32 %v3416_v53, 0.0  ;;  %v3346_v37 = vmul.f32 %v6317_v29, %v3296_v24  ;;  %v3298_v51 = vpop.f32.mrb[129].mxu1 }
 0x5e5   : > { %v3299_v35 = vpop.f32.mrb[130].mxu1 }
 0x5e6   : > { %3480 = vst.msk [vmem:[%s6333_s26 + $0xd8] sm:$0xff] %vm599_vm0, %v3448_v11  ;;  %v3385_v3 = vadd.f32 %v6323_v28, %v3346_v37  ;;  %v3347_v22 = vmul.f32 %v6317_v29, %v3299_v35  ;;  %v3301_v4 = vpop.f32.mrb[131].mxu1 }
 0x5e8   : > { %v3417_v0 = vadd.f32 %v4203_v12, %v3385_v3  ;;  %v3386_v31 = vadd.f32 %v6323_v28, %v3347_v22 }
 0x5ea   : > { %v3449_v13 = vmax.f32 %v3417_v0, 0.0  ;;  %v3418_v7 = vadd.f32 %v4204_v61, %v3386_v31 }
 0x5eb   : > { %v3304_v56 = vpop.f32.mrb[132].mxu1 }
 0x5ec   : > { %3481 = vst.msk [vmem:[%s6333_s26 + $0xe0] sm:$0xff] %vm599_vm0, %v3449_v13  ;;  %v3450_v50 = vmax.f32 %v3418_v7, 0.0  ;;  %v3348_v47 = vmul.f32 %v6317_v29, %v3304_v56  ;;  %v3306_v60 = vpop.f32.mrb[133].mxu1 }
 0x5ed   : > { %v3307_v9 = vpop.f32.mrb[134].mxu1 }
 0x5ee   : > { %3482 = vst.msk [vmem:[%s6333_s26 + $0xe8] sm:$0xff] %vm599_vm0, %v3450_v50  ;;  %v3387_v8 = vadd.f32 %v6323_v28, %v3348_v47  ;;  %v3349_v62 = vmul.f32 %v6317_v29, %v3307_v9  ;;  %v3309_v14 = vpop.f32.mrb[135].mxu1 }
 0x5f0   : > { %v3419_v54 = vadd.f32 %v4205_v27, %v3387_v8  ;;  %v3388_v20 = vadd.f32 %v6323_v28, %v3349_v62 }
 0x5f2   : > { %v3451_v15 = vmax.f32 %v3419_v54, 0.0  ;;  %v3420_v41 = vadd.f32 %v4206_v40, %v3388_v20 }
 0x5f4   : > { %3483 = vst.msk [vmem:[%s6333_s26 + $0xf0] sm:$0xff] %vm599_vm0, %v3451_v15  ;;  %v3452_v29 = vmax.f32 %v3420_v41, 0.0 }
 0x5f6   : > { %3484 = vst.msk [vmem:[%s6333_s26 + $0xf8] sm:$0xff] %vm599_vm0, %v3452_v29 }
 0x5f7   : > { %4220 = shalt.err (!%p4217_p5)
}
 0x5f8   : > { %s4221_s15 = scalar_lea.hbm %s6490_s16, 4096  ;;  %s4225_s14 = scalar_lea.hbm %s6557_s11, 8192 }
 0x5f9   : > { %p4222_p6 = scmp.ne.s32.totalorder %s6490_s16, %s4221_s15  ;;  %p4226_p10 = scmp.lt.u32.totalorder %s6490_s16, %s6557_s11 }
 0x5fa   : > { %p4227_p11 = scmp.lt.u32.totalorder %s4225_s14, %s4221_s15  ;;  %p4229_p13 = scmp.lt.u32.totalorder %s4221_s15, %s6490_s16 }
 0x5fb   : > { %p4223_p7 = pnand %p4222_p6, %p4393_p4 }
 0x5fc   : > { %p4228_p12 = por %p4227_p11, %p4226_p10 }
 0x5fd   : > { %p4224_p9 = pneg %p4223_p7 }
 0x5fe   : > { %p4230_p0 = por %p4229_p13, %p4228_p12 }
 0x600   : > { %p4231_p1 = pnand %p4230_p0, %p4224_p9 }
 0x602   : > { %4234 = shalt.err (!%p4231_p1)
}
 0x603   : > { %s4291_s28 = smov 128   ;;  %s4292_s12 = smov 8  }
 0x604   : > { %3724 = dma.vmem_to_hbm [thread:$0]  (%p4393_p4), %s6492_s13, 4096, %s6490_s16, %s6500_s20, %s4291_s28, %s4291_s28, %s4292_s12  }
 0x605 PF: > { %p3730_p2 = scmp.ge.s32.totalorder %s4285_s22, 2  ;;  %s3517_s26 = sand.u32 1, %s4265_s17  }
 0x606   : > { %s3518_s15 = scalar_lea.sflag [#allocation3], %s3517_s26 }
 0x607   : > { %p3727_p3 = pnand %p3730_p2, %p4400_p8 }
 0x609   : > { %4260 = dma.done.wait (!%p3727_p3), %s3518_s15, 4096  }
 0x60a   : > { %4262 = vsyncadd (!%p3727_p3), %s3518_s15, 4294963200  ;;  %s24_s22 = sadd.s32 1, %s4285_s22   ;;  %s6666_s17 = smov %s4269_s18 }
 0x60b   : > { %p21_p5 = scmp.ge.s32.totalorder %s24_s22, 4   ;;  %s6667_s18 = smov %s4273_s19 }
 0x60c   : > { %s6668_s19 = smov %s4406_s30  ;;  %s6669_s20 = smov %s4281_s21 }
 0x60d   : > { %s6670_s21 = smov %s6672_s25  ;;  %23 = sbr.rel (!%p21_p5) target bundleno = 6 (0x6), region = 99 }
 0x614   :  { %3523 = vsyncpa [#allocation3], 1 }
 0x615   :  { %3525 = vsyncpa [#allocation3 + $0x1], 1 }

</bundles_post_ra>
